<compile_context>
chip_gen: v7x
topology: tpu7x:2x2x1
jax: 0.10.0
libtpu: 0.0.40
codegen_flags: <defaults>
</compile_context>

<pallas_src>
import functools
import math

import jax
import jax.numpy as jnp
from jax.experimental import pallas as pl
from jax.experimental.pallas import tpu as pltpu

_CFGS = [
    # (C_in, C_out, kernel_size, has_bn_relu)
    (1, 16, 3, True),
    (16, 32, 3, True),
    (32, 64, 3, True),
    (64, 64, 3, True),
    (64, 64, 3, True),
    (64, 64, 3, True),
    (64, 64, 3, True),
    (64, 2, 1, False),
]
_N_OUT = _CFGS[-1][1]            # 2 real output channels
_TARGET_TILE_LANES = 1024        # lane-tile target (multiple of 128)


def _round_up(x, m):
    return (x + m - 1) // m * m


# ----------------------------- Pallas kernel -------------------------------- #
def _ultranet_fused_kernel(x_ref, *rest, seq_len):
    """Whole network on one (C, tile_lanes) activation slab held in VMEM.

    rest = [w3_0, shift_0, ..., w3_6, shift_6, w1, o_ref]
      w3_i   : (3, C_out_i, C_in_i)   conv3 taps (BN scale folded), cdt
      shift_i: (C_out_i, 1)           folded-BN shift, f32
      w1     : (8, 64)                final k=1 conv (rows padded to 8), cdt
    """
    o_ref = rest[-1]
    w1_ref = rest[-2]
    layer_refs = rest[:-2]
    n_conv3 = len(layer_refs) // 2

    h = x_ref[...]                               # (8, T) f32
    tile = h.shape[1]

    # Seam mask (built once, shared by every layer): lanes whose left / right
    # neighbour lies in a different sequence (or wraps around the tile).
    lane = jax.lax.broadcasted_iota(jnp.int32, (1, tile), 1)
    if seq_len & (seq_len - 1) == 0:
        pos = lane & (seq_len - 1)
    else:
        pos = lane % seq_len
    keep_l = (pos != 0).astype(jnp.float32)              # (1, T)
    keep_r = (pos != seq_len - 1).astype(jnp.float32)    # (1, T)

    for i in range(n_conv3):                     # static unroll: 7 layers
        w_ref = layer_refs[2 * i]
        s_ref = layer_refs[2 * i + 1]
        cdt = w_ref.dtype

        # Halo shifts on the XLU; wrapped lanes are zeroed by the seam mask.
        x_l = pltpu.roll(h, shift=1, axis=1) * keep_l          # x[:, l-1]
        x_r = pltpu.roll(h, shift=tile - 1, axis=1) * keep_r   # x[:, l+1]

        # Conv3 as three accumulating matmuls (no (3C, T) staging concat).
        y = jnp.dot(w_ref[1], h.astype(cdt), preferred_element_type=jnp.float32)
        y = y + jnp.dot(w_ref[0], x_l.astype(cdt),
                        preferred_element_type=jnp.float32)
        y = y + jnp.dot(w_ref[2], x_r.astype(cdt),
                        preferred_element_type=jnp.float32)

        h = jnp.maximum(y + s_ref[...], 0.0)     # folded-BN shift + ReLU (f32)

    # Final Conv1d(64 -> 2, k=1): center tap only; output padded to 8 sublanes
    # so the store is an unmasked tile store.
    o_ref[...] = jnp.dot(w1_ref[...], h.astype(w1_ref.dtype),
                         preferred_element_type=jnp.float32).astype(o_ref.dtype)


def _choose_batches_per_tile(batch, seq_len, target_lanes=_TARGET_TILE_LANES):
    """Largest divisor d of batch s.t. d*seq_len is 128-aligned and <= target."""
    divs = [d for d in range(1, batch + 1) if batch % d == 0]
    ok128 = [d for d in divs if (d * seq_len) % 128 == 0]
    within = [d for d in ok128 if d * seq_len <= target_lanes]
    if within:
        return max(within)
    if ok128:
        return min(ok128)
    return batch   # single tile == full array (no 128-multiple requirement)


def _fused_call(x2d, packed, *, seq_len, batches_per_tile):
    c_in_pad, bl = x2d.shape
    tile = batches_per_tile * seq_len
    n_tiles = bl // tile

    args = [x2d]
    in_specs = [pl.BlockSpec((c_in_pad, tile), lambda i: (0, i))]
    for w, s in zip(packed["w3"], packed["shift3"]):
        args += [w, s]
        # Full-array specs with constant index maps -> weights stay resident
        # in VMEM across grid steps (no re-DMA).
        in_specs += [pl.BlockSpec(w.shape, lambda i, nd=w.ndim: (0,) * nd),
                     pl.BlockSpec(s.shape, lambda i, nd=s.ndim: (0,) * nd)]
    args.append(packed["w1"])
    in_specs.append(pl.BlockSpec(packed["w1"].shape, lambda i: (0, 0)))

    out_rows = packed["w1"].shape[0]             # 8 (padded)
    kernel = functools.partial(_ultranet_fused_kernel, seq_len=seq_len)
    return pl.pallas_call(
        kernel,
        grid=(n_tiles,),
        out_shape=jax.ShapeDtypeStruct((out_rows, bl), jnp.float32),
        in_specs=in_specs,
        out_specs=pl.BlockSpec((out_rows, tile), lambda i: (0, i)),
        compiler_params=pltpu.CompilerParams(
            dimension_semantics=("parallel",)),
    )(*args)


# --------------------------- Parameter construction ------------------------- #
def make_params(key):
    """Raw per-layer params (PyTorch-style init, eval-mode BN stats)."""
    params = []
    eps = 1e-5
    for (c_in, c_out, k, has_bn) in _CFGS:
        key, sub = jax.random.split(key)
        bound = 1.0 / math.sqrt(c_in * k)        # PyTorch Conv1d default init
        w = jax.random.uniform(sub, (c_out, c_in, k), jnp.float32, -bound, bound)
        if has_bn:
            gamma = jnp.ones((c_out,), jnp.float32)
            beta = jnp.zeros((c_out,), jnp.float32)
            mean = jnp.zeros((c_out,), jnp.float32)
            var = jnp.ones((c_out,), jnp.float32)
            scale = gamma / jnp.sqrt(var + eps)
            shift = beta - mean * scale
        else:
            scale = jnp.ones((c_out,), jnp.float32)
            shift = jnp.zeros((c_out,), jnp.float32)
        params.append({"w": w, "scale": scale, "shift": shift, "relu": has_bn})
    return params


def pack_params(params, compute_dtype=jnp.float32):
    """One-time packing: trim channel padding to per-layer sizes, fold the
    eval-mode BN scale into the conv weights, split the 3 taps on axis 0."""
    w3, shift3 = [], []
    carry = _round_up(params[0]["w"].shape[1], 8)        # input pad: 1 -> 8
    for p in params[:-1]:
        c_out, c_in, _ = p["w"].shape
        co_pad = _round_up(c_out, 8)
        w = p["w"] * p["scale"][:, None, None]           # fold BN scale
        w = jnp.pad(w, ((0, co_pad - c_out), (0, carry - c_in), (0, 0)))
        w3.append(jnp.transpose(w, (2, 0, 1)).astype(compute_dtype))
        shift3.append(jnp.pad(p["shift"], (0, co_pad - c_out))[:, None])  # f32
        carry = co_pad
    last = params[-1]
    c_out_last, c_in_last, _ = last["w"].shape
    co_pad = _round_up(c_out_last, 8)
    w1 = last["w"][:, :, 0] * last["scale"][:, None]     # (2, 64)
    w1 = jnp.pad(w1, ((0, co_pad - c_out_last), (0, carry - c_in_last)))
    return {"w3": w3, "shift3": shift3, "w1": w1.astype(compute_dtype)}


def _default_compute_dtype():
    """bf16 matmul operands on v6e/v7x (2x MXU throughput); f32 elsewhere."""
    try:
        kind = jax.devices()[0].device_kind.lower()
    except Exception:
        return jnp.float32
    if "v6" in kind or "v7" in kind:
        return jnp.bfloat16
    return jnp.float32


# -------------------------------- Forward ----------------------------------- #
def ultra_net_forward(x, packed):
    """x: (B, 1, L) float32 -> (B, 2, L) float32 via one fused Pallas kernel."""
    B, c_in, L = x.shape
    bl = B * L
    in_pad = packed["w3"][0].shape[2]            # 8
    # (B, 1, L) -> (in_pad, B*L): channel on sublanes, batch folded into lanes.
    x2d = jnp.zeros((in_pad, bl), jnp.float32)
    x2d = x2d.at[:c_in, :].set(
        x.astype(jnp.float32).transpose(1, 0, 2).reshape(c_in, bl))
    bpt = _choose_batches_per_tile(B, L)
    out2d = _fused_call(x2d, packed, seq_len=L, batches_per_tile=bpt)
    return out2d[:_N_OUT].reshape(_N_OUT, B, L).transpose(1, 0, 2)


# ----------------------------- Pure-JAX reference --------------------------- #
def ultra_net_reference(x, params):
    h = x.astype(jnp.float32)
    for p in params:
        w = p["w"]
        pad = 1 if w.shape[2] == 3 else 0
        h = jax.lax.conv_general_dilated(
            h, w, window_strides=(1,), padding=((pad, pad),),
            dimension_numbers=("NCH", "OIH", "NCH"))
        h = h * p["scale"][None, :, None] + p["shift"][None, :, None]
        if p["relu"]:
            h = jnp.maximum(h, 0.0)
    return h


# --------------------------------- Main -------------------------------------- #
if __name__ == "__main__":
    key = jax.random.PRNGKey(0)
    pkey, xkey = jax.random.split(key)
    params = make_params(pkey)

    cdt = _default_compute_dtype()
    packed = pack_params(params, compute_dtype=cdt)
    tol = 2e-4 if cdt == jnp.float32 else 5e-2   # loosen for bf16 matmuls

    fwd = jax.jit(ultra_net_forward)

    # Small shape (single-tile grid) and a slightly larger batch that exercises
    # the multi-tile pipelined grid + seam masking across batches in one tile.
    for (B, L) in [(2, 128), (16, 128)]:
        xkey, sub = jax.random.split(xkey)
        x = jax.random.normal(sub, (B, 1, L), dtype=jnp.float32)
        out = jax.block_until_ready(fwd(x, packed))
        assert out.shape == (B, 2, L), out.shape
        ref = jax.block_until_ready(ultra_net_reference(x, params))
        err = float(jnp.max(jnp.abs(out - ref)))
        assert jnp.allclose(out, ref, atol=tol, rtol=tol), err

    print("KERNEL_OK")
</pallas_src>

<mosaic_0001>
module attributes {stable_mosaic.version = 11 : i64} {
  func.func @_ultranet_fused_kernel(%arg0: i32, %arg1: memref<8x256xf32, #tpu.memory_space<vmem>>, %arg2: memref<3x16x8xf32, #tpu.memory_space<vmem>>, %arg3: memref<16x1xf32, #tpu.memory_space<vmem>>, %arg4: memref<3x32x16xf32, #tpu.memory_space<vmem>>, %arg5: memref<32x1xf32, #tpu.memory_space<vmem>>, %arg6: memref<3x64x32xf32, #tpu.memory_space<vmem>>, %arg7: memref<64x1xf32, #tpu.memory_space<vmem>>, %arg8: memref<3x64x64xf32, #tpu.memory_space<vmem>>, %arg9: memref<64x1xf32, #tpu.memory_space<vmem>>, %arg10: memref<3x64x64xf32, #tpu.memory_space<vmem>>, %arg11: memref<64x1xf32, #tpu.memory_space<vmem>>, %arg12: memref<3x64x64xf32, #tpu.memory_space<vmem>>, %arg13: memref<64x1xf32, #tpu.memory_space<vmem>>, %arg14: memref<3x64x64xf32, #tpu.memory_space<vmem>>, %arg15: memref<64x1xf32, #tpu.memory_space<vmem>>, %arg16: memref<8x64xf32, #tpu.memory_space<vmem>>, %arg17: memref<8x256xf32, #tpu.memory_space<vmem>>) attributes {dimension_semantics = [#tpu.dimension_semantics<parallel>], iteration_bounds = array<i64: 1>, scalar_prefetch = 0 : i64, scratch_operands = 0 : i64, tpu.core_type = #tpu.core_type<tc>, window_params = [{transform_indices = @transform_0, window_bounds = array<i64: 8, 256>}, {pipeline_mode = #tpu.pipeline_mode<synchronous>, transform_indices = @transform_1, window_bounds = array<i64: 3, 16, 8>}, {pipeline_mode = #tpu.pipeline_mode<synchronous>, transform_indices = @transform_2, window_bounds = array<i64: 16, 1>}, {pipeline_mode = #tpu.pipeline_mode<synchronous>, transform_indices = @transform_3, window_bounds = array<i64: 3, 32, 16>}, {pipeline_mode = #tpu.pipeline_mode<synchronous>, transform_indices = @transform_4, window_bounds = array<i64: 32, 1>}, {pipeline_mode = #tpu.pipeline_mode<synchronous>, transform_indices = @transform_5, window_bounds = array<i64: 3, 64, 32>}, {pipeline_mode = #tpu.pipeline_mode<synchronous>, transform_indices = @transform_6, window_bounds = array<i64: 64, 1>}, {pipeline_mode = #tpu.pipeline_mode<synchronous>, transform_indices = @transform_7, window_bounds = array<i64: 3, 64, 64>}, {pipeline_mode = #tpu.pipeline_mode<synchronous>, transform_indices = @transform_8, window_bounds = array<i64: 64, 1>}, {pipeline_mode = #tpu.pipeline_mode<synchronous>, transform_indices = @transform_9, window_bounds = array<i64: 3, 64, 64>}, {pipeline_mode = #tpu.pipeline_mode<synchronous>, transform_indices = @transform_10, window_bounds = array<i64: 64, 1>}, {pipeline_mode = #tpu.pipeline_mode<synchronous>, transform_indices = @transform_11, window_bounds = array<i64: 3, 64, 64>}, {pipeline_mode = #tpu.pipeline_mode<synchronous>, transform_indices = @transform_12, window_bounds = array<i64: 64, 1>}, {pipeline_mode = #tpu.pipeline_mode<synchronous>, transform_indices = @transform_13, window_bounds = array<i64: 3, 64, 64>}, {pipeline_mode = #tpu.pipeline_mode<synchronous>, transform_indices = @transform_14, window_bounds = array<i64: 64, 1>}, {pipeline_mode = #tpu.pipeline_mode<synchronous>, transform_indices = @transform_15, window_bounds = array<i64: 8, 64>}, {transform_indices = @transform_16, window_bounds = array<i64: 8, 256>}]} {
    %c0 = arith.constant 0 : index
    %c0_0 = arith.constant 0 : index
    %0 = vector.load %arg1[%c0, %c0_0] : memref<8x256xf32, #tpu.memory_space<vmem>>, vector<8x256xf32>
    %1 = tpu.iota {dimensions = array<i32: 1>} : vector<1x256xi32>
    %c127_i32 = arith.constant 127 : i32
    %2 = vector.broadcast %c127_i32 : i32 to vector<1x256xi32>
    %3 = arith.andi %1, %2 : vector<1x256xi32>
    %c0_i32 = arith.constant 0 : i32
    %4 = vector.broadcast %c0_i32 : i32 to vector<1x256xi32>
    %5 = arith.cmpi ne, %3, %4 : vector<1x256xi32>
    %6 = arith.extui %5 : vector<1x256xi1> to vector<1x256xi32>
    %7 = arith.sitofp %6 : vector<1x256xi32> to vector<1x256xf32>
    %c127_i32_1 = arith.constant 127 : i32
    %8 = vector.broadcast %c127_i32_1 : i32 to vector<1x256xi32>
    %9 = arith.cmpi ne, %3, %8 : vector<1x256xi32>
    %10 = arith.extui %9 : vector<1x256xi1> to vector<1x256xi32>
    %11 = arith.sitofp %10 : vector<1x256xi32> to vector<1x256xf32>
    %c1_i32 = arith.constant 1 : i32
    %12 = tpu.dynamic_rotate %0 by %c1_i32 dim 1 : vector<8x256xf32>, i32 -> vector<8x256xf32>
    %13 = vector.broadcast %7 : vector<1x256xf32> to vector<8x256xf32>
    %14 = arith.mulf %12, %13 : vector<8x256xf32>
    %c255_i32 = arith.constant 255 : i32
    %15 = tpu.dynamic_rotate %0 by %c255_i32 dim 1 : vector<8x256xf32>, i32 -> vector<8x256xf32>
    %16 = vector.broadcast %11 : vector<1x256xf32> to vector<8x256xf32>
    %17 = arith.mulf %15, %16 : vector<8x256xf32>
    %c1 = arith.constant 1 : index
    %c0_2 = arith.constant 0 : index
    %c0_3 = arith.constant 0 : index
    %18 = vector.load %arg2[%c1, %c0_2, %c0_3] : memref<3x16x8xf32, #tpu.memory_space<vmem>>, vector<1x16x8xf32>
    %19 = vector.shape_cast %18 : vector<1x16x8xf32> to vector<16x8xf32>
    %cst = arith.constant dense<0.000000e+00> : vector<16x256xf32>
    %20 = tpu.matmul %19, %0, %cst {dimension_numbers = #tpu.dot_dimension_numbers<[1], [0], [0], [1], [0, 0, 1, 1], [], []>} : vector<16x8xf32>, vector<8x256xf32>, vector<16x256xf32> -> vector<16x256xf32>
    %c0_4 = arith.constant 0 : index
    %c0_5 = arith.constant 0 : index
    %c0_6 = arith.constant 0 : index
    %21 = vector.load %arg2[%c0_4, %c0_5, %c0_6] : memref<3x16x8xf32, #tpu.memory_space<vmem>>, vector<1x16x8xf32>
    %22 = vector.shape_cast %21 : vector<1x16x8xf32> to vector<16x8xf32>
    %cst_7 = arith.constant dense<0.000000e+00> : vector<16x256xf32>
    %23 = tpu.matmul %22, %14, %cst_7 {dimension_numbers = #tpu.dot_dimension_numbers<[1], [0], [0], [1], [0, 0, 1, 1], [], []>} : vector<16x8xf32>, vector<8x256xf32>, vector<16x256xf32> -> vector<16x256xf32>
    %24 = arith.addf %20, %23 : vector<16x256xf32>
    %c2 = arith.constant 2 : index
    %c0_8 = arith.constant 0 : index
    %c0_9 = arith.constant 0 : index
    %25 = vector.load %arg2[%c2, %c0_8, %c0_9] : memref<3x16x8xf32, #tpu.memory_space<vmem>>, vector<1x16x8xf32>
    %26 = vector.shape_cast %25 : vector<1x16x8xf32> to vector<16x8xf32>
    %cst_10 = arith.constant dense<0.000000e+00> : vector<16x256xf32>
    %27 = tpu.matmul %26, %17, %cst_10 {dimension_numbers = #tpu.dot_dimension_numbers<[1], [0], [0], [1], [0, 0, 1, 1], [], []>} : vector<16x8xf32>, vector<8x256xf32>, vector<16x256xf32> -> vector<16x256xf32>
    %28 = arith.addf %24, %27 : vector<16x256xf32>
    %c0_11 = arith.constant 0 : index
    %c0_12 = arith.constant 0 : index
    %29 = vector.load %arg3[%c0_11, %c0_12] : memref<16x1xf32, #tpu.memory_space<vmem>>, vector<16x1xf32>
    %30 = vector.broadcast %29 : vector<16x1xf32> to vector<16x256xf32>
    %31 = arith.addf %28, %30 : vector<16x256xf32>
    %cst_13 = arith.constant 0.000000e+00 : f32
    %32 = vector.broadcast %cst_13 : f32 to vector<16x256xf32>
    %33 = arith.maximumf %31, %32 : vector<16x256xf32>
    %c1_i32_14 = arith.constant 1 : i32
    %34 = tpu.dynamic_rotate %33 by %c1_i32_14 dim 1 : vector<16x256xf32>, i32 -> vector<16x256xf32>
    %35 = vector.broadcast %7 : vector<1x256xf32> to vector<16x256xf32>
    %36 = arith.mulf %34, %35 : vector<16x256xf32>
    %c255_i32_15 = arith.constant 255 : i32
    %37 = tpu.dynamic_rotate %33 by %c255_i32_15 dim 1 : vector<16x256xf32>, i32 -> vector<16x256xf32>
    %38 = vector.broadcast %11 : vector<1x256xf32> to vector<16x256xf32>
    %39 = arith.mulf %37, %38 : vector<16x256xf32>
    %c1_16 = arith.constant 1 : index
    %c0_17 = arith.constant 0 : index
    %c0_18 = arith.constant 0 : index
    %40 = vector.load %arg4[%c1_16, %c0_17, %c0_18] : memref<3x32x16xf32, #tpu.memory_space<vmem>>, vector<1x32x16xf32>
    %41 = vector.shape_cast %40 : vector<1x32x16xf32> to vector<32x16xf32>
    %cst_19 = arith.constant dense<0.000000e+00> : vector<32x256xf32>
    %42 = tpu.matmul %41, %33, %cst_19 {dimension_numbers = #tpu.dot_dimension_numbers<[1], [0], [0], [1], [0, 0, 1, 1], [], []>} : vector<32x16xf32>, vector<16x256xf32>, vector<32x256xf32> -> vector<32x256xf32>
    %c0_20 = arith.constant 0 : index
    %c0_21 = arith.constant 0 : index
    %c0_22 = arith.constant 0 : index
    %43 = vector.load %arg4[%c0_20, %c0_21, %c0_22] : memref<3x32x16xf32, #tpu.memory_space<vmem>>, vector<1x32x16xf32>
    %44 = vector.shape_cast %43 : vector<1x32x16xf32> to vector<32x16xf32>
    %cst_23 = arith.constant dense<0.000000e+00> : vector<32x256xf32>
    %45 = tpu.matmul %44, %36, %cst_23 {dimension_numbers = #tpu.dot_dimension_numbers<[1], [0], [0], [1], [0, 0, 1, 1], [], []>} : vector<32x16xf32>, vector<16x256xf32>, vector<32x256xf32> -> vector<32x256xf32>
    %46 = arith.addf %42, %45 : vector<32x256xf32>
    %c2_24 = arith.constant 2 : index
    %c0_25 = arith.constant 0 : index
    %c0_26 = arith.constant 0 : index
    %47 = vector.load %arg4[%c2_24, %c0_25, %c0_26] : memref<3x32x16xf32, #tpu.memory_space<vmem>>, vector<1x32x16xf32>
    %48 = vector.shape_cast %47 : vector<1x32x16xf32> to vector<32x16xf32>
    %cst_27 = arith.constant dense<0.000000e+00> : vector<32x256xf32>
    %49 = tpu.matmul %48, %39, %cst_27 {dimension_numbers = #tpu.dot_dimension_numbers<[1], [0], [0], [1], [0, 0, 1, 1], [], []>} : vector<32x16xf32>, vector<16x256xf32>, vector<32x256xf32> -> vector<32x256xf32>
    %50 = arith.addf %46, %49 : vector<32x256xf32>
    %c0_28 = arith.constant 0 : index
    %c0_29 = arith.constant 0 : index
    %51 = vector.load %arg5[%c0_28, %c0_29] : memref<32x1xf32, #tpu.memory_space<vmem>>, vector<32x1xf32>
    %52 = vector.broadcast %51 : vector<32x1xf32> to vector<32x256xf32>
    %53 = arith.addf %50, %52 : vector<32x256xf32>
    %cst_30 = arith.constant 0.000000e+00 : f32
    %54 = vector.broadcast %cst_30 : f32 to vector<32x256xf32>
    %55 = arith.maximumf %53, %54 : vector<32x256xf32>
    %c1_i32_31 = arith.constant 1 : i32
    %56 = tpu.dynamic_rotate %55 by %c1_i32_31 dim 1 : vector<32x256xf32>, i32 -> vector<32x256xf32>
    %57 = vector.broadcast %7 : vector<1x256xf32> to vector<32x256xf32>
    %58 = arith.mulf %56, %57 : vector<32x256xf32>
    %c255_i32_32 = arith.constant 255 : i32
    %59 = tpu.dynamic_rotate %55 by %c255_i32_32 dim 1 : vector<32x256xf32>, i32 -> vector<32x256xf32>
    %60 = vector.broadcast %11 : vector<1x256xf32> to vector<32x256xf32>
    %61 = arith.mulf %59, %60 : vector<32x256xf32>
    %c1_33 = arith.constant 1 : index
    %c0_34 = arith.constant 0 : index
    %c0_35 = arith.constant 0 : index
    %62 = vector.load %arg6[%c1_33, %c0_34, %c0_35] : memref<3x64x32xf32, #tpu.memory_space<vmem>>, vector<1x64x32xf32>
    %63 = vector.shape_cast %62 : vector<1x64x32xf32> to vector<64x32xf32>
    %cst_36 = arith.constant dense<0.000000e+00> : vector<64x256xf32>
    %64 = tpu.matmul %63, %55, %cst_36 {dimension_numbers = #tpu.dot_dimension_numbers<[1], [0], [0], [1], [0, 0, 1, 1], [], []>} : vector<64x32xf32>, vector<32x256xf32>, vector<64x256xf32> -> vector<64x256xf32>
    %c0_37 = arith.constant 0 : index
    %c0_38 = arith.constant 0 : index
    %c0_39 = arith.constant 0 : index
    %65 = vector.load %arg6[%c0_37, %c0_38, %c0_39] : memref<3x64x32xf32, #tpu.memory_space<vmem>>, vector<1x64x32xf32>
    %66 = vector.shape_cast %65 : vector<1x64x32xf32> to vector<64x32xf32>
    %cst_40 = arith.constant dense<0.000000e+00> : vector<64x256xf32>
    %67 = tpu.matmul %66, %58, %cst_40 {dimension_numbers = #tpu.dot_dimension_numbers<[1], [0], [0], [1], [0, 0, 1, 1], [], []>} : vector<64x32xf32>, vector<32x256xf32>, vector<64x256xf32> -> vector<64x256xf32>
    %68 = arith.addf %64, %67 : vector<64x256xf32>
    %c2_41 = arith.constant 2 : index
    %c0_42 = arith.constant 0 : index
    %c0_43 = arith.constant 0 : index
    %69 = vector.load %arg6[%c2_41, %c0_42, %c0_43] : memref<3x64x32xf32, #tpu.memory_space<vmem>>, vector<1x64x32xf32>
    %70 = vector.shape_cast %69 : vector<1x64x32xf32> to vector<64x32xf32>
    %cst_44 = arith.constant dense<0.000000e+00> : vector<64x256xf32>
    %71 = tpu.matmul %70, %61, %cst_44 {dimension_numbers = #tpu.dot_dimension_numbers<[1], [0], [0], [1], [0, 0, 1, 1], [], []>} : vector<64x32xf32>, vector<32x256xf32>, vector<64x256xf32> -> vector<64x256xf32>
    %72 = arith.addf %68, %71 : vector<64x256xf32>
    %c0_45 = arith.constant 0 : index
    %c0_46 = arith.constant 0 : index
    %73 = vector.load %arg7[%c0_45, %c0_46] : memref<64x1xf32, #tpu.memory_space<vmem>>, vector<64x1xf32>
    %74 = vector.broadcast %73 : vector<64x1xf32> to vector<64x256xf32>
    %75 = arith.addf %72, %74 : vector<64x256xf32>
    %cst_47 = arith.constant 0.000000e+00 : f32
    %76 = vector.broadcast %cst_47 : f32 to vector<64x256xf32>
    %77 = arith.maximumf %75, %76 : vector<64x256xf32>
    %c1_i32_48 = arith.constant 1 : i32
    %78 = tpu.dynamic_rotate %77 by %c1_i32_48 dim 1 : vector<64x256xf32>, i32 -> vector<64x256xf32>
    %79 = vector.broadcast %7 : vector<1x256xf32> to vector<64x256xf32>
    %80 = arith.mulf %78, %79 : vector<64x256xf32>
    %c255_i32_49 = arith.constant 255 : i32
    %81 = tpu.dynamic_rotate %77 by %c255_i32_49 dim 1 : vector<64x256xf32>, i32 -> vector<64x256xf32>
    %82 = vector.broadcast %11 : vector<1x256xf32> to vector<64x256xf32>
    %83 = arith.mulf %81, %82 : vector<64x256xf32>
    %c1_50 = arith.constant 1 : index
    %c0_51 = arith.constant 0 : index
    %c0_52 = arith.constant 0 : index
    %84 = vector.load %arg8[%c1_50, %c0_51, %c0_52] : memref<3x64x64xf32, #tpu.memory_space<vmem>>, vector<1x64x64xf32>
    %85 = vector.shape_cast %84 : vector<1x64x64xf32> to vector<64x64xf32>
    %cst_53 = arith.constant dense<0.000000e+00> : vector<64x256xf32>
    %86 = tpu.matmul %85, %77, %cst_53 {dimension_numbers = #tpu.dot_dimension_numbers<[1], [0], [0], [1], [0, 0, 1, 1], [], []>} : vector<64x64xf32>, vector<64x256xf32>, vector<64x256xf32> -> vector<64x256xf32>
    %c0_54 = arith.constant 0 : index
    %c0_55 = arith.constant 0 : index
    %c0_56 = arith.constant 0 : index
    %87 = vector.load %arg8[%c0_54, %c0_55, %c0_56] : memref<3x64x64xf32, #tpu.memory_space<vmem>>, vector<1x64x64xf32>
    %88 = vector.shape_cast %87 : vector<1x64x64xf32> to vector<64x64xf32>
    %cst_57 = arith.constant dense<0.000000e+00> : vector<64x256xf32>
    %89 = tpu.matmul %88, %80, %cst_57 {dimension_numbers = #tpu.dot_dimension_numbers<[1], [0], [0], [1], [0, 0, 1, 1], [], []>} : vector<64x64xf32>, vector<64x256xf32>, vector<64x256xf32> -> vector<64x256xf32>
    %90 = arith.addf %86, %89 : vector<64x256xf32>
    %c2_58 = arith.constant 2 : index
    %c0_59 = arith.constant 0 : index
    %c0_60 = arith.constant 0 : index
    %91 = vector.load %arg8[%c2_58, %c0_59, %c0_60] : memref<3x64x64xf32, #tpu.memory_space<vmem>>, vector<1x64x64xf32>
    %92 = vector.shape_cast %91 : vector<1x64x64xf32> to vector<64x64xf32>
    %cst_61 = arith.constant dense<0.000000e+00> : vector<64x256xf32>
    %93 = tpu.matmul %92, %83, %cst_61 {dimension_numbers = #tpu.dot_dimension_numbers<[1], [0], [0], [1], [0, 0, 1, 1], [], []>} : vector<64x64xf32>, vector<64x256xf32>, vector<64x256xf32> -> vector<64x256xf32>
    %94 = arith.addf %90, %93 : vector<64x256xf32>
    %c0_62 = arith.constant 0 : index
    %c0_63 = arith.constant 0 : index
    %95 = vector.load %arg9[%c0_62, %c0_63] : memref<64x1xf32, #tpu.memory_space<vmem>>, vector<64x1xf32>
    %96 = vector.broadcast %95 : vector<64x1xf32> to vector<64x256xf32>
    %97 = arith.addf %94, %96 : vector<64x256xf32>
    %cst_64 = arith.constant 0.000000e+00 : f32
    %98 = vector.broadcast %cst_64 : f32 to vector<64x256xf32>
    %99 = arith.maximumf %97, %98 : vector<64x256xf32>
    %c1_i32_65 = arith.constant 1 : i32
    %100 = tpu.dynamic_rotate %99 by %c1_i32_65 dim 1 : vector<64x256xf32>, i32 -> vector<64x256xf32>
    %101 = vector.broadcast %7 : vector<1x256xf32> to vector<64x256xf32>
    %102 = arith.mulf %100, %101 : vector<64x256xf32>
    %c255_i32_66 = arith.constant 255 : i32
    %103 = tpu.dynamic_rotate %99 by %c255_i32_66 dim 1 : vector<64x256xf32>, i32 -> vector<64x256xf32>
    %104 = vector.broadcast %11 : vector<1x256xf32> to vector<64x256xf32>
    %105 = arith.mulf %103, %104 : vector<64x256xf32>
    %c1_67 = arith.constant 1 : index
    %c0_68 = arith.constant 0 : index
    %c0_69 = arith.constant 0 : index
    %106 = vector.load %arg10[%c1_67, %c0_68, %c0_69] : memref<3x64x64xf32, #tpu.memory_space<vmem>>, vector<1x64x64xf32>
    %107 = vector.shape_cast %106 : vector<1x64x64xf32> to vector<64x64xf32>
    %cst_70 = arith.constant dense<0.000000e+00> : vector<64x256xf32>
    %108 = tpu.matmul %107, %99, %cst_70 {dimension_numbers = #tpu.dot_dimension_numbers<[1], [0], [0], [1], [0, 0, 1, 1], [], []>} : vector<64x64xf32>, vector<64x256xf32>, vector<64x256xf32> -> vector<64x256xf32>
    %c0_71 = arith.constant 0 : index
    %c0_72 = arith.constant 0 : index
    %c0_73 = arith.constant 0 : index
    %109 = vector.load %arg10[%c0_71, %c0_72, %c0_73] : memref<3x64x64xf32, #tpu.memory_space<vmem>>, vector<1x64x64xf32>
    %110 = vector.shape_cast %109 : vector<1x64x64xf32> to vector<64x64xf32>
    %cst_74 = arith.constant dense<0.000000e+00> : vector<64x256xf32>
    %111 = tpu.matmul %110, %102, %cst_74 {dimension_numbers = #tpu.dot_dimension_numbers<[1], [0], [0], [1], [0, 0, 1, 1], [], []>} : vector<64x64xf32>, vector<64x256xf32>, vector<64x256xf32> -> vector<64x256xf32>
    %112 = arith.addf %108, %111 : vector<64x256xf32>
    %c2_75 = arith.constant 2 : index
    %c0_76 = arith.constant 0 : index
    %c0_77 = arith.constant 0 : index
    %113 = vector.load %arg10[%c2_75, %c0_76, %c0_77] : memref<3x64x64xf32, #tpu.memory_space<vmem>>, vector<1x64x64xf32>
    %114 = vector.shape_cast %113 : vector<1x64x64xf32> to vector<64x64xf32>
    %cst_78 = arith.constant dense<0.000000e+00> : vector<64x256xf32>
    %115 = tpu.matmul %114, %105, %cst_78 {dimension_numbers = #tpu.dot_dimension_numbers<[1], [0], [0], [1], [0, 0, 1, 1], [], []>} : vector<64x64xf32>, vector<64x256xf32>, vector<64x256xf32> -> vector<64x256xf32>
    %116 = arith.addf %112, %115 : vector<64x256xf32>
    %c0_79 = arith.constant 0 : index
    %c0_80 = arith.constant 0 : index
    %117 = vector.load %arg11[%c0_79, %c0_80] : memref<64x1xf32, #tpu.memory_space<vmem>>, vector<64x1xf32>
    %118 = vector.broadcast %117 : vector<64x1xf32> to vector<64x256xf32>
    %119 = arith.addf %116, %118 : vector<64x256xf32>
    %cst_81 = arith.constant 0.000000e+00 : f32
    %120 = vector.broadcast %cst_81 : f32 to vector<64x256xf32>
    %121 = arith.maximumf %119, %120 : vector<64x256xf32>
    %c1_i32_82 = arith.constant 1 : i32
    %122 = tpu.dynamic_rotate %121 by %c1_i32_82 dim 1 : vector<64x256xf32>, i32 -> vector<64x256xf32>
    %123 = vector.broadcast %7 : vector<1x256xf32> to vector<64x256xf32>
    %124 = arith.mulf %122, %123 : vector<64x256xf32>
    %c255_i32_83 = arith.constant 255 : i32
    %125 = tpu.dynamic_rotate %121 by %c255_i32_83 dim 1 : vector<64x256xf32>, i32 -> vector<64x256xf32>
    %126 = vector.broadcast %11 : vector<1x256xf32> to vector<64x256xf32>
    %127 = arith.mulf %125, %126 : vector<64x256xf32>
    %c1_84 = arith.constant 1 : index
    %c0_85 = arith.constant 0 : index
    %c0_86 = arith.constant 0 : index
    %128 = vector.load %arg12[%c1_84, %c0_85, %c0_86] : memref<3x64x64xf32, #tpu.memory_space<vmem>>, vector<1x64x64xf32>
    %129 = vector.shape_cast %128 : vector<1x64x64xf32> to vector<64x64xf32>
    %cst_87 = arith.constant dense<0.000000e+00> : vector<64x256xf32>
    %130 = tpu.matmul %129, %121, %cst_87 {dimension_numbers = #tpu.dot_dimension_numbers<[1], [0], [0], [1], [0, 0, 1, 1], [], []>} : vector<64x64xf32>, vector<64x256xf32>, vector<64x256xf32> -> vector<64x256xf32>
    %c0_88 = arith.constant 0 : index
    %c0_89 = arith.constant 0 : index
    %c0_90 = arith.constant 0 : index
    %131 = vector.load %arg12[%c0_88, %c0_89, %c0_90] : memref<3x64x64xf32, #tpu.memory_space<vmem>>, vector<1x64x64xf32>
    %132 = vector.shape_cast %131 : vector<1x64x64xf32> to vector<64x64xf32>
    %cst_91 = arith.constant dense<0.000000e+00> : vector<64x256xf32>
    %133 = tpu.matmul %132, %124, %cst_91 {dimension_numbers = #tpu.dot_dimension_numbers<[1], [0], [0], [1], [0, 0, 1, 1], [], []>} : vector<64x64xf32>, vector<64x256xf32>, vector<64x256xf32> -> vector<64x256xf32>
    %134 = arith.addf %130, %133 : vector<64x256xf32>
    %c2_92 = arith.constant 2 : index
    %c0_93 = arith.constant 0 : index
    %c0_94 = arith.constant 0 : index
    %135 = vector.load %arg12[%c2_92, %c0_93, %c0_94] : memref<3x64x64xf32, #tpu.memory_space<vmem>>, vector<1x64x64xf32>
    %136 = vector.shape_cast %135 : vector<1x64x64xf32> to vector<64x64xf32>
    %cst_95 = arith.constant dense<0.000000e+00> : vector<64x256xf32>
    %137 = tpu.matmul %136, %127, %cst_95 {dimension_numbers = #tpu.dot_dimension_numbers<[1], [0], [0], [1], [0, 0, 1, 1], [], []>} : vector<64x64xf32>, vector<64x256xf32>, vector<64x256xf32> -> vector<64x256xf32>
    %138 = arith.addf %134, %137 : vector<64x256xf32>
    %c0_96 = arith.constant 0 : index
    %c0_97 = arith.constant 0 : index
    %139 = vector.load %arg13[%c0_96, %c0_97] : memref<64x1xf32, #tpu.memory_space<vmem>>, vector<64x1xf32>
    %140 = vector.broadcast %139 : vector<64x1xf32> to vector<64x256xf32>
    %141 = arith.addf %138, %140 : vector<64x256xf32>
    %cst_98 = arith.constant 0.000000e+00 : f32
    %142 = vector.broadcast %cst_98 : f32 to vector<64x256xf32>
    %143 = arith.maximumf %141, %142 : vector<64x256xf32>
    %c1_i32_99 = arith.constant 1 : i32
    %144 = tpu.dynamic_rotate %143 by %c1_i32_99 dim 1 : vector<64x256xf32>, i32 -> vector<64x256xf32>
    %145 = vector.broadcast %7 : vector<1x256xf32> to vector<64x256xf32>
    %146 = arith.mulf %144, %145 : vector<64x256xf32>
    %c255_i32_100 = arith.constant 255 : i32
    %147 = tpu.dynamic_rotate %143 by %c255_i32_100 dim 1 : vector<64x256xf32>, i32 -> vector<64x256xf32>
    %148 = vector.broadcast %11 : vector<1x256xf32> to vector<64x256xf32>
    %149 = arith.mulf %147, %148 : vector<64x256xf32>
    %c1_101 = arith.constant 1 : index
    %c0_102 = arith.constant 0 : index
    %c0_103 = arith.constant 0 : index
    %150 = vector.load %arg14[%c1_101, %c0_102, %c0_103] : memref<3x64x64xf32, #tpu.memory_space<vmem>>, vector<1x64x64xf32>
    %151 = vector.shape_cast %150 : vector<1x64x64xf32> to vector<64x64xf32>
    %cst_104 = arith.constant dense<0.000000e+00> : vector<64x256xf32>
    %152 = tpu.matmul %151, %143, %cst_104 {dimension_numbers = #tpu.dot_dimension_numbers<[1], [0], [0], [1], [0, 0, 1, 1], [], []>} : vector<64x64xf32>, vector<64x256xf32>, vector<64x256xf32> -> vector<64x256xf32>
    %c0_105 = arith.constant 0 : index
    %c0_106 = arith.constant 0 : index
    %c0_107 = arith.constant 0 : index
    %153 = vector.load %arg14[%c0_105, %c0_106, %c0_107] : memref<3x64x64xf32, #tpu.memory_space<vmem>>, vector<1x64x64xf32>
    %154 = vector.shape_cast %153 : vector<1x64x64xf32> to vector<64x64xf32>
    %cst_108 = arith.constant dense<0.000000e+00> : vector<64x256xf32>
    %155 = tpu.matmul %154, %146, %cst_108 {dimension_numbers = #tpu.dot_dimension_numbers<[1], [0], [0], [1], [0, 0, 1, 1], [], []>} : vector<64x64xf32>, vector<64x256xf32>, vector<64x256xf32> -> vector<64x256xf32>
    %156 = arith.addf %152, %155 : vector<64x256xf32>
    %c2_109 = arith.constant 2 : index
    %c0_110 = arith.constant 0 : index
    %c0_111 = arith.constant 0 : index
    %157 = vector.load %arg14[%c2_109, %c0_110, %c0_111] : memref<3x64x64xf32, #tpu.memory_space<vmem>>, vector<1x64x64xf32>
    %158 = vector.shape_cast %157 : vector<1x64x64xf32> to vector<64x64xf32>
    %cst_112 = arith.constant dense<0.000000e+00> : vector<64x256xf32>
    %159 = tpu.matmul %158, %149, %cst_112 {dimension_numbers = #tpu.dot_dimension_numbers<[1], [0], [0], [1], [0, 0, 1, 1], [], []>} : vector<64x64xf32>, vector<64x256xf32>, vector<64x256xf32> -> vector<64x256xf32>
    %160 = arith.addf %156, %159 : vector<64x256xf32>
    %c0_113 = arith.constant 0 : index
    %c0_114 = arith.constant 0 : index
    %161 = vector.load %arg15[%c0_113, %c0_114] : memref<64x1xf32, #tpu.memory_space<vmem>>, vector<64x1xf32>
    %162 = vector.broadcast %161 : vector<64x1xf32> to vector<64x256xf32>
    %163 = arith.addf %160, %162 : vector<64x256xf32>
    %cst_115 = arith.constant 0.000000e+00 : f32
    %164 = vector.broadcast %cst_115 : f32 to vector<64x256xf32>
    %165 = arith.maximumf %163, %164 : vector<64x256xf32>
    %c0_116 = arith.constant 0 : index
    %c0_117 = arith.constant 0 : index
    %166 = vector.load %arg16[%c0_116, %c0_117] : memref<8x64xf32, #tpu.memory_space<vmem>>, vector<8x64xf32>
    %cst_118 = arith.constant dense<0.000000e+00> : vector<8x256xf32>
    %167 = tpu.matmul %166, %165, %cst_118 {dimension_numbers = #tpu.dot_dimension_numbers<[1], [0], [0], [1], [0, 0, 1, 1], [], []>} : vector<8x64xf32>, vector<64x256xf32>, vector<8x256xf32> -> vector<8x256xf32>
    %c0_119 = arith.constant 0 : index
    %c0_120 = arith.constant 0 : index
    %168 = vector.load %arg17[%c0_119, %c0_120] : memref<8x256xf32, #tpu.memory_space<vmem>>, vector<8x256xf32>
    tpu.vector_store %arg17[%c0_119, %c0_120], %167 {strides = array<i32>} : memref<8x256xf32, #tpu.memory_space<vmem>>, vector<8x256xf32>,
    return
  }
  func.func @transform_0(%arg0: i32) -> (i32, i32) {
    %c0_i32 = arith.constant 0 : i32
    %c0_i32_0 = arith.constant 0 : i32
    return %c0_i32, %arg0 : i32, i32
  }
  func.func @transform_1(%arg0: i32) -> (i32, i32, i32) {
    %c0_i32 = arith.constant 0 : i32
    %c0_i32_0 = arith.constant 0 : i32
    %c0_i32_1 = arith.constant 0 : i32
    %c0_i32_2 = arith.constant 0 : i32
    return %c0_i32, %c0_i32_0, %c0_i32_1 : i32, i32, i32
  }
  func.func @transform_2(%arg0: i32) -> (i32, i32) {
    %c0_i32 = arith.constant 0 : i32
    %c0_i32_0 = arith.constant 0 : i32
    %c0_i32_1 = arith.constant 0 : i32
    return %c0_i32, %c0_i32_0 : i32, i32
  }
  func.func @transform_3(%arg0: i32) -> (i32, i32, i32) {
    %c0_i32 = arith.constant 0 : i32
    %c0_i32_0 = arith.constant 0 : i32
    %c0_i32_1 = arith.constant 0 : i32
    %c0_i32_2 = arith.constant 0 : i32
    return %c0_i32, %c0_i32_0, %c0_i32_1 : i32, i32, i32
  }
  func.func @transform_4(%arg0: i32) -> (i32, i32) {
    %c0_i32 = arith.constant 0 : i32
    %c0_i32_0 = arith.constant 0 : i32
    %c0_i32_1 = arith.constant 0 : i32
    return %c0_i32, %c0_i32_0 : i32, i32
  }
  func.func @transform_5(%arg0: i32) -> (i32, i32, i32) {
    %c0_i32 = arith.constant 0 : i32
    %c0_i32_0 = arith.constant 0 : i32
    %c0_i32_1 = arith.constant 0 : i32
    %c0_i32_2 = arith.constant 0 : i32
    return %c0_i32, %c0_i32_0, %c0_i32_1 : i32, i32, i32
  }
  func.func @transform_6(%arg0: i32) -> (i32, i32) {
    %c0_i32 = arith.constant 0 : i32
    %c0_i32_0 = arith.constant 0 : i32
    %c0_i32_1 = arith.constant 0 : i32
    return %c0_i32, %c0_i32_0 : i32, i32
  }
  func.func @transform_7(%arg0: i32) -> (i32, i32, i32) {
    %c0_i32 = arith.constant 0 : i32
    %c0_i32_0 = arith.constant 0 : i32
    %c0_i32_1 = arith.constant 0 : i32
    %c0_i32_2 = arith.constant 0 : i32
    return %c0_i32, %c0_i32_0, %c0_i32_1 : i32, i32, i32
  }
  func.func @transform_8(%arg0: i32) -> (i32, i32) {
    %c0_i32 = arith.constant 0 : i32
    %c0_i32_0 = arith.constant 0 : i32
    %c0_i32_1 = arith.constant 0 : i32
    return %c0_i32, %c0_i32_0 : i32, i32
  }
  func.func @transform_9(%arg0: i32) -> (i32, i32, i32) {
    %c0_i32 = arith.constant 0 : i32
    %c0_i32_0 = arith.constant 0 : i32
    %c0_i32_1 = arith.constant 0 : i32
    %c0_i32_2 = arith.constant 0 : i32
    return %c0_i32, %c0_i32_0, %c0_i32_1 : i32, i32, i32
  }
  func.func @transform_10(%arg0: i32) -> (i32, i32) {
    %c0_i32 = arith.constant 0 : i32
    %c0_i32_0 = arith.constant 0 : i32
    %c0_i32_1 = arith.constant 0 : i32
    return %c0_i32, %c0_i32_0 : i32, i32
  }
  func.func @transform_11(%arg0: i32) -> (i32, i32, i32) {
    %c0_i32 = arith.constant 0 : i32
    %c0_i32_0 = arith.constant 0 : i32
    %c0_i32_1 = arith.constant 0 : i32
    %c0_i32_2 = arith.constant 0 : i32
    return %c0_i32, %c0_i32_0, %c0_i32_1 : i32, i32, i32
  }
  func.func @transform_12(%arg0: i32) -> (i32, i32) {
    %c0_i32 = arith.constant 0 : i32
    %c0_i32_0 = arith.constant 0 : i32
    %c0_i32_1 = arith.constant 0 : i32
    return %c0_i32, %c0_i32_0 : i32, i32
  }
  func.func @transform_13(%arg0: i32) -> (i32, i32, i32) {
    %c0_i32 = arith.constant 0 : i32
    %c0_i32_0 = arith.constant 0 : i32
    %c0_i32_1 = arith.constant 0 : i32
    %c0_i32_2 = arith.constant 0 : i32
    return %c0_i32, %c0_i32_0, %c0_i32_1 : i32, i32, i32
  }
  func.func @transform_14(%arg0: i32) -> (i32, i32) {
    %c0_i32 = arith.constant 0 : i32
    %c0_i32_0 = arith.constant 0 : i32
    %c0_i32_1 = arith.constant 0 : i32
    return %c0_i32, %c0_i32_0 : i32, i32
  }
  func.func @transform_15(%arg0: i32) -> (i32, i32) {
    %c0_i32 = arith.constant 0 : i32
    %c0_i32_0 = arith.constant 0 : i32
    %c0_i32_1 = arith.constant 0 : i32
    return %c0_i32, %c0_i32_0 : i32, i32
  }
  func.func @transform_16(%arg0: i32) -> (i32, i32) {
    %c0_i32 = arith.constant 0 : i32
    %c0_i32_0 = arith.constant 0 : i32
    return %c0_i32, %arg0 : i32, i32
  }
}

</mosaic_0001>

<bundles_post_ra>
// kernel: ultra_net_forward.1
= control target key start
LH: loop header
LB: loop body
LE: loop exit
PB: predicated region body
PF: predicated region fallthrough
CT: control target
= control target key end

     0   :  { %v4763_v1 = vmov 0.0   ;;  %s4764_s24 = smov 1   ;;  %s4765_s25 = smov 127   ;;  %v4766_v3 = vmov 0   ;;  %v55_v6 = vlaneseq  ;;  %vm95_vm5 = vcmask 64512   ;;  %s6772_s0 = inlined_call_operand.vmem [shape: f32[8,256], index: 0, kind: input, shape index: {}]   ;;  %s6773_s2 = inlined_call_operand.vmem [shape: f32[16,1], index: 2, kind: input, shape index: {}]   ;;  %s6774_s1 = inlined_call_operand.vmem [shape: f32[3,16,8], index: 1, kind: input, shape index: {}]   ;;  %s6775_s4 = inlined_call_operand.vmem [shape: f32[32,1], index: 4, kind: input, shape index: {}]   ;;  %s6776_s3 = inlined_call_operand.vmem [shape: f32[3,32,16], index: 3, kind: input, shape index: {}]   ;;  %s6777_s5 = inlined_call_operand.vmem [shape: f32[3,64,32], index: 5, kind: input, shape index: {}]   ;;  %s6778_s6 = inlined_call_operand.vmem [shape: f32[64,1], index: 6, kind: input, shape index: {}]   ;;  %s6779_s8 = inlined_call_operand.vmem [shape: f32[64,1], index: 8, kind: input, shape index: {}]   ;;  %s6780_s7 = inlined_call_operand.vmem [shape: f32[3,64,64], index: 7, kind: input, shape index: {}]   ;;  %s6781_s10 = inlined_call_operand.vmem [shape: f32[64,1], index: 10, kind: input, shape index: {}]   ;;  %s6782_s9 = inlined_call_operand.vmem [shape: f32[3,64,64], index: 9, kind: input, shape index: {}]   ;;  %s6783_s12 = inlined_call_operand.vmem [shape: f32[64,1], index: 12, kind: input, shape index: {}]   ;;  %s6784_s11 = inlined_call_operand.vmem [shape: f32[3,64,64], index: 11, kind: input, shape index: {}]   ;;  %s6785_s14 = inlined_call_operand.vmem [shape: f32[64,1], index: 14, kind: input, shape index: {}]   ;;  %s6786_s13 = inlined_call_operand.vmem [shape: f32[3,64,64], index: 13, kind: input, shape index: {}]   ;;  %s6787_s15 = inlined_call_operand.vmem [shape: f32[8,64], index: 15, kind: input, shape index: {}]   ;;  %s6788_s16 = inlined_call_operand.vmem [shape: f32[8,256], index: 16, kind: output, shape index: {}]  }
   0x1   :  { %6790 = sst [smem:[#allocation2_spill]] %s6772_s0  ;;  %166 = vmatprep.mubr.f32.mxu0 %v4763_v1  ;;  %490 = vmatprep.mubr.f32.mxu1 %v4763_v1  ;;  %v352_v4 = vld [vmem:[%s6773_s2] sm:$0xff]  ;;  %v353_v5 = vld [vmem:[%s6773_s2 + $0x8] sm:$0xff]  ;;  %v4098_v28 = vld [vmem:[%s6774_s1 + $0x10] sm:$0xff]  ;;  %vm413_vm7 = vcmask 130048   ;;  %vm851_vm8 = vcmask 261120  }
   0x2   :  { %s6791_s23 = sld [smem:[#allocation2_spill]]  ;;  %4761 = vset.pattern.permute.xlu0 %v4766_v3  ;;  %4762 = vset.pattern.permute.xlu1 %v4766_v3  ;;  %v4870_v7 = vand.u32 127, %v55_v6  ;;  %v93_v22 = vld [vmem:[%s6774_s1] sm:$0xff]  ;;  %v94_v24 = vld [vmem:[%s6774_s1 + $0x8] sm:$0xff]  ;;  %v4099_v29 = vld [vmem:[%s6774_s1 + $0x18] sm:$0xff]  ;;  %vm1513_vm9 = vcmask 523264  }
   0x3   :  { %v4104_v30 = vld [vmem:[%s6774_s1 + $0x20] sm:$0xff]  ;;  %v4105_v31 = vld [vmem:[%s6774_s1 + $0x28] sm:$0xff]  ;;  %v732_v50 = vld [vmem:[%s6775_s4 + $0x10] sm:$0xff] }
   0x4   :  { %v57_v8 = vadd.s32 128, %v4870_v7  ;;  %vm60_vm1 = vcmp.ne.s32.totalorder %v4870_v7, 0  ;;  %vm76_vm2 = vcmp.lt.s32.totalorder %v4870_v7, 1  ;;  %vm85_vm3 = vcmp.lt.s32.totalorder %v4870_v7, 127  ;;  %v730_v48 = vld [vmem:[%s6775_s4] sm:$0xff]  ;;  %v731_v49 = vld [vmem:[%s6775_s4 + $0x8] sm:$0xff] }
   0x5   :  { %v4880_v13 = vsel %vm60_vm1, 1.0, %v4763_v1  ;;  %vm66_vm6 = vcmp.ne.s32.totalorder %v4870_v7, 127  ;;  %v733_v51 = vld [vmem:[%s6775_s4 + $0x18] sm:$0xff] }
   0x6   :  { %v59_v9 = vand.u32 127, %v57_v8  ;;  %v4904_v25 = vsel %vm66_vm6, 1.0, %v4763_v1  ;;  %v409_v8 = vld [vmem:[%s6776_s3] sm:$0xff] }
   0x8   :  { %v53_v0 = vld [vmem:[%s6791_s23] sm:$0xff]  ;;  %v54_v2 = vld [vmem:[%s6791_s23 + $0x8] sm:$0xff]  ;;  %vm61_vm0 = vcmp.ne.s32.totalorder %v59_v9, 0  ;;  %vm67_vm4 = vcmp.ne.s32.totalorder %v59_v9, 127 }
   0x9   :  { %72 = vrot.lane.b32.xlu0 %v53_v0, %s4764_s24  ;;  %81 = vrot.lane.b32.xlu1 %v53_v0, %s4765_s25  ;;  %v4877_v12 = vsel %vm61_vm0, 1.0, %v4763_v1  ;;  %v4889_v19 = vsel %vm67_vm4, 1.0, %v4763_v1 }
   0xd   :  { %74 = vrot.lane.b32.xlu0 %v54_v2, %s4764_s24  ;;  %83 = vrot.lane.b32.xlu1 %v54_v2, %s4765_s25 }
  0x11   :  { %356 = vperm.xlu0 %4761, %v352_v4   ;;  %361 = vperm.xlu1 %4762, %v353_v5  }
  0x7b   :  { %v73_v10 = vpop.permute.xlu0 %72  ;;  %v82_v11 = vpop.permute.xlu1 %81 }
  0x7f   :  { %v75_v14 = vpop.permute.xlu0 %74  ;;  %v84_v15 = vpop.permute.xlu1 %83 }
  0x80   :  { %v77_v16 = vsel %vm76_vm2, %v73_v10, %v75_v14  ;;  %v78_v17 = vsel %vm76_vm2, %v75_v14, %v73_v10  ;;  %v87_v18 = vsel %vm85_vm3, %v84_v15, %v82_v11  ;;  %v86_v26 = vsel %vm85_vm3, %v82_v11, %v84_v15  ;;  %v410_v15 = vld [vmem:[%s6776_s3 + $0x8] sm:$0xff] }
  0x81   :  { %v80_v20 = vmul.f32 %v4877_v12, %v77_v16  ;;  %v79_v21 = vmul.f32 %v4880_v13, %v78_v17  ;;  %v89_v23 = vmul.f32 %v4889_v19, %v87_v18  ;;  %v88_v27 = vmul.f32 %v4904_v25, %v86_v26  ;;  %v411_v17 = vld [vmem:[%s6776_s3 + $0x10] sm:$0xff] }
  0x83   :  { %102 = vmatprep.subr.mxu0 %v80_v20  ;;  %v412_v20 = vld [vmem:[%s6776_s3 + $0x18] sm:$0xff] }
  0x84   :  { %103 = vmatpush1.msra.mxu0 %v79_v21 }
  0x85   :  { %4100 = vmatmul.mubr.msk.f32.vlgmr.msra.gmra.mrb[0].mxu0 %vm95_vm5, %v93_v22  ;;  %185 = vmatprep.subr.mxu0 %v54_v2 }
  0x86   :  { %172 = vmatprep.mubr.f32.mxu0 %v4763_v1  ;;  %186 = vmatpush1.msra.mxu0 %v53_v0 }
  0x87   :  { %271 = vmatprep.subr.mxu0 %v89_v23 }
  0x89   :  { %4101 = vmatmul.mubr.msk.f32.gmra.mrb[2].mxu0 %vm95_vm5, %v94_v24  ;;  %v4108_v24 = vld [vmem:[%s6776_s3 + $0x20] sm:$0xff] }
  0x8a   :  { %249 = vmatprep.mubr.f32.mxu0 %v4763_v1 }
  0x8d   :  { %4102 = vmatmul.mubr.msk.f32.vlgmr.msra.gmra.mrb[0].mxu0 %vm95_vm5, %v4098_v28  ;;  %v4110_v28 = vld [vmem:[%s6776_s3 + $0x30] sm:$0xff] }
  0x8e   :  { %272 = vmatpush1.msra.mxu0 %v88_v27  ;;  %255 = vmatprep.mubr.f32.mxu0 %v4763_v1  ;;  %v4109_v27 = vld [vmem:[%s6776_s3 + $0x28] sm:$0xff] }
  0x90   :  { %v357_v32 = vpop.permute.xlu0 %356  ;;  %v362_v36 = vpop.permute.xlu1 %361 }
  0x91   :  { %4103 = vmatmul.mubr.msk.f32.gmra.mrb[2].mxu0 %vm95_vm5, %v4099_v29  ;;  %v4111_v29 = vld [vmem:[%s6776_s3 + $0x38] sm:$0xff] }
  0x92   :  { %335 = vmatprep.mubr.f32.mxu0 %v4763_v1 }
  0x95   :  { %4106 = vmatmul.mubr.msk.f32.vlgmr.msra.gmra.mrb[0].mxu0 %vm95_vm5, %v4104_v30  ;;  %v4120_v30 = vld [vmem:[%s6776_s3 + $0x40] sm:$0xff] }
  0x96   :  { %341 = vmatprep.mubr.f32.mxu0 %v4763_v1 }
  0x99   :  { %4107 = vmatmul.mubr.msk.f32.gmra.mrb[2].mxu0 %vm95_vm5, %v4105_v31  ;;  %v4121_v31 = vld [vmem:[%s6776_s3 + $0x48] sm:$0xff] }
  0x9a   :  { %1077 = vmatprep.mubr.f32.mxu0 %v4763_v1 }
 0x168   :  { %v337_v33 = vpop.f32.mrb[0].mxu0 }
 0x169   :  { %v364_v34 = vadd.f32 %v357_v32, %v337_v33  ;;  %v339_v35 = vpop.f32.mrb[1].mxu0  ;;  %v4123_v33 = vld [vmem:[%s6776_s3 + $0x58] sm:$0xff] }
 0x16a   :  { %v365_v37 = vadd.f32 %v357_v32, %v339_v35  ;;  %v4122_v32 = vld [vmem:[%s6776_s3 + $0x50] sm:$0xff] }
 0x16b   :  { %v368_v38 = vmax.f32 %v364_v34, 0.0 }
 0x16c   :  { %v343_v39 = vpop.f32.mrb[2].mxu0  ;;  %v369_v43 = vmax.f32 %v365_v37, 0.0 }
 0x16d   :  { %v366_v40 = vadd.f32 %v362_v36, %v343_v39  ;;  %v345_v41 = vpop.f32.mrb[3].mxu0  ;;  %372 = vrot.lane.b32.xlu1 %v368_v38, %s4764_s24 }
 0x16e   :  { %v367_v42 = vadd.f32 %v362_v36, %v345_v41 }
 0x16f   :  { %v370_v44 = vmax.f32 %v366_v40, 0.0 }
 0x170   :  { %v371_v45 = vmax.f32 %v367_v42, 0.0 }
 0x171   :  { %374 = vrot.lane.b32.xlu0 %v370_v44, %s4764_s24  ;;  %376 = vrot.lane.b32.xlu1 %v369_v43, %s4764_s24  ;;  %v4335_v46 = vpack.c.bf16 %v370_v44, %v368_v38 }
 0x172   :  { %v4333_v47 = vpack.c.bf16 %v371_v45, %v369_v43 }
 0x175   :  { %378 = vrot.lane.b32.xlu0 %v371_v45, %s4764_s24  ;;  %388 = vrot.lane.b32.xlu1 %v368_v38, %s4765_s25 }
 0x179   :  { %390 = vrot.lane.b32.xlu0 %v370_v44, %s4765_s25  ;;  %392 = vrot.lane.b32.xlu1 %v369_v43, %s4765_s25 }
 0x17d   :  { %394 = vrot.lane.b32.xlu0 %v371_v45, %s4765_s25  ;;  %736 = vperm.xlu1 %4762, %v730_v48  }
 0x181   :  { %741 = vperm.xlu0 %4761, %v731_v49   ;;  %746 = vperm.xlu1 %4762, %v732_v50  }
 0x185   :  { %751 = vperm.xlu0 %4761, %v733_v51  }
 0x1df   :  { %v373_v52 = vpop.permute.xlu1 %372 }
 0x1e3   :  { %v377_v53 = vpop.permute.xlu1 %376  ;;  %v375_v54 = vpop.permute.xlu0 %374 }
 0x1e4   :  { %v382_v55 = vsel %vm76_vm2, %v377_v53, %v373_v52  ;;  %v380_v56 = vsel %vm76_vm2, %v373_v52, %v377_v53 }
 0x1e5   :  { %v385_v61 = vmul.f32 %v4877_v12, %v380_v56  ;;  %v384_v63 = vmul.f32 %v4880_v13, %v382_v55 }
 0x1e7   :  { %v389_v57 = vpop.permute.xlu1 %388  ;;  %v379_v58 = vpop.permute.xlu0 %378 }
 0x1e8   :  { %v383_v59 = vsel %vm76_vm2, %v379_v58, %v375_v54  ;;  %v381_v60 = vsel %vm76_vm2, %v375_v54, %v379_v58 }
 0x1e9   :  { %v387_v62 = vmul.f32 %v4877_v12, %v381_v60  ;;  %v386_v0 = vmul.f32 %v4880_v13, %v383_v59 }
 0x1eb   :  { %v393_v2 = vpop.permute.xlu1 %392  ;;  %v391_v3 = vpop.permute.xlu0 %390  ;;  %v4329_v4 = vpack.c.bf16 %v387_v62, %v385_v61  ;;  %v4331_v5 = vpack.c.bf16 %v386_v0, %v384_v63 }
 0x1ec   :  { %v398_v6 = vsel %vm85_vm3, %v393_v2, %v389_v57  ;;  %v396_v21 = vsel %vm85_vm3, %v389_v57, %v393_v2 }
 0x1ed   :  { %4330 = vmatprep.subr.bf16.mxu1 %v4329_v4  ;;  %v401_v11 = vmul.f32 %v4889_v19, %v398_v6  ;;  %v400_v23 = vmul.f32 %v4904_v25, %v396_v21  ;;  %v4129_v4 = vld [vmem:[%s6777_s5 + $0x48] sm:$0xff]  ;;  %v1288_v6 = vld [vmem:[%s6778_s6] sm:$0xff]  ;;  %v1295_v21 = vld [vmem:[%s6778_s6 + $0x38] sm:$0xff] }
 0x1ee   :  { %4332 = vmatpush1.bf16.msra.mxu1 %v4331_v5  ;;  %v4130_v5 = vld [vmem:[%s6777_s5 + $0x50] sm:$0xff] }
 0x1ef   :  { %4334 = vmatprep.subr.bf16.mxu1 %v4333_v47  ;;  %v395_v9 = vpop.permute.xlu0 %394 }
 0x1f0   :  { %v399_v10 = vsel %vm85_vm3, %v395_v9, %v391_v3  ;;  %v397_v18 = vsel %vm85_vm3, %v391_v3, %v395_v9  ;;  %v4128_v3 = vld [vmem:[%s6777_s5 + $0x40] sm:$0xff]  ;;  %v1290_v9 = vld [vmem:[%s6778_s6 + $0x10] sm:$0xff] }
 0x1f1   :  { %v403_v14 = vmul.f32 %v4889_v19, %v399_v10  ;;  %4112 = vmatmul.mubr.msk.f32.vlgmr.msra.gmra.mrb[0].mxu1 %vm413_vm7, %v409_v8  ;;  %v402_v22 = vmul.f32 %v4904_v25, %v397_v18  ;;  %v4131_v8 = vld [vmem:[%s6777_s5 + $0x58] sm:$0xff]  ;;  %v1289_v10 = vld [vmem:[%s6778_s6 + $0x8] sm:$0xff] }
 0x1f2   :  { %4336 = vmatpush1.bf16.msra.mxu1 %v4335_v46  ;;  %496 = vmatprep.mubr.f32.mxu1 %v4763_v1  ;;  %v1293_v18 = vld [vmem:[%s6778_s6 + $0x28] sm:$0xff] }
 0x1f3   :  { %v4337_v16 = vpack.c.bf16 %v403_v14, %v401_v11  ;;  %v4339_v26 = vpack.c.bf16 %v402_v22, %v400_v23  ;;  %v4132_v11 = vld [vmem:[%s6777_s5 + $0x60] sm:$0xff]  ;;  %v4135_v22 = vld [vmem:[%s6777_s5 + $0x78] sm:$0xff] }
 0x1f4   :  { %v1292_v14 = vld [vmem:[%s6778_s6 + $0x20] sm:$0xff] }
 0x1f5   :  { %4113 = vmatmul.mubr.msk.f32.gmra.mrb[2].mxu1 %vm413_vm7, %v410_v15  ;;  %4338 = vmatprep.subr.bf16.mxu1 %v4337_v16  ;;  %v1291_v15 = vld [vmem:[%s6778_s6 + $0x18] sm:$0xff]  ;;  %v4133_v16 = vld [vmem:[%s6777_s5 + $0x68] sm:$0xff] }
 0x1f6   :  { %502 = vmatprep.mubr.f32.mxu1 %v4763_v1 }
 0x1f9   :  { %4114 = vmatmul.mubr.msk.f32.gmra.mrb[4].mxu1 %vm413_vm7, %v411_v17  ;;  %v1294_v17 = vld [vmem:[%s6778_s6 + $0x30] sm:$0xff] }
 0x1fa   :  { %508 = vmatprep.mubr.f32.mxu1 %v4763_v1 }
 0x1fc   :  { %v737_v34 = vpop.permute.xlu1 %736 }
 0x1fd   :  { %4115 = vmatmul.mubr.msk.f32.gmra.mrb[6].mxu1 %vm413_vm7, %v412_v20  ;;  %v4134_v20 = vld [vmem:[%s6777_s5 + $0x70] sm:$0xff] }
 0x1fe   :  { %591 = vmatprep.mubr.f32.mxu1 %v4763_v1 }
 0x200   :  { %v742_v39 = vpop.permute.xlu0 %741  ;;  %v747_v51 = vpop.permute.xlu1 %746 }
 0x201   :  { %4116 = vmatmul.mubr.msk.f32.vlgmr.msra.gmra.mrb[0].mxu1 %vm413_vm7, %v4108_v24 }
 0x202   :  { %4340 = vmatpush1.bf16.msra.mxu1 %v4339_v26  ;;  %597 = vmatprep.mubr.f32.mxu1 %v4763_v1 }
 0x204   :  { %v752_v54 = vpop.permute.xlu0 %751 }
 0x205   :  { %4117 = vmatmul.mubr.msk.f32.gmra.mrb[2].mxu1 %vm413_vm7, %v4109_v27 }
 0x206   :  { %603 = vmatprep.mubr.f32.mxu1 %v4763_v1 }
 0x209   :  { %4118 = vmatmul.mubr.msk.f32.gmra.mrb[4].mxu1 %vm413_vm7, %v4110_v28 }
 0x20a   :  { %609 = vmatprep.mubr.f32.mxu1 %v4763_v1 }
 0x20d   :  { %4119 = vmatmul.mubr.msk.f32.gmra.mrb[6].mxu1 %vm413_vm7, %v4111_v29 }
 0x20e   :  { %697 = vmatprep.mubr.f32.mxu1 %v4763_v1 }
 0x211   :  { %4124 = vmatmul.mubr.msk.f32.vlgmr.msra.gmra.mrb[0].mxu1 %vm413_vm7, %v4120_v30 }
 0x212   :  { %703 = vmatprep.mubr.f32.mxu1 %v4763_v1 }
 0x215   :  { %4125 = vmatmul.mubr.msk.f32.gmra.mrb[2].mxu1 %vm413_vm7, %v4121_v31 }
 0x216   :  { %709 = vmatprep.mubr.f32.mxu1 %v4763_v1 }
 0x219   :  { %4126 = vmatmul.mubr.msk.f32.gmra.mrb[4].mxu1 %vm413_vm7, %v4122_v32 }
 0x21a   :  { %715 = vmatprep.mubr.f32.mxu1 %v4763_v1 }
 0x21d   :  { %4127 = vmatmul.mubr.msk.f32.gmra.mrb[6].mxu1 %vm413_vm7, %v4123_v33 }
 0x21e   :  { %940 = vmatprep.mubr.f32.mxu1 %v4763_v1 }
 0x2e4   :  { %v699_v35 = vpop.f32.mrb[0].mxu1 }
 0x2e5   :  { %v754_v36 = vadd.f32 %v737_v34, %v699_v35  ;;  %v701_v37 = vpop.f32.mrb[1].mxu1 }
 0x2e6   :  { %v755_v40 = vadd.f32 %v737_v34, %v701_v37 }
 0x2e7   :  { %v762_v38 = vmax.f32 %v754_v36, 0.0 }
 0x2e8   :  { %v705_v41 = vpop.f32.mrb[2].mxu1  ;;  %v763_v46 = vmax.f32 %v755_v40, 0.0 }
 0x2e9   :  { %v756_v42 = vadd.f32 %v742_v39, %v705_v41  ;;  %770 = vrot.lane.b32.xlu1 %v762_v38, %s4764_s24  ;;  %v707_v43 = vpop.f32.mrb[3].mxu1 }
 0x2ea   :  { %v757_v44 = vadd.f32 %v742_v39, %v707_v43 }
 0x2eb   :  { %v764_v45 = vmax.f32 %v756_v42, 0.0 }
 0x2ec   :  { %v765_v47 = vmax.f32 %v757_v44, 0.0  ;;  %v711_v48 = vpop.f32.mrb[4].mxu1 }
 0x2ed   :  { %v4351_v49 = vpack.c.bf16 %v764_v45, %v762_v38  ;;  %802 = vrot.lane.b32.xlu1 %v762_v38, %s4765_s25  ;;  %v713_v50 = vpop.f32.mrb[5].mxu1  ;;  %772 = vrot.lane.b32.xlu0 %v764_v45, %s4764_s24  ;;  %v758_v53 = vadd.f32 %v747_v51, %v711_v48 }
 0x2ee   :  { %v4349_v52 = vpack.c.bf16 %v765_v47, %v763_v46  ;;  %v759_v55 = vadd.f32 %v747_v51, %v713_v50 }
 0x2ef   :  { %v766_v60 = vmax.f32 %v758_v53, 0.0 }
 0x2f0   :  { %v717_v56 = vpop.f32.mrb[6].mxu1  ;;  %4350 = vmatprep.subr.bf16.mxu0 %v4349_v52  ;;  %v767_v62 = vmax.f32 %v759_v55, 0.0 }
 0x2f1   :  { %v760_v57 = vadd.f32 %v752_v54, %v717_v56  ;;  %778 = vrot.lane.b32.xlu1 %v763_v46, %s4764_s24  ;;  %v719_v58 = vpop.f32.mrb[7].mxu1  ;;  %804 = vrot.lane.b32.xlu0 %v764_v45, %s4765_s25 }
 0x2f2   :  { %v761_v59 = vadd.f32 %v752_v54, %v719_v58  ;;  %4352 = vmatpush1.bf16.msra.mxu0 %v4351_v49 }
 0x2f3   :  { %v768_v61 = vmax.f32 %v760_v57, 0.0 }
 0x2f4   :  { %v769_v63 = vmax.f32 %v761_v59, 0.0 }
 0x2f5   :  { %v4355_v0 = vpack.c.bf16 %v768_v61, %v766_v60  ;;  %810 = vrot.lane.b32.xlu1 %v763_v46, %s4765_s25  ;;  %780 = vrot.lane.b32.xlu0 %v765_v47, %s4764_s24 }
 0x2f6   :  { %v4353_v2 = vpack.c.bf16 %v769_v63, %v767_v62 }
 0x2f8   :  { %4354 = vmatprep.subr.bf16.mxu0 %v4353_v2 }
 0x2f9   :  { %774 = vrot.lane.b32.xlu1 %v766_v60, %s4764_s24  ;;  %812 = vrot.lane.b32.xlu0 %v765_v47, %s4765_s25 }
 0x2fa   :  { %4356 = vmatpush1.bf16.msra.mxu0 %v4355_v0 }
 0x2fd   :  { %806 = vrot.lane.b32.xlu1 %v766_v60, %s4765_s25  ;;  %776 = vrot.lane.b32.xlu0 %v768_v61, %s4764_s24 }
 0x2fe   :  { %4144 = vmatmul.mubr.msk.f32.vlgmr.msra.gmra.mrb[4].mxu0 %vm851_vm8, %v4128_v3 }
 0x2ff   :  { %1083 = vmatprep.mubr.f32.mxu0 %v4763_v1 }
 0x301   :  { %782 = vrot.lane.b32.xlu1 %v767_v62, %s4764_s24  ;;  %808 = vrot.lane.b32.xlu0 %v768_v61, %s4765_s25 }
 0x302   :  { %4145 = vmatmul.mubr.msk.f32.gmra.mrb[6].mxu0 %vm851_vm8, %v4129_v4 }
 0x303   :  { %1089 = vmatprep.mubr.f32.mxu0 %v4763_v1 }
 0x305   :  { %814 = vrot.lane.b32.xlu1 %v767_v62, %s4765_s25  ;;  %784 = vrot.lane.b32.xlu0 %v769_v63, %s4764_s24 }
 0x306   :  { %4146 = vmatmul.mubr.msk.f32.gmra.mrb[8].mxu0 %vm851_vm8, %v4130_v5 }
 0x307   :  { %1095 = vmatprep.mubr.f32.mxu0 %v4763_v1 }
 0x309   :  { %1298 = vperm.xlu1 %4762, %v1288_v6   ;;  %816 = vrot.lane.b32.xlu0 %v769_v63, %s4765_s25 }
 0x30a   :  { %4147 = vmatmul.mubr.msk.f32.gmra.mrb[10].mxu0 %vm851_vm8, %v4131_v8 }
 0x30b   :  { %1101 = vmatprep.mubr.f32.mxu0 %v4763_v1 }
 0x30d   :  { %1308 = vperm.xlu1 %4762, %v1290_v9   ;;  %1303 = vperm.xlu0 %4761, %v1289_v10  }
 0x30e   :  { %4148 = vmatmul.mubr.msk.f32.gmra.mrb[12].mxu0 %vm851_vm8, %v4132_v11 }
 0x30f   :  { %1107 = vmatprep.mubr.f32.mxu0 %v4763_v1 }
 0x311   :  { %1318 = vperm.xlu1 %4762, %v1292_v14   ;;  %1313 = vperm.xlu0 %4761, %v1291_v15  }
 0x312   :  { %4149 = vmatmul.mubr.msk.f32.gmra.mrb[14].mxu0 %vm851_vm8, %v4133_v16 }
 0x313   :  { %1113 = vmatprep.mubr.f32.mxu0 %v4763_v1 }
 0x315   :  { %1328 = vperm.xlu1 %4762, %v1294_v17   ;;  %1323 = vperm.xlu0 %4761, %v1293_v18   ;;  %v843_v18 = vld [vmem:[%s6777_s5] sm:$0xff] }
 0x316   :  { %4150 = vmatmul.mubr.msk.f32.gmra.mrb[16].mxu0 %vm851_vm8, %v4134_v20 }
 0x317   :  { %1119 = vmatprep.mubr.f32.mxu0 %v4763_v1 }
 0x319   :  { %1333 = vperm.xlu0 %4761, %v1295_v21  }
 0x31a   :  { %4151 = vmatmul.mubr.msk.f32.gmra.mrb[18].mxu0 %vm851_vm8, %v4135_v22  ;;  %v4152_v22 = vld [vmem:[%s6777_s5 + $0x80] sm:$0xff] }
 0x31b   :  { %1223 = vmatprep.mubr.f32.mxu0 %v4763_v1 }
 0x35b   :  { %v771_v23 = vpop.permute.xlu1 %770 }
 0x35f   :  { %v803_v24 = vpop.permute.xlu1 %802  ;;  %v773_v26 = vpop.permute.xlu0 %772 }
 0x363   :  { %v779_v27 = vpop.permute.xlu1 %778  ;;  %v805_v28 = vpop.permute.xlu0 %804 }
 0x364   :  { %v786_v29 = vsel %vm76_vm2, %v771_v23, %v779_v27  ;;  %v790_v30 = vsel %vm76_vm2, %v779_v27, %v771_v23  ;;  %v844_v23 = vld [vmem:[%s6777_s5 + $0x8] sm:$0xff]  ;;  %v4154_v27 = vld [vmem:[%s6777_s5 + $0x90] sm:$0xff] }
 0x365   :  { %v794_v35 = vmul.f32 %v4880_v13, %v790_v30  ;;  %v795_v36 = vmul.f32 %v4877_v12, %v786_v29  ;;  %v4155_v29 = vld [vmem:[%s6777_s5 + $0x98] sm:$0xff]  ;;  %v847_v30 = vld [vmem:[%s6777_s5 + $0x20] sm:$0xff] }
 0x367   :  { %v811_v31 = vpop.permute.xlu1 %810  ;;  %v781_v32 = vpop.permute.xlu0 %780 }
 0x368   :  { %v787_v33 = vsel %vm76_vm2, %v773_v26, %v781_v32  ;;  %v791_v34 = vsel %vm76_vm2, %v781_v32, %v773_v26  ;;  %v818_v39 = vsel %vm85_vm3, %v803_v24, %v811_v31  ;;  %v822_v40 = vsel %vm85_vm3, %v811_v31, %v803_v24  ;;  %v4153_v24 = vld [vmem:[%s6777_s5 + $0x88] sm:$0xff]  ;;  %v845_v26 = vld [vmem:[%s6777_s5 + $0x10] sm:$0xff]  ;;  %v4156_v31 = vld [vmem:[%s6777_s5 + $0xa0] sm:$0xff] }
 0x369   :  { %v796_v37 = vmul.f32 %v4880_v13, %v791_v34  ;;  %v797_v38 = vmul.f32 %v4877_v12, %v787_v33  ;;  %v826_v47 = vmul.f32 %v4904_v25, %v818_v39  ;;  %v827_v48 = vmul.f32 %v4889_v19, %v822_v40  ;;  %v848_v32 = vld [vmem:[%s6777_s5 + $0x28] sm:$0xff]  ;;  %v849_v34 = vld [vmem:[%s6777_s5 + $0x30] sm:$0xff] }
 0x36a   :  { %v4157_v33 = vld [vmem:[%s6777_s5 + $0xa8] sm:$0xff] }
 0x36b   :  { %v4343_v41 = vpack.c.bf16 %v796_v37, %v794_v35  ;;  %v775_v42 = vpop.permute.xlu1 %774  ;;  %v813_v43 = vpop.permute.xlu0 %812  ;;  %v4341_v44 = vpack.c.bf16 %v797_v38, %v795_v36  ;;  %v4158_v35 = vld [vmem:[%s6777_s5 + $0xb0] sm:$0xff]  ;;  %v850_v36 = vld [vmem:[%s6777_s5 + $0x38] sm:$0xff] }
 0x36c   :  { %v819_v45 = vsel %vm85_vm3, %v805_v28, %v813_v43  ;;  %v823_v46 = vsel %vm85_vm3, %v813_v43, %v805_v28  ;;  %v846_v28 = vld [vmem:[%s6777_s5 + $0x18] sm:$0xff] }
 0x36d   :  { %v828_v49 = vmul.f32 %v4904_v25, %v819_v45  ;;  %v829_v50 = vmul.f32 %v4889_v19, %v823_v46  ;;  %4342 = vmatprep.subr.bf16.mxu1 %v4341_v44  ;;  %v4159_v37 = vld [vmem:[%s6777_s5 + $0xb8] sm:$0xff] }
 0x36e   :  { %4344 = vmatpush1.bf16.msra.mxu1 %v4343_v41 }
 0x36f   :  { %v4359_v51 = vpack.c.bf16 %v828_v49, %v826_v47  ;;  %v807_v52 = vpop.permute.xlu1 %806  ;;  %v777_v53 = vpop.permute.xlu0 %776  ;;  %v4357_v54 = vpack.c.bf16 %v829_v50, %v827_v48 }
 0x371   :  { %4358 = vmatprep.subr.bf16.mxu0 %v4357_v54 }
 0x372   :  { %4360 = vmatpush1.bf16.msra.mxu0 %v4359_v51 }
 0x373   :  { %v783_v55 = vpop.permute.xlu1 %782  ;;  %v809_v56 = vpop.permute.xlu0 %808 }
 0x374   :  { %v788_v57 = vsel %vm76_vm2, %v775_v42, %v783_v55  ;;  %v792_v58 = vsel %vm76_vm2, %v783_v55, %v775_v42 }
 0x375   :  { %v798_v63 = vmul.f32 %v4880_v13, %v792_v58  ;;  %v799_v0 = vmul.f32 %v4877_v12, %v788_v57 }
 0x377   :  { %v815_v59 = vpop.permute.xlu1 %814  ;;  %v785_v60 = vpop.permute.xlu0 %784 }
 0x378   :  { %v789_v61 = vsel %vm76_vm2, %v777_v53, %v785_v60  ;;  %v793_v62 = vsel %vm76_vm2, %v785_v60, %v777_v53  ;;  %v820_v4 = vsel %vm85_vm3, %v807_v52, %v815_v59  ;;  %v824_v5 = vsel %vm85_vm3, %v815_v59, %v807_v52 }
 0x379   :  { %v800_v2 = vmul.f32 %v4880_v13, %v793_v62  ;;  %v801_v3 = vmul.f32 %v4877_v12, %v789_v61  ;;  %v830_v14 = vmul.f32 %v4904_v25, %v820_v4  ;;  %v831_v15 = vmul.f32 %v4889_v19, %v824_v5 }
 0x37b   :  { %v4347_v6 = vpack.c.bf16 %v800_v2, %v798_v63  ;;  %v817_v8 = vpop.permute.xlu0 %816  ;;  %v4345_v9 = vpack.c.bf16 %v801_v3, %v799_v0 }
 0x37c   :  { %v821_v10 = vsel %vm85_vm3, %v809_v56, %v817_v8  ;;  %v825_v11 = vsel %vm85_vm3, %v817_v8, %v809_v56 }
 0x37d   :  { %v832_v16 = vmul.f32 %v4904_v25, %v821_v10  ;;  %v833_v17 = vmul.f32 %v4889_v19, %v825_v11  ;;  %4346 = vmatprep.subr.bf16.mxu1 %v4345_v9 }
 0x37e   :  { %4348 = vmatpush1.bf16.msra.mxu1 %v4347_v6 }
 0x37f   :  { %v4363_v20 = vpack.c.bf16 %v832_v16, %v830_v14  ;;  %v4361_v21 = vpack.c.bf16 %v833_v17, %v831_v15 }
 0x381   :  { %4362 = vmatprep.subr.bf16.mxu0 %v4361_v21  ;;  %4136 = vmatmul.mubr.msk.f32.vlgmr.msra.gmra.mrb[8].mxu1 %vm851_vm8, %v843_v18 }
 0x382   :  { %4364 = vmatpush1.bf16.msra.mxu0 %v4363_v20  ;;  %946 = vmatprep.mubr.f32.mxu1 %v4763_v1 }
 0x385   :  { %4160 = vmatmul.mubr.msk.f32.vlgmr.msra.gmra.mrb[4].mxu0 %vm851_vm8, %v4152_v22  ;;  %4137 = vmatmul.mubr.msk.f32.gmra.mrb[10].mxu1 %vm851_vm8, %v844_v23 }
 0x386   :  { %1229 = vmatprep.mubr.f32.mxu0 %v4763_v1  ;;  %952 = vmatprep.mubr.f32.mxu1 %v4763_v1 }
 0x388   :  { %v1299_v45 = vpop.permute.xlu1 %1298 }
 0x389   :  { %4161 = vmatmul.mubr.msk.f32.gmra.mrb[6].mxu0 %vm851_vm8, %v4153_v24  ;;  %4138 = vmatmul.mubr.msk.f32.gmra.mrb[12].mxu1 %vm851_vm8, %v845_v26 }
 0x38a   :  { %1235 = vmatprep.mubr.f32.mxu0 %v4763_v1  ;;  %958 = vmatprep.mubr.f32.mxu1 %v4763_v1 }
 0x38c   :  { %v1304_v55 = vpop.permute.xlu0 %1303  ;;  %v1309_v3 = vpop.permute.xlu1 %1308 }
 0x38d   :  { %4162 = vmatmul.mubr.msk.f32.gmra.mrb[8].mxu0 %vm851_vm8, %v4154_v27  ;;  %4139 = vmatmul.mubr.msk.f32.gmra.mrb[14].mxu1 %vm851_vm8, %v846_v28 }
 0x38e   :  { %1241 = vmatprep.mubr.f32.mxu0 %v4763_v1  ;;  %964 = vmatprep.mubr.f32.mxu1 %v4763_v1 }
 0x390   :  { %v1314_v20 = vpop.permute.xlu0 %1313 }
 0x391   :  { %4163 = vmatmul.mubr.msk.f32.gmra.mrb[10].mxu0 %vm851_vm8, %v4155_v29  ;;  %4140 = vmatmul.mubr.msk.f32.gmra.mrb[16].mxu1 %vm851_vm8, %v847_v30 }
 0x392   :  { %1247 = vmatprep.mubr.f32.mxu0 %v4763_v1  ;;  %970 = vmatprep.mubr.f32.mxu1 %v4763_v1 }
 0x395   :  { %4164 = vmatmul.mubr.msk.f32.gmra.mrb[12].mxu0 %vm851_vm8, %v4156_v31  ;;  %4141 = vmatmul.mubr.msk.f32.gmra.mrb[18].mxu1 %vm851_vm8, %v848_v32  ;;  %v1319_v32 = vpop.permute.xlu1 %1318 }
 0x396   :  { %1253 = vmatprep.mubr.f32.mxu0 %v4763_v1  ;;  %976 = vmatprep.mubr.f32.mxu1 %v4763_v1 }
 0x399   :  { %4165 = vmatmul.mubr.msk.f32.gmra.mrb[14].mxu0 %vm851_vm8, %v4157_v33  ;;  %4142 = vmatmul.mubr.msk.f32.gmra.mrb[20].mxu1 %vm851_vm8, %v849_v34 }
 0x39a   :  { %1259 = vmatprep.mubr.f32.mxu0 %v4763_v1  ;;  %982 = vmatprep.mubr.f32.mxu1 %v4763_v1 }
 0x39d   :  { %4166 = vmatmul.mubr.msk.f32.gmra.mrb[16].mxu0 %vm851_vm8, %v4158_v35  ;;  %4143 = vmatmul.mubr.msk.f32.gmra.mrb[22].mxu1 %vm851_vm8, %v850_v36 }
 0x39e   :  { %1265 = vmatprep.mubr.f32.mxu0 %v4763_v1  ;;  %1602 = vmatprep.mubr.f32.mxu1 %v4763_v1 }
 0x3a1   :  { %4167 = vmatmul.mubr.msk.f32.gmra.mrb[18].mxu0 %vm851_vm8, %v4159_v37 }
 0x3a2   :  { %2263 = vmatprep.mubr.f32.mxu0 %v4763_v1 }
 0x454   :  { %v942_v38 = vpop.f32.mrb[8].mxu1 }
 0x455   :  { %v944_v39 = vpop.f32.mrb[9].mxu1 }
 0x458   :  { %v1225_v40 = vpop.f32.mrb[4].mxu0  ;;  %v948_v41 = vpop.f32.mrb[10].mxu1 }
 0x459   :  { %v4573_v42 = vadd.f32 %v1225_v40, %v942_v38  ;;  %v1227_v43 = vpop.f32.mrb[5].mxu0  ;;  %v950_v44 = vpop.f32.mrb[11].mxu1 }
 0x45a   :  { %v4574_v46 = vadd.f32 %v1227_v43, %v944_v39 }
 0x45b   :  { %v1336_v47 = vadd.f32 %v4573_v42, %v1299_v45 }
 0x45c   :  { %v1231_v48 = vpop.f32.mrb[6].mxu0  ;;  %v954_v49 = vpop.f32.mrb[12].mxu1  ;;  %v1337_v51 = vadd.f32 %v4574_v46, %v1299_v45 }
 0x45d   :  { %v5243_v50 = vmax.f32 %v1336_v47, 0.0  ;;  %v4575_v52 = vadd.f32 %v1231_v48, %v948_v41  ;;  %v1233_v53 = vpop.f32.mrb[7].mxu0  ;;  %v956_v54 = vpop.f32.mrb[13].mxu1 }
 0x45e   :  { %v4576_v56 = vadd.f32 %v1233_v53, %v950_v44  ;;  %v5247_v61 = vmax.f32 %v1337_v51, 0.0  ;;  %v1324_v45 = vpop.permute.xlu0 %1323 }
 0x45f   :  { %v1338_v57 = vadd.f32 %v4575_v52, %v1304_v55  ;;  %1368 = vrot.lane.b32.xlu1 %v5243_v50, %s4764_s24 }
 0x460   :  { %v1339_v58 = vadd.f32 %v4576_v56, %v1304_v55  ;;  %v1237_v59 = vpop.f32.mrb[8].mxu0  ;;  %v960_v60 = vpop.f32.mrb[14].mxu1 }
 0x461   :  { %v5249_v62 = vmax.f32 %v1338_v57, 0.0  ;;  %v4577_v63 = vadd.f32 %v1237_v59, %v954_v49  ;;  %v1239_v0 = vpop.f32.mrb[9].mxu0  ;;  %v962_v2 = vpop.f32.mrb[15].mxu1 }
 0x462   :  { %v5251_v4 = vmax.f32 %v1339_v58, 0.0  ;;  %v4578_v5 = vadd.f32 %v1239_v0, %v956_v54  ;;  %v1329_v57 = vpop.permute.xlu1 %1328 }
 0x463   :  { %v1340_v6 = vadd.f32 %v4577_v63, %v1309_v3  ;;  %1384 = vrot.lane.b32.xlu1 %v5247_v61, %s4764_s24  ;;  %1370 = vrot.lane.b32.xlu0 %v5249_v62, %s4764_s24  ;;  %v4383_v8 = vpack.c.bf16 %v5249_v62, %v5243_v50 }
 0x464   :  { %v1243_v9 = vpop.f32.mrb[10].mxu0  ;;  %v966_v10 = vpop.f32.mrb[16].mxu1  ;;  %v4381_v11 = vpack.c.bf16 %v5251_v4, %v5247_v61  ;;  %v1341_v15 = vadd.f32 %v4578_v5, %v1309_v3 }
 0x465   :  { %v5261_v14 = vmax.f32 %v1340_v6, 0.0  ;;  %v4579_v16 = vadd.f32 %v1243_v9, %v960_v60  ;;  %v1245_v17 = vpop.f32.mrb[11].mxu0  ;;  %v968_v18 = vpop.f32.mrb[17].mxu1 }
 0x466   :  { %v4580_v21 = vadd.f32 %v1245_v17, %v962_v2  ;;  %v5267_v27 = vmax.f32 %v1341_v15, 0.0 }
 0x467   :  { %v1342_v22 = vadd.f32 %v4579_v16, %v1314_v20  ;;  %1372 = vrot.lane.b32.xlu1 %v5261_v14, %s4764_s24  ;;  %1386 = vrot.lane.b32.xlu0 %v5251_v4, %s4764_s24 }
 0x468   :  { %v1343_v23 = vadd.f32 %v4580_v21, %v1314_v20  ;;  %v1249_v24 = vpop.f32.mrb[12].mxu0  ;;  %v972_v26 = vpop.f32.mrb[18].mxu1 }
 0x469   :  { %v5269_v28 = vmax.f32 %v1342_v22, 0.0  ;;  %v4581_v29 = vadd.f32 %v1249_v24, %v966_v10  ;;  %v1251_v30 = vpop.f32.mrb[13].mxu0  ;;  %v974_v31 = vpop.f32.mrb[19].mxu1  ;;  %v1950_v24 = vld [vmem:[%s6779_s8] sm:$0xff] }
 0x46a   :  { %v5271_v33 = vmax.f32 %v1343_v23, 0.0  ;;  %v4582_v34 = vadd.f32 %v1251_v30, %v968_v18  ;;  %v1334_v10 = vpop.permute.xlu0 %1333  ;;  %v1954_v30 = vld [vmem:[%s6779_s8 + $0x20] sm:$0xff] }
 0x46b   :  { %v1344_v35 = vadd.f32 %v4581_v29, %v1319_v32  ;;  %1388 = vrot.lane.b32.xlu1 %v5267_v27, %s4764_s24  ;;  %1374 = vrot.lane.b32.xlu0 %v5269_v28, %s4764_s24  ;;  %v4387_v36 = vpack.c.bf16 %v5269_v28, %v5261_v14  ;;  %v1951_v29 = vld [vmem:[%s6779_s8 + $0x8] sm:$0xff] }
 0x46c   :  { %v1255_v37 = vpop.f32.mrb[14].mxu0  ;;  %v978_v38 = vpop.f32.mrb[20].mxu1  ;;  %v4385_v39 = vpack.c.bf16 %v5271_v33, %v5267_v27  ;;  %v1345_v41 = vadd.f32 %v4582_v34, %v1319_v32  ;;  %v1956_v32 = vld [vmem:[%s6779_s8 + $0x30] sm:$0xff]  ;;  %v1955_v34 = vld [vmem:[%s6779_s8 + $0x28] sm:$0xff] }
 0x46d   :  { %v5281_v40 = vmax.f32 %v1344_v35, 0.0  ;;  %v4583_v42 = vadd.f32 %v1255_v37, %v972_v26  ;;  %v1257_v43 = vpop.f32.mrb[15].mxu0  ;;  %v980_v44 = vpop.f32.mrb[21].mxu1  ;;  %v1952_v26 = vld [vmem:[%s6779_s8 + $0x10] sm:$0xff]  ;;  %v1957_v35 = vld [vmem:[%s6779_s8 + $0x38] sm:$0xff] }
 0x46e   :  { %v4584_v46 = vadd.f32 %v1257_v43, %v974_v31  ;;  %v5287_v52 = vmax.f32 %v1345_v41, 0.0  ;;  %v1953_v31 = vld [vmem:[%s6779_s8 + $0x18] sm:$0xff] }
 0x46f   :  { %v1346_v47 = vadd.f32 %v4583_v42, %v1324_v45  ;;  %1376 = vrot.lane.b32.xlu1 %v5281_v40, %s4764_s24  ;;  %1390 = vrot.lane.b32.xlu0 %v5271_v33, %s4764_s24 }
 0x470   :  { %v1347_v48 = vadd.f32 %v4584_v46, %v1324_v45  ;;  %v1261_v49 = vpop.f32.mrb[16].mxu0  ;;  %v984_v51 = vpop.f32.mrb[22].mxu1 }
 0x471   :  { %v5289_v53 = vmax.f32 %v1346_v47, 0.0  ;;  %v4585_v54 = vadd.f32 %v1261_v49, %v978_v38  ;;  %v1263_v55 = vpop.f32.mrb[17].mxu0  ;;  %v986_v56 = vpop.f32.mrb[23].mxu1 }
 0x472   :  { %v5291_v58 = vmax.f32 %v1347_v48, 0.0  ;;  %v4586_v59 = vadd.f32 %v1263_v55, %v980_v44 }
 0x473   :  { %v1348_v60 = vadd.f32 %v4585_v54, %v1329_v57  ;;  %1392 = vrot.lane.b32.xlu1 %v5287_v52, %s4764_s24  ;;  %1378 = vrot.lane.b32.xlu0 %v5289_v53, %s4764_s24  ;;  %v4391_v63 = vpack.c.bf16 %v5289_v53, %v5281_v40 }
 0x474   :  { %v1267_v0 = vpop.f32.mrb[18].mxu0  ;;  %v4389_v2 = vpack.c.bf16 %v5291_v58, %v5287_v52  ;;  %v1349_v5 = vadd.f32 %v4586_v59, %v1329_v57 }
 0x475   :  { %v5301_v3 = vmax.f32 %v1348_v60, 0.0  ;;  %v4587_v6 = vadd.f32 %v1267_v0, %v984_v51  ;;  %v1269_v9 = vpop.f32.mrb[19].mxu0 }
 0x476   :  { %v4588_v15 = vadd.f32 %v1269_v9, %v986_v56  ;;  %v5307_v18 = vmax.f32 %v1349_v5, 0.0 }
 0x477   :  { %v1350_v16 = vadd.f32 %v4587_v6, %v1334_v10  ;;  %1380 = vrot.lane.b32.xlu1 %v5301_v3, %s4764_s24  ;;  %1394 = vrot.lane.b32.xlu0 %v5291_v58, %s4764_s24 }
 0x478   :  { %v1351_v17 = vadd.f32 %v4588_v15, %v1334_v10 }
 0x479   :  { %v5309_v20 = vmax.f32 %v1350_v16, 0.0 }
 0x47a   :  { %v5311_v21 = vmax.f32 %v1351_v17, 0.0 }
 0x47b   :  { %1396 = vrot.lane.b32.xlu1 %v5307_v18, %s4764_s24  ;;  %1382 = vrot.lane.b32.xlu0 %v5309_v20, %s4764_s24  ;;  %v4395_v22 = vpack.c.bf16 %v5309_v20, %v5301_v3 }
 0x47c   :  { %v4393_v23 = vpack.c.bf16 %v5311_v21, %v5307_v18 }
 0x47f   :  { %1432 = vrot.lane.b32.xlu1 %v5243_v50, %s4765_s25  ;;  %1398 = vrot.lane.b32.xlu0 %v5311_v21, %s4764_s24  ;;  %v1507_v50 = vld [vmem:[%s6780_s7 + $0x10] sm:$0xff] }
 0x483   :  { %1448 = vrot.lane.b32.xlu1 %v5247_v61, %s4765_s25  ;;  %1434 = vrot.lane.b32.xlu0 %v5249_v62, %s4765_s25 }
 0x487   :  { %1436 = vrot.lane.b32.xlu1 %v5261_v14, %s4765_s25  ;;  %1450 = vrot.lane.b32.xlu0 %v5251_v4, %s4765_s25  ;;  %v1508_v14 = vld [vmem:[%s6780_s7 + $0x18] sm:$0xff] }
 0x48b   :  { %1452 = vrot.lane.b32.xlu1 %v5267_v27, %s4765_s25  ;;  %1438 = vrot.lane.b32.xlu0 %v5269_v28, %s4765_s25 }
 0x48f   :  { %1440 = vrot.lane.b32.xlu1 %v5281_v40, %s4765_s25  ;;  %1454 = vrot.lane.b32.xlu0 %v5271_v33, %s4765_s25 }
 0x493   :  { %1456 = vrot.lane.b32.xlu1 %v5287_v52, %s4765_s25  ;;  %1442 = vrot.lane.b32.xlu0 %v5289_v53, %s4765_s25  ;;  %v1510_v52 = vld [vmem:[%s6780_s7 + $0x28] sm:$0xff] }
 0x497   :  { %1444 = vrot.lane.b32.xlu1 %v5301_v3, %s4765_s25  ;;  %1458 = vrot.lane.b32.xlu0 %v5291_v58, %s4765_s25 }
 0x49b   :  { %1460 = vrot.lane.b32.xlu1 %v5307_v18, %s4765_s25  ;;  %1446 = vrot.lane.b32.xlu0 %v5309_v20, %s4765_s25  ;;  %v1512_v20 = vld [vmem:[%s6780_s7 + $0x38] sm:$0xff] }
 0x49f   :  { %1960 = vperm.xlu1 %4762, %v1950_v24   ;;  %1462 = vrot.lane.b32.xlu0 %v5311_v21, %s4765_s25 }
 0x4a3   :  { %1970 = vperm.xlu1 %4762, %v1952_v26   ;;  %1965 = vperm.xlu0 %4761, %v1951_v29  }
 0x4a7   :  { %1980 = vperm.xlu1 %4762, %v1954_v30   ;;  %1975 = vperm.xlu0 %4761, %v1953_v31  }
 0x4ab   :  { %1990 = vperm.xlu1 %4762, %v1956_v32   ;;  %1985 = vperm.xlu0 %4761, %v1955_v34  }
 0x4af   :  { %1995 = vperm.xlu0 %4761, %v1957_v35  }
 0x4d1   :  { %v1369_v37 = vpop.permute.xlu1 %1368 }
 0x4d5   :  { %v1385_v38 = vpop.permute.xlu1 %1384  ;;  %v1371_v41 = vpop.permute.xlu0 %1370 }
 0x4d6   :  { %v1400_v42 = vsel %vm76_vm2, %v1369_v37, %v1385_v38  ;;  %v1408_v43 = vsel %vm76_vm2, %v1385_v38, %v1369_v37 }
 0x4d7   :  { %v1416_v48 = vmul.f32 %v4880_v13, %v1408_v43  ;;  %v1417_v49 = vmul.f32 %v4877_v12, %v1400_v42 }
 0x4d9   :  { %v1373_v44 = vpop.permute.xlu1 %1372  ;;  %v1387_v45 = vpop.permute.xlu0 %1386 }
 0x4da   :  { %v1401_v46 = vsel %vm76_vm2, %v1371_v41, %v1387_v45  ;;  %v1409_v47 = vsel %vm76_vm2, %v1387_v45, %v1371_v41 }
 0x4db   :  { %v1418_v51 = vmul.f32 %v4880_v13, %v1409_v47  ;;  %v1419_v54 = vmul.f32 %v4877_v12, %v1401_v46 }
 0x4dd   :  { %v4367_v55 = vpack.c.bf16 %v1418_v51, %v1416_v48  ;;  %v1389_v56 = vpop.permute.xlu1 %1388  ;;  %v1375_v57 = vpop.permute.xlu0 %1374  ;;  %v4365_v59 = vpack.c.bf16 %v1419_v54, %v1417_v49 }
 0x4de   :  { %v1402_v60 = vsel %vm76_vm2, %v1373_v44, %v1389_v56  ;;  %v1410_v0 = vsel %vm76_vm2, %v1389_v56, %v1373_v44 }
 0x4df   :  { %4366 = vmatprep.subr.bf16.mxu1 %v4365_v59  ;;  %v1420_v15 = vmul.f32 %v4880_v13, %v1410_v0  ;;  %v1421_v16 = vmul.f32 %v4877_v12, %v1402_v60 }
 0x4e0   :  { %4368 = vmatpush1.bf16.msra.mxu1 %v4367_v55 }
 0x4e1   :  { %v1377_v5 = vpop.permute.xlu1 %1376  ;;  %v1391_v6 = vpop.permute.xlu0 %1390 }
 0x4e2   :  { %v1403_v9 = vsel %vm76_vm2, %v1375_v57, %v1391_v6  ;;  %v1411_v10 = vsel %vm76_vm2, %v1391_v6, %v1375_v57 }
 0x4e3   :  { %v1422_v17 = vmul.f32 %v4880_v13, %v1411_v10  ;;  %v1423_v24 = vmul.f32 %v4877_v12, %v1403_v9 }
 0x4e5   :  { %v4371_v26 = vpack.c.bf16 %v1422_v17, %v1420_v15  ;;  %v1393_v29 = vpop.permute.xlu1 %1392  ;;  %v1379_v30 = vpop.permute.xlu0 %1378  ;;  %v4369_v31 = vpack.c.bf16 %v1423_v24, %v1421_v16  ;;  %v1505_v17 = vld [vmem:[%s6780_s7] sm:$0xff] }
 0x4e6   :  { %v1404_v32 = vsel %vm76_vm2, %v1377_v5, %v1393_v29  ;;  %v1412_v34 = vsel %vm76_vm2, %v1393_v29, %v1377_v5 }
 0x4e7   :  { %4370 = vmatprep.subr.bf16.mxu1 %v4369_v31  ;;  %v1424_v42 = vmul.f32 %v4880_v13, %v1412_v34  ;;  %v1425_v43 = vmul.f32 %v4877_v12, %v1404_v32 }
 0x4e8   :  { %4372 = vmatpush1.bf16.msra.mxu1 %v4371_v26  ;;  %v1506_v26 = vld [vmem:[%s6780_s7 + $0x8] sm:$0xff] }
 0x4e9   :  { %v1381_v35 = vpop.permute.xlu1 %1380  ;;  %v1395_v37 = vpop.permute.xlu0 %1394 }
 0x4ea   :  { %v1405_v38 = vsel %vm76_vm2, %v1379_v30, %v1395_v37  ;;  %v1413_v41 = vsel %vm76_vm2, %v1395_v37, %v1379_v30  ;;  %v4168_v37 = vld [vmem:[%s6780_s7 + $0x40] sm:$0xff] }
 0x4eb   :  { %v1426_v44 = vmul.f32 %v4880_v13, %v1413_v41  ;;  %v1427_v45 = vmul.f32 %v4877_v12, %v1405_v38 }
 0x4ed   :  { %v4375_v46 = vpack.c.bf16 %v1426_v44, %v1424_v42  ;;  %v1397_v47 = vpop.permute.xlu1 %1396  ;;  %v1383_v48 = vpop.permute.xlu0 %1382  ;;  %v4373_v49 = vpack.c.bf16 %v1427_v45, %v1425_v43 }
 0x4ee   :  { %v1406_v51 = vsel %vm76_vm2, %v1381_v35, %v1397_v47  ;;  %v1414_v54 = vsel %vm76_vm2, %v1397_v47, %v1381_v35 }
 0x4ef   :  { %4374 = vmatprep.subr.bf16.mxu1 %v4373_v49  ;;  %v1428_v60 = vmul.f32 %v4880_v13, %v1414_v54  ;;  %v1429_v0 = vmul.f32 %v4877_v12, %v1406_v51 }
 0x4f0   :  { %4376 = vmatpush1.bf16.msra.mxu1 %v4375_v46 }
 0x4f1   :  { %v5419_v55 = vpop.permute.xlu1 %1432  ;;  %v1399_v56 = vpop.permute.xlu0 %1398 }
 0x4f2   :  { %v1407_v57 = vsel %vm76_vm2, %v1383_v48, %v1399_v56  ;;  %v1415_v59 = vsel %vm76_vm2, %v1399_v56, %v1383_v48 }
 0x4f3   :  { %v1430_v5 = vmul.f32 %v4880_v13, %v1415_v59  ;;  %v1431_v6 = vmul.f32 %v4877_v12, %v1407_v57 }
 0x4f5   :  { %v4379_v9 = vpack.c.bf16 %v1430_v5, %v1428_v60  ;;  %v1435_v10 = vpop.permute.xlu0 %1434  ;;  %v4377_v15 = vpack.c.bf16 %v1431_v6, %v1429_v0  ;;  %v1449_v16 = vpop.permute.xlu1 %1448 }
 0x4f6   :  { %v1464_v21 = vsel %vm85_vm3, %v5419_v55, %v1449_v16 }
 0x4f7   :  { %4378 = vmatprep.subr.bf16.mxu1 %v4377_v15  ;;  %v1480_v34 = vmul.f32 %v4904_v25, %v1464_v21  ;;  %v4170_v15 = vld [vmem:[%s6780_s7 + $0x50] sm:$0xff] }
 0x4f8   :  { %4380 = vmatpush1.bf16.msra.mxu1 %v4379_v9 }
 0x4f9   :  { %4382 = vmatprep.subr.bf16.mxu1 %v4381_v11  ;;  %v1451_v24 = vpop.permute.xlu0 %1450  ;;  %v1437_v29 = vpop.permute.xlu1 %1436 }
 0x4fa   :  { %v1473_v4 = vsel %vm85_vm3, %v1451_v24, %v1435_v10 }
 0x4fb   :  { %4176 = vmatmul.mubr.msk.f32.vlgmr.msra.gmra.mrb[24].mxu1 %vm1513_vm9, %v1505_v17  ;;  %v1483_v11 = vmul.f32 %v4889_v19, %v1473_v4  ;;  %v4171_v4 = vld [vmem:[%s6780_s7 + $0x58] sm:$0xff] }
 0x4fc   :  { %4384 = vmatpush1.bf16.msra.mxu1 %v4383_v8  ;;  %1608 = vmatprep.mubr.f32.mxu1 %v4763_v1  ;;  %v1472_v8 = vsel %vm85_vm3, %v1449_v16, %v5419_v55  ;;  %v4169_v55 = vld [vmem:[%s6780_s7 + $0x48] sm:$0xff] }
 0x4fd   :  { %4386 = vmatprep.subr.bf16.mxu1 %v4385_v39  ;;  %v1439_v61 = vpop.permute.xlu0 %1438  ;;  %v1453_v27 = vpop.permute.xlu1 %1452  ;;  %v1481_v28 = vmul.f32 %v4889_v19, %v1472_v8  ;;  %v1509_v39 = vld [vmem:[%s6780_s7 + $0x20] sm:$0xff]  ;;  %v4173_v8 = vld [vmem:[%s6780_s7 + $0x68] sm:$0xff] }
 0x4fe   :  { %v1474_v30 = vsel %vm85_vm3, %v1453_v27, %v1437_v29  ;;  %v1466_v38 = vsel %vm85_vm3, %v1437_v29, %v1453_v27  ;;  %v4175_v27 = vld [vmem:[%s6780_s7 + $0x78] sm:$0xff] }
 0x4ff   :  { %4177 = vmatmul.mubr.msk.f32.gmra.mrb[26].mxu1 %vm1513_vm9, %v1506_v26  ;;  %v1485_v41 = vmul.f32 %v4889_v19, %v1474_v30  ;;  %v1484_v51 = vmul.f32 %v4904_v25, %v1466_v38 }
 0x500   :  { %4388 = vmatpush1.bf16.msra.mxu1 %v4387_v36  ;;  %1614 = vmatprep.mubr.f32.mxu1 %v4763_v1  ;;  %v4397_v36 = vpack.c.bf16 %v1483_v11, %v1481_v28  ;;  %v4174_v11 = vld [vmem:[%s6780_s7 + $0x70] sm:$0xff]  ;;  %v4193_v28 = vld [vmem:[%s6780_s7 + $0x88] sm:$0xff] }
 0x501   :  { %4390 = vmatprep.subr.bf16.mxu1 %v4389_v2  ;;  %v1455_v62 = vpop.permute.xlu0 %1454  ;;  %v1441_v40 = vpop.permute.xlu1 %1440  ;;  %v1465_v2 = vsel %vm85_vm3, %v1435_v10, %v1451_v24 }
 0x502   :  { %v1475_v18 = vsel %vm85_vm3, %v1455_v62, %v1439_v61  ;;  %v1467_v31 = vsel %vm85_vm3, %v1439_v61, %v1455_v62  ;;  %v4172_v62 = vld [vmem:[%s6780_s7 + $0x60] sm:$0xff] }
 0x503   :  { %4178 = vmatmul.mubr.msk.f32.gmra.mrb[28].mxu1 %vm1513_vm9, %v1507_v50  ;;  %v1487_v32 = vmul.f32 %v4889_v19, %v1475_v18  ;;  %v1486_v44 = vmul.f32 %v4904_v25, %v1467_v31 }
 0x504   :  { %4392 = vmatpush1.bf16.msra.mxu1 %v4391_v63  ;;  %1620 = vmatprep.mubr.f32.mxu1 %v4763_v1  ;;  %v1511_v63 = vld [vmem:[%s6780_s7 + $0x30] sm:$0xff] }
 0x505   :  { %4394 = vmatprep.subr.bf16.mxu1 %v4393_v23  ;;  %v1443_v33 = vpop.permute.xlu0 %1442  ;;  %v1457_v58 = vpop.permute.xlu1 %1456  ;;  %v1482_v23 = vmul.f32 %v4904_v25, %v1465_v2  ;;  %v4401_v49 = vpack.c.bf16 %v1487_v32, %v1485_v41  ;;  %v4403_v59 = vpack.c.bf16 %v1486_v44, %v1484_v51 }
 0x506   :  { %v1476_v45 = vsel %vm85_vm3, %v1457_v58, %v1441_v40  ;;  %v1468_v56 = vsel %vm85_vm3, %v1441_v40, %v1457_v58  ;;  %v4197_v40 = vld [vmem:[%s6780_s7 + $0xa8] sm:$0xff] }
 0x507   :  { %4179 = vmatmul.mubr.msk.f32.gmra.mrb[30].mxu1 %vm1513_vm9, %v1508_v14  ;;  %v4399_v43 = vpack.c.bf16 %v1482_v23, %v1480_v34  ;;  %v1489_v57 = vmul.f32 %v4889_v19, %v1476_v45  ;;  %v1488_v10 = vmul.f32 %v4904_v25, %v1468_v56  ;;  %v4192_v14 = vld [vmem:[%s6780_s7 + $0x80] sm:$0xff] }
 0x508   :  { %4396 = vmatpush1.bf16.msra.mxu1 %v4395_v22  ;;  %1626 = vmatprep.mubr.f32.mxu1 %v4763_v1 }
 0x509   :  { %4398 = vmatprep.subr.bf16.mxu1 %v4397_v36  ;;  %v1459_v53 = vpop.permute.xlu0 %1458  ;;  %v1445_v22 = vpop.permute.xlu1 %1444  ;;  %v4195_v36 = vld [vmem:[%s6780_s7 + $0x98] sm:$0xff] }
 0x50a   :  { %v1477_v35 = vsel %vm85_vm3, %v1459_v53, %v1443_v33  ;;  %v1469_v46 = vsel %vm85_vm3, %v1443_v33, %v1459_v53  ;;  %v4194_v33 = vld [vmem:[%s6780_s7 + $0x90] sm:$0xff]  ;;  %v4199_v53 = vld [vmem:[%s6780_s7 + $0xb8] sm:$0xff] }
 0x50b   :  { %4180 = vmatmul.mubr.msk.f32.gmra.mrb[32].mxu1 %vm1513_vm9, %v1509_v39  ;;  %v1491_v47 = vmul.f32 %v4889_v19, %v1477_v35  ;;  %v1490_v60 = vmul.f32 %v4904_v25, %v1469_v46  ;;  %v4196_v39 = vld [vmem:[%s6780_s7 + $0xa0] sm:$0xff] }
 0x50c   :  { %1632 = vmatprep.mubr.f32.mxu1 %v4763_v1 }
 0x50d   :  { %v1447_v3 = vpop.permute.xlu0 %1446  ;;  %v1461_v48 = vpop.permute.xlu1 %1460  ;;  %v4405_v9 = vpack.c.bf16 %v1491_v47, %v1489_v57  ;;  %v4407_v24 = vpack.c.bf16 %v1490_v60, %v1488_v10 }
 0x50e   :  { %v1478_v0 = vsel %vm85_vm3, %v1461_v48, %v1445_v22  ;;  %v1470_v16 = vsel %vm85_vm3, %v1445_v22, %v1461_v48 }
 0x50f   :  { %4181 = vmatmul.mubr.msk.f32.gmra.mrb[34].mxu1 %vm1513_vm9, %v1510_v52  ;;  %v1493_v17 = vmul.f32 %v4889_v19, %v1478_v0  ;;  %v1492_v61 = vmul.f32 %v4904_v25, %v1470_v16  ;;  %v4198_v52 = vld [vmem:[%s6780_s7 + $0xb0] sm:$0xff] }
 0x510   :  { %1638 = vmatprep.mubr.f32.mxu1 %v4763_v1 }
 0x511   :  { %v1463_v42 = vpop.permute.xlu0 %1462 }
 0x512   :  { %v1479_v54 = vsel %vm85_vm3, %v1463_v42, %v1447_v3  ;;  %v1471_v5 = vsel %vm85_vm3, %v1447_v3, %v1463_v42 }
 0x513   :  { %4182 = vmatmul.mubr.msk.f32.gmra.mrb[36].mxu1 %vm1513_vm9, %v1511_v63  ;;  %v1495_v6 = vmul.f32 %v4889_v19, %v1479_v54  ;;  %v1494_v26 = vmul.f32 %v4904_v25, %v1471_v5 }
 0x514   :  { %1644 = vmatprep.mubr.f32.mxu1 %v4763_v1 }
 0x515   :  { %v4409_v29 = vpack.c.bf16 %v1495_v6, %v1493_v17  ;;  %v4411_v50 = vpack.c.bf16 %v1494_v26, %v1492_v61 }
 0x517   :  { %4183 = vmatmul.mubr.msk.f32.gmra.mrb[38].mxu1 %vm1513_vm9, %v1512_v20 }
 0x518   :  { %1739 = vmatprep.mubr.f32.mxu1 %v4763_v1 }
 0x51b   :  { %4184 = vmatmul.mubr.msk.f32.vlgmr.msra.gmra.mrb[24].mxu1 %vm1513_vm9, %v4168_v37 }
 0x51c   :  { %4400 = vmatpush1.bf16.msra.mxu1 %v4399_v43  ;;  %1745 = vmatprep.mubr.f32.mxu1 %v4763_v1 }
 0x51d   :  { %4402 = vmatprep.subr.bf16.mxu1 %v4401_v49 }
 0x51e   :  { %v1961_v58 = vpop.permute.xlu1 %1960 }
 0x51f   :  { %4185 = vmatmul.mubr.msk.f32.gmra.mrb[26].mxu1 %vm1513_vm9, %v4169_v55 }
 0x520   :  { %4404 = vmatpush1.bf16.msra.mxu1 %v4403_v59  ;;  %1751 = vmatprep.mubr.f32.mxu1 %v4763_v1 }
 0x521   :  { %4406 = vmatprep.subr.bf16.mxu1 %v4405_v9 }
 0x522   :  { %v1966_v21 = vpop.permute.xlu0 %1965  ;;  %v1971_v35 = vpop.permute.xlu1 %1970 }
 0x523   :  { %4186 = vmatmul.mubr.msk.f32.gmra.mrb[28].mxu1 %vm1513_vm9, %v4170_v15 }
 0x524   :  { %4408 = vmatpush1.bf16.msra.mxu1 %v4407_v24  ;;  %1757 = vmatprep.mubr.f32.mxu1 %v4763_v1 }
 0x525   :  { %4410 = vmatprep.subr.bf16.mxu1 %v4409_v29 }
 0x526   :  { %v1976_v47 = vpop.permute.xlu0 %1975  ;;  %v1981_v57 = vpop.permute.xlu1 %1980 }
 0x527   :  { %4187 = vmatmul.mubr.msk.f32.gmra.mrb[30].mxu1 %vm1513_vm9, %v4171_v4 }
 0x528   :  { %4412 = vmatpush1.bf16.msra.mxu1 %v4411_v50  ;;  %1763 = vmatprep.mubr.f32.mxu1 %v4763_v1 }
 0x52a   :  { %v1986_v16 = vpop.permute.xlu0 %1985  ;;  %v1991_v50 = vpop.permute.xlu1 %1990 }
 0x52b   :  { %4188 = vmatmul.mubr.msk.f32.gmra.mrb[32].mxu1 %vm1513_vm9, %v4172_v62 }
 0x52c   :  { %1769 = vmatprep.mubr.f32.mxu1 %v4763_v1 }
 0x52f   :  { %4189 = vmatmul.mubr.msk.f32.gmra.mrb[34].mxu1 %vm1513_vm9, %v4173_v8 }
 0x530   :  { %1775 = vmatprep.mubr.f32.mxu1 %v4763_v1 }
 0x533   :  { %4190 = vmatmul.mubr.msk.f32.gmra.mrb[36].mxu1 %vm1513_vm9, %v4174_v11 }
 0x534   :  { %1781 = vmatprep.mubr.f32.mxu1 %v4763_v1 }
 0x537   :  { %4191 = vmatmul.mubr.msk.f32.gmra.mrb[38].mxu1 %vm1513_vm9, %v4175_v27 }
 0x538   :  { %1885 = vmatprep.mubr.f32.mxu1 %v4763_v1 }
 0x53b   :  { %4200 = vmatmul.mubr.msk.f32.vlgmr.msra.gmra.mrb[24].mxu1 %vm1513_vm9, %v4192_v14 }
 0x53c   :  { %1891 = vmatprep.mubr.f32.mxu1 %v4763_v1 }
 0x53f   :  { %4201 = vmatmul.mubr.msk.f32.gmra.mrb[26].mxu1 %vm1513_vm9, %v4193_v28 }
 0x540   :  { %1897 = vmatprep.mubr.f32.mxu1 %v4763_v1 }
 0x543   :  { %4202 = vmatmul.mubr.msk.f32.gmra.mrb[28].mxu1 %vm1513_vm9, %v4194_v33 }
 0x544   :  { %1903 = vmatprep.mubr.f32.mxu1 %v4763_v1 }
 0x547   :  { %4203 = vmatmul.mubr.msk.f32.gmra.mrb[30].mxu1 %vm1513_vm9, %v4195_v36 }
 0x548   :  { %1909 = vmatprep.mubr.f32.mxu1 %v4763_v1 }
 0x54b   :  { %4204 = vmatmul.mubr.msk.f32.gmra.mrb[32].mxu1 %vm1513_vm9, %v4196_v39  ;;  %v1996_v39 = vpop.permute.xlu0 %1995 }
 0x54c   :  { %1915 = vmatprep.mubr.f32.mxu1 %v4763_v1 }
 0x54f   :  { %4205 = vmatmul.mubr.msk.f32.gmra.mrb[34].mxu1 %vm1513_vm9, %v4197_v40 }
 0x550   :  { %1921 = vmatprep.mubr.f32.mxu1 %v4763_v1 }
 0x553   :  { %4206 = vmatmul.mubr.msk.f32.gmra.mrb[36].mxu1 %vm1513_vm9, %v4198_v52 }
 0x554   :  { %1927 = vmatprep.mubr.f32.mxu1 %v4763_v1 }
 0x557   :  { %4207 = vmatmul.mubr.msk.f32.gmra.mrb[38].mxu1 %vm1513_vm9, %v4199_v53 }
 0x558   :  { %2924 = vmatprep.mubr.f32.mxu1 %v4763_v1 }
 0x60e   :  { %v1887_v63 = vpop.f32.mrb[24].mxu1 }
 0x60f   :  { %v1998_v2 = vadd.f32 %v1961_v58, %v1887_v63  ;;  %v1889_v3 = vpop.f32.mrb[25].mxu1 }
 0x610   :  { %v1999_v20 = vadd.f32 %v1961_v58, %v1889_v3 }
 0x611   :  { %v5623_v18 = vmax.f32 %v1998_v2, 0.0 }
 0x612   :  { %v1893_v22 = vpop.f32.mrb[26].mxu1  ;;  %v5627_v32 = vmax.f32 %v1999_v20, 0.0 }
 0x613   :  { %v2000_v23 = vadd.f32 %v1966_v21, %v1893_v22  ;;  %2030 = vrot.lane.b32.xlu1 %v5623_v18, %s4764_s24  ;;  %v1895_v30 = vpop.f32.mrb[27].mxu1  ;;  %v2611_v22 = vld [vmem:[%s6781_s10] sm:$0xff] }
 0x614   :  { %v2001_v31 = vadd.f32 %v1966_v21, %v1895_v30  ;;  %v2612_v30 = vld [vmem:[%s6781_s10 + $0x8] sm:$0xff] }
 0x615   :  { %v5629_v34 = vmax.f32 %v2000_v23, 0.0  ;;  %v2613_v23 = vld [vmem:[%s6781_s10 + $0x10] sm:$0xff] }
 0x616   :  { %v5631_v37 = vmax.f32 %v2001_v31, 0.0  ;;  %v1899_v38 = vpop.f32.mrb[28].mxu1  ;;  %v2615_v31 = vld [vmem:[%s6781_s10 + $0x20] sm:$0xff] }
 0x617   :  { %v4431_v41 = vpack.c.bf16 %v5629_v34, %v5623_v18  ;;  %v2002_v42 = vadd.f32 %v1971_v35, %v1899_v38  ;;  %2046 = vrot.lane.b32.xlu1 %v5627_v32, %s4764_s24  ;;  %v1901_v43 = vpop.f32.mrb[29].mxu1  ;;  %2032 = vrot.lane.b32.xlu0 %v5629_v34, %s4764_s24  ;;  %v2617_v38 = vld [vmem:[%s6781_s10 + $0x30] sm:$0xff] }
 0x618   :  { %v4429_v44 = vpack.c.bf16 %v5631_v37, %v5627_v32  ;;  %v2003_v46 = vadd.f32 %v1971_v35, %v1901_v43  ;;  %v2614_v35 = vld [vmem:[%s6781_s10 + $0x18] sm:$0xff] }
 0x619   :  { %v5641_v45 = vmax.f32 %v2002_v42, 0.0  ;;  %v2616_v42 = vld [vmem:[%s6781_s10 + $0x28] sm:$0xff]  ;;  %v2618_v43 = vld [vmem:[%s6781_s10 + $0x38] sm:$0xff] }
 0x61a   :  { %v1905_v48 = vpop.f32.mrb[30].mxu1  ;;  %v5647_v55 = vmax.f32 %v2003_v46, 0.0 }
 0x61b   :  { %v2004_v49 = vadd.f32 %v1976_v47, %v1905_v48  ;;  %2034 = vrot.lane.b32.xlu1 %v5641_v45, %s4764_s24  ;;  %v1907_v51 = vpop.f32.mrb[31].mxu1  ;;  %2048 = vrot.lane.b32.xlu0 %v5631_v37, %s4764_s24 }
 0x61c   :  { %v2005_v54 = vadd.f32 %v1976_v47, %v1907_v51 }
 0x61d   :  { %v5649_v56 = vmax.f32 %v2004_v49, 0.0 }
 0x61e   :  { %v5651_v59 = vmax.f32 %v2005_v54, 0.0  ;;  %v1911_v60 = vpop.f32.mrb[32].mxu1 }
 0x61f   :  { %v4435_v0 = vpack.c.bf16 %v5649_v56, %v5641_v45  ;;  %v2006_v5 = vadd.f32 %v1981_v57, %v1911_v60  ;;  %2050 = vrot.lane.b32.xlu1 %v5647_v55, %s4764_s24  ;;  %v1913_v6 = vpop.f32.mrb[33].mxu1  ;;  %2036 = vrot.lane.b32.xlu0 %v5649_v56, %s4764_s24 }
 0x620   :  { %v4433_v9 = vpack.c.bf16 %v5651_v59, %v5647_v55  ;;  %v2007_v15 = vadd.f32 %v1981_v57, %v1913_v6 }
 0x621   :  { %v5661_v10 = vmax.f32 %v2006_v5, 0.0 }
 0x622   :  { %v1917_v17 = vpop.f32.mrb[34].mxu1  ;;  %v5667_v61 = vmax.f32 %v2007_v15, 0.0 }
 0x623   :  { %v2008_v24 = vadd.f32 %v1986_v16, %v1917_v17  ;;  %2038 = vrot.lane.b32.xlu1 %v5661_v10, %s4764_s24  ;;  %v1919_v26 = vpop.f32.mrb[35].mxu1  ;;  %2052 = vrot.lane.b32.xlu0 %v5651_v59, %s4764_s24 }
 0x624   :  { %v2009_v29 = vadd.f32 %v1986_v16, %v1919_v26 }
 0x625   :  { %v5669_v4 = vmax.f32 %v2008_v24, 0.0 }
 0x626   :  { %v5671_v62 = vmax.f32 %v2009_v29, 0.0  ;;  %v1923_v8 = vpop.f32.mrb[36].mxu1 }
 0x627   :  { %v4439_v11 = vpack.c.bf16 %v5669_v4, %v5661_v10  ;;  %v2010_v27 = vadd.f32 %v1991_v50, %v1923_v8  ;;  %2054 = vrot.lane.b32.xlu1 %v5667_v61, %s4764_s24  ;;  %v1925_v14 = vpop.f32.mrb[37].mxu1  ;;  %2040 = vrot.lane.b32.xlu0 %v5669_v4, %s4764_s24 }
 0x628   :  { %v4437_v28 = vpack.c.bf16 %v5671_v62, %v5667_v61  ;;  %v2011_v36 = vadd.f32 %v1991_v50, %v1925_v14 }
 0x629   :  { %v5681_v33 = vmax.f32 %v2010_v27, 0.0 }
 0x62a   :  { %v1929_v40 = vpop.f32.mrb[38].mxu1  ;;  %v5687_v63 = vmax.f32 %v2011_v36, 0.0 }
 0x62b   :  { %v2012_v52 = vadd.f32 %v1996_v39, %v1929_v40  ;;  %2042 = vrot.lane.b32.xlu1 %v5681_v33, %s4764_s24  ;;  %v1931_v53 = vpop.f32.mrb[39].mxu1  ;;  %2056 = vrot.lane.b32.xlu0 %v5671_v62, %s4764_s24 }
 0x62c   :  { %v2013_v58 = vadd.f32 %v1996_v39, %v1931_v53 }
 0x62d   :  { %v5689_v2 = vmax.f32 %v2012_v52, 0.0 }
 0x62e   :  { %v5691_v3 = vmax.f32 %v2013_v58, 0.0 }
 0x62f   :  { %v4443_v20 = vpack.c.bf16 %v5689_v2, %v5681_v33  ;;  %2058 = vrot.lane.b32.xlu1 %v5687_v63, %s4764_s24  ;;  %2044 = vrot.lane.b32.xlu0 %v5689_v2, %s4764_s24 }
 0x630   :  { %v4441_v21 = vpack.c.bf16 %v5691_v3, %v5687_v63 }
 0x633   :  { %2094 = vrot.lane.b32.xlu1 %v5623_v18, %s4765_s25  ;;  %2060 = vrot.lane.b32.xlu0 %v5691_v3, %s4764_s24  ;;  %v2169_v18 = vld [vmem:[%s6782_s9 + $0x10] sm:$0xff] }
 0x637   :  { %2110 = vrot.lane.b32.xlu1 %v5627_v32, %s4765_s25  ;;  %2096 = vrot.lane.b32.xlu0 %v5629_v34, %s4765_s25 }
 0x63b   :  { %2098 = vrot.lane.b32.xlu1 %v5641_v45, %s4765_s25  ;;  %2112 = vrot.lane.b32.xlu0 %v5631_v37, %s4765_s25  ;;  %v2170_v45 = vld [vmem:[%s6782_s9 + $0x18] sm:$0xff] }
 0x63f   :  { %2114 = vrot.lane.b32.xlu1 %v5647_v55, %s4765_s25  ;;  %2100 = vrot.lane.b32.xlu0 %v5649_v56, %s4765_s25 }
 0x643   :  { %2102 = vrot.lane.b32.xlu1 %v5661_v10, %s4765_s25  ;;  %2116 = vrot.lane.b32.xlu0 %v5651_v59, %s4765_s25 }
 0x647   :  { %2118 = vrot.lane.b32.xlu1 %v5667_v61, %s4765_s25  ;;  %2104 = vrot.lane.b32.xlu0 %v5669_v4, %s4765_s25  ;;  %v2172_v61 = vld [vmem:[%s6782_s9 + $0x28] sm:$0xff] }
 0x64b   :  { %2106 = vrot.lane.b32.xlu1 %v5681_v33, %s4765_s25  ;;  %2120 = vrot.lane.b32.xlu0 %v5671_v62, %s4765_s25 }
 0x64f   :  { %2122 = vrot.lane.b32.xlu1 %v5687_v63, %s4765_s25  ;;  %2108 = vrot.lane.b32.xlu0 %v5689_v2, %s4765_s25  ;;  %v2174_v2 = vld [vmem:[%s6782_s9 + $0x38] sm:$0xff] }
 0x653   :  { %2621 = vperm.xlu1 %4762, %v2611_v22   ;;  %2124 = vrot.lane.b32.xlu0 %v5691_v3, %s4765_s25 }
 0x657   :  { %2631 = vperm.xlu1 %4762, %v2613_v23   ;;  %2626 = vperm.xlu0 %4761, %v2612_v30  }
 0x65b   :  { %2641 = vperm.xlu1 %4762, %v2615_v31   ;;  %2636 = vperm.xlu0 %4761, %v2614_v35  }
 0x65f   :  { %2651 = vperm.xlu1 %4762, %v2617_v38   ;;  %2646 = vperm.xlu0 %4761, %v2616_v42  }
 0x663   :  { %2656 = vperm.xlu0 %4761, %v2618_v43  }
 0x685   :  { %v2031_v46 = vpop.permute.xlu1 %2030 }
 0x689   :  { %v2047_v47 = vpop.permute.xlu1 %2046  ;;  %v2033_v48 = vpop.permute.xlu0 %2032 }
 0x68a   :  { %v2062_v49 = vsel %vm76_vm2, %v2031_v46, %v2047_v47  ;;  %v2070_v51 = vsel %vm76_vm2, %v2047_v47, %v2031_v46 }
 0x68b   :  { %v2078_v6 = vmul.f32 %v4880_v13, %v2070_v51  ;;  %v2079_v15 = vmul.f32 %v4877_v12, %v2062_v49 }
 0x68d   :  { %v2035_v54 = vpop.permute.xlu1 %2034  ;;  %v2049_v57 = vpop.permute.xlu0 %2048 }
 0x68e   :  { %v2063_v60 = vsel %vm76_vm2, %v2033_v48, %v2049_v57  ;;  %v2071_v5 = vsel %vm76_vm2, %v2049_v57, %v2033_v48 }
 0x68f   :  { %v2080_v16 = vmul.f32 %v4880_v13, %v2071_v5  ;;  %v2081_v17 = vmul.f32 %v4877_v12, %v2063_v60 }
 0x691   :  { %v4415_v24 = vpack.c.bf16 %v2080_v16, %v2078_v6  ;;  %v2051_v26 = vpop.permute.xlu1 %2050  ;;  %v2037_v29 = vpop.permute.xlu0 %2036  ;;  %v4413_v50 = vpack.c.bf16 %v2081_v17, %v2079_v15 }
 0x692   :  { %v2064_v8 = vsel %vm76_vm2, %v2035_v54, %v2051_v26  ;;  %v2072_v27 = vsel %vm76_vm2, %v2051_v26, %v2035_v54 }
 0x693   :  { %4414 = vmatprep.subr.bf16.mxu0 %v4413_v50  ;;  %v2082_v52 = vmul.f32 %v4880_v13, %v2072_v27  ;;  %v2083_v53 = vmul.f32 %v4877_v12, %v2064_v8 }
 0x694   :  { %4416 = vmatpush1.bf16.msra.mxu0 %v4415_v24 }
 0x695   :  { %v2039_v14 = vpop.permute.xlu1 %2038  ;;  %v2053_v36 = vpop.permute.xlu0 %2052 }
 0x696   :  { %v2065_v39 = vsel %vm76_vm2, %v2037_v29, %v2053_v36  ;;  %v2073_v40 = vsel %vm76_vm2, %v2053_v36, %v2037_v29 }
 0x697   :  { %v2084_v58 = vmul.f32 %v4880_v13, %v2073_v40  ;;  %v2085_v22 = vmul.f32 %v4877_v12, %v2065_v39 }
 0x699   :  { %v4419_v23 = vpack.c.bf16 %v2084_v58, %v2082_v52  ;;  %v2055_v30 = vpop.permute.xlu1 %2054  ;;  %v2041_v31 = vpop.permute.xlu0 %2040  ;;  %v4417_v35 = vpack.c.bf16 %v2085_v22, %v2083_v53  ;;  %v2167_v58 = vld [vmem:[%s6782_s9] sm:$0xff] }
 0x69a   :  { %v2066_v38 = vsel %vm76_vm2, %v2039_v14, %v2055_v30  ;;  %v2074_v42 = vsel %vm76_vm2, %v2055_v30, %v2039_v14 }
 0x69b   :  { %4418 = vmatprep.subr.bf16.mxu0 %v4417_v35  ;;  %v2086_v49 = vmul.f32 %v4880_v13, %v2074_v42  ;;  %v2087_v51 = vmul.f32 %v4877_v12, %v2066_v38 }
 0x69c   :  { %4420 = vmatpush1.bf16.msra.mxu0 %v4419_v23  ;;  %v2168_v23 = vld [vmem:[%s6782_s9 + $0x8] sm:$0xff] }
 0x69d   :  { %v2043_v43 = vpop.permute.xlu1 %2042  ;;  %v2057_v46 = vpop.permute.xlu0 %2056 }
 0x69e   :  { %v2067_v47 = vsel %vm76_vm2, %v2041_v31, %v2057_v46  ;;  %v2075_v48 = vsel %vm76_vm2, %v2057_v46, %v2041_v31  ;;  %v4208_v46 = vld [vmem:[%s6782_s9 + $0x40] sm:$0xff] }
 0x69f   :  { %v2088_v54 = vmul.f32 %v4880_v13, %v2075_v48  ;;  %v2089_v57 = vmul.f32 %v4877_v12, %v2067_v47 }
 0x6a1   :  { %v4423_v60 = vpack.c.bf16 %v2088_v54, %v2086_v49  ;;  %v2059_v5 = vpop.permute.xlu1 %2058  ;;  %v2045_v6 = vpop.permute.xlu0 %2044  ;;  %v4421_v15 = vpack.c.bf16 %v2089_v57, %v2087_v51 }
 0x6a2   :  { %v2068_v16 = vsel %vm76_vm2, %v2043_v43, %v2059_v5  ;;  %v2076_v17 = vsel %vm76_vm2, %v2059_v5, %v2043_v43 }
 0x6a3   :  { %4422 = vmatprep.subr.bf16.mxu0 %v4421_v15  ;;  %v2090_v8 = vmul.f32 %v4880_v13, %v2076_v17  ;;  %v2091_v27 = vmul.f32 %v4877_v12, %v2068_v16 }
 0x6a4   :  { %4424 = vmatpush1.bf16.msra.mxu0 %v4423_v60 }
 0x6a5   :  { %v5799_v24 = vpop.permute.xlu1 %2094  ;;  %v2061_v26 = vpop.permute.xlu0 %2060 }
 0x6a6   :  { %v2069_v29 = vsel %vm76_vm2, %v2045_v6, %v2061_v26  ;;  %v2077_v50 = vsel %vm76_vm2, %v2061_v26, %v2045_v6 }
 0x6a7   :  { %v2092_v14 = vmul.f32 %v4880_v13, %v2077_v50  ;;  %v2093_v36 = vmul.f32 %v4877_v12, %v2069_v29 }
 0x6a9   :  { %v4427_v39 = vpack.c.bf16 %v2092_v14, %v2090_v8  ;;  %v2097_v40 = vpop.permute.xlu0 %2096  ;;  %v4425_v52 = vpack.c.bf16 %v2093_v36, %v2091_v27  ;;  %v2111_v53 = vpop.permute.xlu1 %2110 }
 0x6aa   :  { %v2126_v3 = vsel %vm85_vm3, %v5799_v24, %v2111_v53 }
 0x6ab   :  { %4426 = vmatprep.subr.bf16.mxu0 %v4425_v52  ;;  %v2142_v42 = vmul.f32 %v4904_v25, %v2126_v3  ;;  %v4210_v52 = vld [vmem:[%s6782_s9 + $0x50] sm:$0xff] }
 0x6ac   :  { %4428 = vmatpush1.bf16.msra.mxu0 %v4427_v39 }
 0x6ad   :  { %4430 = vmatprep.subr.bf16.mxu0 %v4429_v44  ;;  %v2113_v22 = vpop.permute.xlu0 %2112  ;;  %v2099_v30 = vpop.permute.xlu1 %2098 }
 0x6ae   :  { %v2135_v37 = vsel %vm85_vm3, %v2113_v22, %v2097_v40 }
 0x6af   :  { %4216 = vmatmul.mubr.msk.f32.vlgmr.msra.gmra.mrb[20].mxu0 %vm1513_vm9, %v2167_v58  ;;  %v2145_v44 = vmul.f32 %v4889_v19, %v2135_v37  ;;  %v4211_v37 = vld [vmem:[%s6782_s9 + $0x58] sm:$0xff] }
 0x6b0   :  { %4432 = vmatpush1.bf16.msra.mxu0 %v4431_v41  ;;  %2269 = vmatprep.mubr.f32.mxu0 %v4763_v1  ;;  %v2134_v41 = vsel %vm85_vm3, %v2111_v53, %v5799_v24  ;;  %v4209_v24 = vld [vmem:[%s6782_s9 + $0x48] sm:$0xff] }
 0x6b1   :  { %4434 = vmatprep.subr.bf16.mxu0 %v4433_v9  ;;  %v2101_v32 = vpop.permute.xlu0 %2100  ;;  %v2115_v55 = vpop.permute.xlu1 %2114  ;;  %v2143_v56 = vmul.f32 %v4889_v19, %v2134_v41  ;;  %v2171_v9 = vld [vmem:[%s6782_s9 + $0x20] sm:$0xff]  ;;  %v4213_v41 = vld [vmem:[%s6782_s9 + $0x68] sm:$0xff] }
 0x6b2   :  { %v2136_v31 = vsel %vm85_vm3, %v2115_v55, %v2099_v30  ;;  %v2128_v47 = vsel %vm85_vm3, %v2099_v30, %v2115_v55  ;;  %v4215_v55 = vld [vmem:[%s6782_s9 + $0x78] sm:$0xff] }
 0x6b3   :  { %4217 = vmatmul.mubr.msk.f32.gmra.mrb[22].mxu0 %vm1513_vm9, %v2168_v23  ;;  %v2147_v48 = vmul.f32 %v4889_v19, %v2136_v31  ;;  %v2146_v16 = vmul.f32 %v4904_v25, %v2128_v47 }
 0x6b4   :  { %4436 = vmatpush1.bf16.msra.mxu0 %v4435_v0  ;;  %2275 = vmatprep.mubr.f32.mxu0 %v4763_v1  ;;  %v4445_v0 = vpack.c.bf16 %v2145_v44, %v2143_v56  ;;  %v4214_v44 = vld [vmem:[%s6782_s9 + $0x70] sm:$0xff]  ;;  %v4233_v56 = vld [vmem:[%s6782_s9 + $0x88] sm:$0xff] }
 0x6b5   :  { %4438 = vmatprep.subr.bf16.mxu0 %v4437_v28  ;;  %v2117_v34 = vpop.permute.xlu0 %2116  ;;  %v2103_v10 = vpop.permute.xlu1 %2102  ;;  %v2127_v28 = vsel %vm85_vm3, %v2097_v40, %v2113_v22 }
 0x6b6   :  { %v2137_v63 = vsel %vm85_vm3, %v2117_v34, %v2101_v32  ;;  %v2129_v35 = vsel %vm85_vm3, %v2101_v32, %v2117_v34  ;;  %v4212_v34 = vld [vmem:[%s6782_s9 + $0x60] sm:$0xff] }
 0x6b7   :  { %4218 = vmatmul.mubr.msk.f32.gmra.mrb[24].mxu0 %vm1513_vm9, %v2169_v18  ;;  %v2149_v38 = vmul.f32 %v4889_v19, %v2137_v63  ;;  %v2148_v54 = vmul.f32 %v4904_v25, %v2129_v35 }
 0x6b8   :  { %4440 = vmatpush1.bf16.msra.mxu0 %v4439_v11  ;;  %2281 = vmatprep.mubr.f32.mxu0 %v4763_v1  ;;  %v2173_v11 = vld [vmem:[%s6782_s9 + $0x30] sm:$0xff] }
 0x6b9   :  { %4442 = vmatprep.subr.bf16.mxu0 %v4441_v21  ;;  %v2105_v59 = vpop.permute.xlu0 %2104  ;;  %v2119_v62 = vpop.permute.xlu1 %2118  ;;  %v2144_v21 = vmul.f32 %v4904_v25, %v2127_v28  ;;  %v4449_v15 = vpack.c.bf16 %v2149_v38, %v2147_v48  ;;  %v4451_v50 = vpack.c.bf16 %v2148_v54, %v2146_v16 }
 0x6ba   :  { %v2138_v57 = vsel %vm85_vm3, %v2119_v62, %v2103_v10  ;;  %v2130_v26 = vsel %vm85_vm3, %v2103_v10, %v2119_v62  ;;  %v4237_v10 = vld [vmem:[%s6782_s9 + $0xa8] sm:$0xff] }
 0x6bb   :  { %4219 = vmatmul.mubr.msk.f32.gmra.mrb[26].mxu0 %vm1513_vm9, %v2170_v45  ;;  %v4447_v51 = vpack.c.bf16 %v2144_v21, %v2142_v42  ;;  %v2151_v29 = vmul.f32 %v4889_v19, %v2138_v57  ;;  %v2150_v40 = vmul.f32 %v4904_v25, %v2130_v26  ;;  %v4232_v45 = vld [vmem:[%s6782_s9 + $0x80] sm:$0xff] }
 0x6bc   :  { %4444 = vmatpush1.bf16.msra.mxu0 %v4443_v20  ;;  %2287 = vmatprep.mubr.f32.mxu0 %v4763_v1 }
 0x6bd   :  { %4446 = vmatprep.subr.bf16.mxu0 %v4445_v0  ;;  %v2121_v4 = vpop.permute.xlu0 %2120  ;;  %v2107_v20 = vpop.permute.xlu1 %2106  ;;  %v4235_v0 = vld [vmem:[%s6782_s9 + $0x98] sm:$0xff] }
 0x6be   :  { %v2139_v43 = vsel %vm85_vm3, %v2121_v4, %v2105_v59  ;;  %v2131_v60 = vsel %vm85_vm3, %v2105_v59, %v2121_v4  ;;  %v4234_v59 = vld [vmem:[%s6782_s9 + $0x90] sm:$0xff]  ;;  %v4239_v4 = vld [vmem:[%s6782_s9 + $0xb8] sm:$0xff] }
 0x6bf   :  { %4220 = vmatmul.mubr.msk.f32.gmra.mrb[28].mxu0 %vm1513_vm9, %v2171_v9  ;;  %v2153_v5 = vmul.f32 %v4889_v19, %v2139_v43  ;;  %v2152_v8 = vmul.f32 %v4904_v25, %v2131_v60  ;;  %v4236_v9 = vld [vmem:[%s6782_s9 + $0xa0] sm:$0xff] }
 0x6c0   :  { %2293 = vmatprep.mubr.f32.mxu0 %v4763_v1 }
 0x6c1   :  { %v2109_v33 = vpop.permute.xlu0 %2108  ;;  %v2123_v6 = vpop.permute.xlu1 %2122  ;;  %v4453_v39 = vpack.c.bf16 %v2153_v5, %v2151_v29  ;;  %v4455_v22 = vpack.c.bf16 %v2152_v8, %v2150_v40 }
 0x6c2   :  { %v2140_v27 = vsel %vm85_vm3, %v2123_v6, %v2107_v20  ;;  %v2132_v53 = vsel %vm85_vm3, %v2107_v20, %v2123_v6 }
 0x6c3   :  { %4221 = vmatmul.mubr.msk.f32.gmra.mrb[30].mxu0 %vm1513_vm9, %v2172_v61  ;;  %v2155_v58 = vmul.f32 %v4889_v19, %v2140_v27  ;;  %v2154_v32 = vmul.f32 %v4904_v25, %v2132_v53  ;;  %v4238_v61 = vld [vmem:[%s6782_s9 + $0xb0] sm:$0xff] }
 0x6c4   :  { %2299 = vmatprep.mubr.f32.mxu0 %v4763_v1 }
 0x6c5   :  { %v2125_v49 = vpop.permute.xlu0 %2124 }
 0x6c6   :  { %v2141_v17 = vsel %vm85_vm3, %v2125_v49, %v2109_v33  ;;  %v2133_v14 = vsel %vm85_vm3, %v2109_v33, %v2125_v49 }
 0x6c7   :  { %4222 = vmatmul.mubr.msk.f32.gmra.mrb[32].mxu0 %vm1513_vm9, %v2173_v11  ;;  %v2157_v36 = vmul.f32 %v4889_v19, %v2141_v17  ;;  %v2156_v23 = vmul.f32 %v4904_v25, %v2133_v14 }
 0x6c8   :  { %2305 = vmatprep.mubr.f32.mxu0 %v4763_v1 }
 0x6c9   :  { %v4457_v30 = vpack.c.bf16 %v2157_v36, %v2155_v58  ;;  %v4459_v18 = vpack.c.bf16 %v2156_v23, %v2154_v32 }
 0x6cb   :  { %4223 = vmatmul.mubr.msk.f32.gmra.mrb[34].mxu0 %vm1513_vm9, %v2174_v2 }
 0x6cc   :  { %2400 = vmatprep.mubr.f32.mxu0 %v4763_v1 }
 0x6cf   :  { %4224 = vmatmul.mubr.msk.f32.vlgmr.msra.gmra.mrb[20].mxu0 %vm1513_vm9, %v4208_v46 }
 0x6d0   :  { %4448 = vmatpush1.bf16.msra.mxu0 %v4447_v51  ;;  %2406 = vmatprep.mubr.f32.mxu0 %v4763_v1 }
 0x6d1   :  { %4450 = vmatprep.subr.bf16.mxu0 %v4449_v15 }
 0x6d2   :  { %v2622_v62 = vpop.permute.xlu1 %2621 }
 0x6d3   :  { %4225 = vmatmul.mubr.msk.f32.gmra.mrb[22].mxu0 %vm1513_vm9, %v4209_v24 }
 0x6d4   :  { %4452 = vmatpush1.bf16.msra.mxu0 %v4451_v50  ;;  %2412 = vmatprep.mubr.f32.mxu0 %v4763_v1 }
 0x6d5   :  { %4454 = vmatprep.subr.bf16.mxu0 %v4453_v39 }
 0x6d6   :  { %v2627_v3 = vpop.permute.xlu0 %2626  ;;  %v2632_v43 = vpop.permute.xlu1 %2631 }
 0x6d7   :  { %4226 = vmatmul.mubr.msk.f32.gmra.mrb[24].mxu0 %vm1513_vm9, %v4210_v52 }
 0x6d8   :  { %4456 = vmatpush1.bf16.msra.mxu0 %v4455_v22  ;;  %2418 = vmatprep.mubr.f32.mxu0 %v4763_v1 }
 0x6d9   :  { %4458 = vmatprep.subr.bf16.mxu0 %v4457_v30 }
 0x6da   :  { %v2637_v5 = vpop.permute.xlu0 %2636  ;;  %v2642_v29 = vpop.permute.xlu1 %2641 }
 0x6db   :  { %4227 = vmatmul.mubr.msk.f32.gmra.mrb[26].mxu0 %vm1513_vm9, %v4211_v37 }
 0x6dc   :  { %4460 = vmatpush1.bf16.msra.mxu0 %v4459_v18  ;;  %2424 = vmatprep.mubr.f32.mxu0 %v4763_v1 }
 0x6de   :  { %v2647_v53 = vpop.permute.xlu0 %2646  ;;  %v2652_v18 = vpop.permute.xlu1 %2651 }
 0x6df   :  { %4228 = vmatmul.mubr.msk.f32.gmra.mrb[28].mxu0 %vm1513_vm9, %v4212_v34 }
 0x6e0   :  { %2430 = vmatprep.mubr.f32.mxu0 %v4763_v1 }
 0x6e3   :  { %4229 = vmatmul.mubr.msk.f32.gmra.mrb[30].mxu0 %vm1513_vm9, %v4213_v41 }
 0x6e4   :  { %2436 = vmatprep.mubr.f32.mxu0 %v4763_v1 }
 0x6e7   :  { %4230 = vmatmul.mubr.msk.f32.gmra.mrb[32].mxu0 %vm1513_vm9, %v4214_v44 }
 0x6e8   :  { %2442 = vmatprep.mubr.f32.mxu0 %v4763_v1 }
 0x6eb   :  { %4231 = vmatmul.mubr.msk.f32.gmra.mrb[34].mxu0 %vm1513_vm9, %v4215_v55 }
 0x6ec   :  { %2546 = vmatprep.mubr.f32.mxu0 %v4763_v1 }
 0x6ef   :  { %4240 = vmatmul.mubr.msk.f32.vlgmr.msra.gmra.mrb[20].mxu0 %vm1513_vm9, %v4232_v45 }
 0x6f0   :  { %2552 = vmatprep.mubr.f32.mxu0 %v4763_v1 }
 0x6f3   :  { %4241 = vmatmul.mubr.msk.f32.gmra.mrb[22].mxu0 %vm1513_vm9, %v4233_v56 }
 0x6f4   :  { %2558 = vmatprep.mubr.f32.mxu0 %v4763_v1 }
 0x6f7   :  { %4242 = vmatmul.mubr.msk.f32.gmra.mrb[24].mxu0 %vm1513_vm9, %v4234_v59 }
 0x6f8   :  { %2564 = vmatprep.mubr.f32.mxu0 %v4763_v1 }
 0x6fb   :  { %4243 = vmatmul.mubr.msk.f32.gmra.mrb[26].mxu0 %vm1513_vm9, %v4235_v0 }
 0x6fc   :  { %2570 = vmatprep.mubr.f32.mxu0 %v4763_v1 }
 0x6ff   :  { %4244 = vmatmul.mubr.msk.f32.gmra.mrb[28].mxu0 %vm1513_vm9, %v4236_v9  ;;  %v2657_v9 = vpop.permute.xlu0 %2656 }
 0x700   :  { %2576 = vmatprep.mubr.f32.mxu0 %v4763_v1 }
 0x703   :  { %4245 = vmatmul.mubr.msk.f32.gmra.mrb[30].mxu0 %vm1513_vm9, %v4237_v10 }
 0x704   :  { %2582 = vmatprep.mubr.f32.mxu0 %v4763_v1 }
 0x707   :  { %4246 = vmatmul.mubr.msk.f32.gmra.mrb[32].mxu0 %vm1513_vm9, %v4238_v61 }
 0x708   :  { %2588 = vmatprep.mubr.f32.mxu0 %v4763_v1 }
 0x70b   :  { %4247 = vmatmul.mubr.msk.f32.gmra.mrb[34].mxu0 %vm1513_vm9, %v4239_v4 }
 0x70c   :  { %3585 = vmatprep.mubr.f32.mxu0 %v4763_v1 }
 0x7c2   :  { %v2548_v11 = vpop.f32.mrb[20].mxu0 }
 0x7c3   :  { %v2659_v28 = vadd.f32 %v2622_v62, %v2548_v11  ;;  %v2550_v33 = vpop.f32.mrb[21].mxu0 }
 0x7c4   :  { %v2660_v2 = vadd.f32 %v2622_v62, %v2550_v33 }
 0x7c5   :  { %v6003_v63 = vmax.f32 %v2659_v28, 0.0 }
 0x7c6   :  { %v2554_v20 = vpop.f32.mrb[22].mxu0  ;;  %v6007_v38 = vmax.f32 %v2660_v2, 0.0 }
 0x7c7   :  { %v2661_v21 = vadd.f32 %v2627_v3, %v2554_v20  ;;  %2691 = vrot.lane.b32.xlu1 %v6003_v63, %s4764_s24  ;;  %v2556_v31 = vpop.f32.mrb[23].mxu0  ;;  %v3272_v20 = vld [vmem:[%s6783_s12] sm:$0xff] }
 0x7c8   :  { %v2662_v35 = vadd.f32 %v2627_v3, %v2556_v31  ;;  %v3273_v31 = vld [vmem:[%s6783_s12 + $0x8] sm:$0xff] }
 0x7c9   :  { %v6009_v42 = vmax.f32 %v2661_v21, 0.0  ;;  %v3274_v21 = vld [vmem:[%s6783_s12 + $0x10] sm:$0xff] }
 0x7ca   :  { %v6011_v46 = vmax.f32 %v2662_v35, 0.0  ;;  %v2560_v47 = vpop.f32.mrb[24].mxu0  ;;  %v3276_v35 = vld [vmem:[%s6783_s12 + $0x20] sm:$0xff] }
 0x7cb   :  { %v4479_v48 = vpack.c.bf16 %v6009_v42, %v6003_v63  ;;  %v2663_v49 = vadd.f32 %v2632_v43, %v2560_v47  ;;  %2707 = vrot.lane.b32.xlu1 %v6007_v38, %s4764_s24  ;;  %v2562_v51 = vpop.f32.mrb[25].mxu0  ;;  %2693 = vrot.lane.b32.xlu0 %v6009_v42, %s4764_s24  ;;  %v3278_v47 = vld [vmem:[%s6783_s12 + $0x30] sm:$0xff] }
 0x7cc   :  { %v4477_v54 = vpack.c.bf16 %v6011_v46, %v6007_v38  ;;  %v2664_v60 = vadd.f32 %v2632_v43, %v2562_v51  ;;  %v3275_v43 = vld [vmem:[%s6783_s12 + $0x18] sm:$0xff] }
 0x7cd   :  { %v6021_v57 = vmax.f32 %v2663_v49, 0.0  ;;  %v3277_v49 = vld [vmem:[%s6783_s12 + $0x28] sm:$0xff]  ;;  %v3279_v51 = vld [vmem:[%s6783_s12 + $0x38] sm:$0xff] }
 0x7ce   :  { %v2566_v6 = vpop.f32.mrb[26].mxu0  ;;  %v6027_v24 = vmax.f32 %v2664_v60, 0.0 }
 0x7cf   :  { %v2665_v15 = vadd.f32 %v2637_v5, %v2566_v6  ;;  %2695 = vrot.lane.b32.xlu1 %v6021_v57, %s4764_s24  ;;  %v2568_v16 = vpop.f32.mrb[27].mxu0  ;;  %2709 = vrot.lane.b32.xlu0 %v6011_v46, %s4764_s24 }
 0x7d0   :  { %v2666_v17 = vadd.f32 %v2637_v5, %v2568_v16 }
 0x7d1   :  { %v6029_v26 = vmax.f32 %v2665_v15, 0.0 }
 0x7d2   :  { %v6031_v50 = vmax.f32 %v2666_v17, 0.0  ;;  %v2572_v8 = vpop.f32.mrb[28].mxu0 }
 0x7d3   :  { %v4483_v27 = vpack.c.bf16 %v6029_v26, %v6021_v57  ;;  %v2667_v14 = vadd.f32 %v2642_v29, %v2572_v8  ;;  %2711 = vrot.lane.b32.xlu1 %v6027_v24, %s4764_s24  ;;  %v2574_v36 = vpop.f32.mrb[29].mxu0  ;;  %2697 = vrot.lane.b32.xlu0 %v6029_v26, %s4764_s24 }
 0x7d4   :  { %v4481_v39 = vpack.c.bf16 %v6031_v50, %v6027_v24  ;;  %v2668_v52 = vadd.f32 %v2642_v29, %v2574_v36 }
 0x7d5   :  { %v6041_v40 = vmax.f32 %v2667_v14, 0.0 }
 0x7d6   :  { %v2578_v58 = vpop.f32.mrb[30].mxu0  ;;  %v6047_v32 = vmax.f32 %v2668_v52, 0.0 }
 0x7d7   :  { %v2669_v22 = vadd.f32 %v2647_v53, %v2578_v58  ;;  %2699 = vrot.lane.b32.xlu1 %v6041_v40, %s4764_s24  ;;  %v2580_v23 = vpop.f32.mrb[31].mxu0  ;;  %2713 = vrot.lane.b32.xlu0 %v6031_v50, %s4764_s24 }
 0x7d8   :  { %v2670_v30 = vadd.f32 %v2647_v53, %v2580_v23 }
 0x7d9   :  { %v6049_v37 = vmax.f32 %v2669_v22, 0.0 }
 0x7da   :  { %v6051_v34 = vmax.f32 %v2670_v30, 0.0  ;;  %v2584_v41 = vpop.f32.mrb[32].mxu0 }
 0x7db   :  { %v4487_v44 = vpack.c.bf16 %v6049_v37, %v6041_v40  ;;  %v2671_v55 = vadd.f32 %v2652_v18, %v2584_v41  ;;  %2715 = vrot.lane.b32.xlu1 %v6047_v32, %s4764_s24  ;;  %v2586_v45 = vpop.f32.mrb[33].mxu0  ;;  %2701 = vrot.lane.b32.xlu0 %v6049_v37, %s4764_s24 }
 0x7dc   :  { %v4485_v56 = vpack.c.bf16 %v6051_v34, %v6047_v32  ;;  %v2672_v0 = vadd.f32 %v2652_v18, %v2586_v45 }
 0x7dd   :  { %v6061_v59 = vmax.f32 %v2671_v55, 0.0 }
 0x7de   :  { %v2590_v10 = vpop.f32.mrb[34].mxu0  ;;  %v6067_v11 = vmax.f32 %v2672_v0, 0.0 }
 0x7df   :  { %v2673_v61 = vadd.f32 %v2657_v9, %v2590_v10  ;;  %2703 = vrot.lane.b32.xlu1 %v6061_v59, %s4764_s24  ;;  %v2592_v4 = vpop.f32.mrb[35].mxu0  ;;  %2717 = vrot.lane.b32.xlu0 %v6051_v34, %s4764_s24 }
 0x7e0   :  { %v2674_v62 = vadd.f32 %v2657_v9, %v2592_v4 }
 0x7e1   :  { %v6069_v28 = vmax.f32 %v2673_v61, 0.0 }
 0x7e2   :  { %v6071_v33 = vmax.f32 %v2674_v62, 0.0 }
 0x7e3   :  { %v4491_v2 = vpack.c.bf16 %v6069_v28, %v6061_v59  ;;  %2719 = vrot.lane.b32.xlu1 %v6067_v11, %s4764_s24  ;;  %2705 = vrot.lane.b32.xlu0 %v6069_v28, %s4764_s24 }
 0x7e4   :  { %v4489_v3 = vpack.c.bf16 %v6071_v33, %v6067_v11 }
 0x7e7   :  { %2755 = vrot.lane.b32.xlu1 %v6003_v63, %s4765_s25  ;;  %2721 = vrot.lane.b32.xlu0 %v6071_v33, %s4764_s24  ;;  %v2830_v63 = vld [vmem:[%s6784_s11 + $0x10] sm:$0xff] }
 0x7eb   :  { %2771 = vrot.lane.b32.xlu1 %v6007_v38, %s4765_s25  ;;  %2757 = vrot.lane.b32.xlu0 %v6009_v42, %s4765_s25 }
 0x7ef   :  { %2759 = vrot.lane.b32.xlu1 %v6021_v57, %s4765_s25  ;;  %2773 = vrot.lane.b32.xlu0 %v6011_v46, %s4765_s25  ;;  %v2831_v57 = vld [vmem:[%s6784_s11 + $0x18] sm:$0xff] }
 0x7f3   :  { %2775 = vrot.lane.b32.xlu1 %v6027_v24, %s4765_s25  ;;  %2761 = vrot.lane.b32.xlu0 %v6029_v26, %s4765_s25 }
 0x7f7   :  { %2763 = vrot.lane.b32.xlu1 %v6041_v40, %s4765_s25  ;;  %2777 = vrot.lane.b32.xlu0 %v6031_v50, %s4765_s25 }
 0x7fb   :  { %2779 = vrot.lane.b32.xlu1 %v6047_v32, %s4765_s25  ;;  %2765 = vrot.lane.b32.xlu0 %v6049_v37, %s4765_s25  ;;  %v2833_v32 = vld [vmem:[%s6784_s11 + $0x28] sm:$0xff] }
 0x7ff   :  { %2767 = vrot.lane.b32.xlu1 %v6061_v59, %s4765_s25  ;;  %2781 = vrot.lane.b32.xlu0 %v6051_v34, %s4765_s25 }
 0x803   :  { %2783 = vrot.lane.b32.xlu1 %v6067_v11, %s4765_s25  ;;  %2769 = vrot.lane.b32.xlu0 %v6069_v28, %s4765_s25  ;;  %v2835_v28 = vld [vmem:[%s6784_s11 + $0x38] sm:$0xff] }
 0x807   :  { %3282 = vperm.xlu1 %4762, %v3272_v20   ;;  %2785 = vrot.lane.b32.xlu0 %v6071_v33, %s4765_s25 }
 0x80b   :  { %3292 = vperm.xlu1 %4762, %v3274_v21   ;;  %3287 = vperm.xlu0 %4761, %v3273_v31  }
 0x80f   :  { %3302 = vperm.xlu1 %4762, %v3276_v35   ;;  %3297 = vperm.xlu0 %4761, %v3275_v43  }
 0x813   :  { %3312 = vperm.xlu1 %4762, %v3278_v47   ;;  %3307 = vperm.xlu0 %4761, %v3277_v49  }
 0x817   :  { %3317 = vperm.xlu0 %4761, %v3279_v51  }
 0x839   :  { %v2692_v60 = vpop.permute.xlu1 %2691 }
 0x83d   :  { %v2708_v5 = vpop.permute.xlu1 %2707  ;;  %v2694_v6 = vpop.permute.xlu0 %2693 }
 0x83e   :  { %v2723_v15 = vsel %vm76_vm2, %v2692_v60, %v2708_v5  ;;  %v2731_v16 = vsel %vm76_vm2, %v2708_v5, %v2692_v60 }
 0x83f   :  { %v2739_v36 = vmul.f32 %v4880_v13, %v2731_v16  ;;  %v2740_v52 = vmul.f32 %v4877_v12, %v2723_v15 }
 0x841   :  { %v2696_v17 = vpop.permute.xlu1 %2695  ;;  %v2710_v29 = vpop.permute.xlu0 %2709 }
 0x842   :  { %v2724_v8 = vsel %vm76_vm2, %v2694_v6, %v2710_v29  ;;  %v2732_v14 = vsel %vm76_vm2, %v2710_v29, %v2694_v6 }
 0x843   :  { %v2741_v53 = vmul.f32 %v4880_v13, %v2732_v14  ;;  %v2742_v58 = vmul.f32 %v4877_v12, %v2724_v8 }
 0x845   :  { %v4463_v22 = vpack.c.bf16 %v2741_v53, %v2739_v36  ;;  %v2712_v23 = vpop.permute.xlu1 %2711  ;;  %v2698_v30 = vpop.permute.xlu0 %2697  ;;  %v4461_v18 = vpack.c.bf16 %v2742_v58, %v2740_v52 }
 0x846   :  { %v2725_v41 = vsel %vm76_vm2, %v2696_v17, %v2712_v23  ;;  %v2733_v55 = vsel %vm76_vm2, %v2712_v23, %v2696_v17 }
 0x847   :  { %4462 = vmatprep.subr.bf16.mxu1 %v4461_v18  ;;  %v2743_v61 = vmul.f32 %v4880_v13, %v2733_v55  ;;  %v2744_v4 = vmul.f32 %v4877_v12, %v2725_v41 }
 0x848   :  { %4464 = vmatpush1.bf16.msra.mxu1 %v4463_v22 }
 0x849   :  { %v2700_v45 = vpop.permute.xlu1 %2699  ;;  %v2714_v0 = vpop.permute.xlu0 %2713 }
 0x84a   :  { %v2726_v9 = vsel %vm76_vm2, %v2698_v30, %v2714_v0  ;;  %v2734_v10 = vsel %vm76_vm2, %v2714_v0, %v2698_v30 }
 0x84b   :  { %v2745_v62 = vmul.f32 %v4880_v13, %v2734_v10  ;;  %v2746_v20 = vmul.f32 %v4877_v12, %v2726_v9 }
 0x84d   :  { %v4467_v21 = vpack.c.bf16 %v2745_v62, %v2743_v61  ;;  %v2716_v31 = vpop.permute.xlu1 %2715  ;;  %v2702_v35 = vpop.permute.xlu0 %2701  ;;  %v4465_v43 = vpack.c.bf16 %v2746_v20, %v2744_v4  ;;  %v2828_v62 = vld [vmem:[%s6784_s11] sm:$0xff] }
 0x84e   :  { %v2727_v47 = vsel %vm76_vm2, %v2700_v45, %v2716_v31  ;;  %v2735_v49 = vsel %vm76_vm2, %v2716_v31, %v2700_v45 }
 0x84f   :  { %4466 = vmatprep.subr.bf16.mxu1 %v4465_v43  ;;  %v2747_v15 = vmul.f32 %v4880_v13, %v2735_v49  ;;  %v2748_v16 = vmul.f32 %v4877_v12, %v2727_v47 }
 0x850   :  { %4468 = vmatpush1.bf16.msra.mxu1 %v4467_v21  ;;  %v2829_v21 = vld [vmem:[%s6784_s11 + $0x8] sm:$0xff] }
 0x851   :  { %v2704_v51 = vpop.permute.xlu1 %2703  ;;  %v2718_v60 = vpop.permute.xlu0 %2717 }
 0x852   :  { %v2728_v5 = vsel %vm76_vm2, %v2702_v35, %v2718_v60  ;;  %v2736_v6 = vsel %vm76_vm2, %v2718_v60, %v2702_v35  ;;  %v4248_v60 = vld [vmem:[%s6784_s11 + $0x40] sm:$0xff] }
 0x853   :  { %v2749_v17 = vmul.f32 %v4880_v13, %v2736_v6  ;;  %v2750_v29 = vmul.f32 %v4877_v12, %v2728_v5 }
 0x855   :  { %v4471_v8 = vpack.c.bf16 %v2749_v17, %v2747_v15  ;;  %v2720_v14 = vpop.permute.xlu1 %2719  ;;  %v2706_v36 = vpop.permute.xlu0 %2705  ;;  %v4469_v52 = vpack.c.bf16 %v2750_v29, %v2748_v16 }
 0x856   :  { %v2729_v53 = vsel %vm76_vm2, %v2704_v51, %v2720_v14  ;;  %v2737_v58 = vsel %vm76_vm2, %v2720_v14, %v2704_v51 }
 0x857   :  { %4470 = vmatprep.subr.bf16.mxu1 %v4469_v52  ;;  %v2751_v41 = vmul.f32 %v4880_v13, %v2737_v58  ;;  %v2752_v55 = vmul.f32 %v4877_v12, %v2729_v53 }
 0x858   :  { %4472 = vmatpush1.bf16.msra.mxu1 %v4471_v8 }
 0x859   :  { %v6179_v22 = vpop.permute.xlu1 %2755  ;;  %v2722_v23 = vpop.permute.xlu0 %2721 }
 0x85a   :  { %v2730_v30 = vsel %vm76_vm2, %v2706_v36, %v2722_v23  ;;  %v2738_v18 = vsel %vm76_vm2, %v2722_v23, %v2706_v36 }
 0x85b   :  { %v2753_v45 = vmul.f32 %v4880_v13, %v2738_v18  ;;  %v2754_v0 = vmul.f32 %v4877_v12, %v2730_v30 }
 0x85d   :  { %v4475_v9 = vpack.c.bf16 %v2753_v45, %v2751_v41  ;;  %v2758_v10 = vpop.permute.xlu0 %2757  ;;  %v4473_v61 = vpack.c.bf16 %v2754_v0, %v2752_v55  ;;  %v2772_v4 = vpop.permute.xlu1 %2771 }
 0x85e   :  { %v2787_v33 = vsel %vm85_vm3, %v6179_v22, %v2772_v4 }
 0x85f   :  { %4474 = vmatprep.subr.bf16.mxu1 %v4473_v61  ;;  %v2803_v49 = vmul.f32 %v4904_v25, %v2787_v33  ;;  %v4250_v61 = vld [vmem:[%s6784_s11 + $0x50] sm:$0xff] }
 0x860   :  { %4476 = vmatpush1.bf16.msra.mxu1 %v4475_v9 }
 0x861   :  { %4478 = vmatprep.subr.bf16.mxu1 %v4477_v54  ;;  %v2774_v20 = vpop.permute.xlu0 %2773  ;;  %v2760_v31 = vpop.permute.xlu1 %2759 }
 0x862   :  { %v2796_v46 = vsel %vm85_vm3, %v2774_v20, %v2758_v10 }
 0x863   :  { %4256 = vmatmul.mubr.msk.f32.vlgmr.msra.gmra.mrb[40].mxu1 %vm1513_vm9, %v2828_v62  ;;  %v2806_v54 = vmul.f32 %v4889_v19, %v2796_v46  ;;  %v4251_v46 = vld [vmem:[%s6784_s11 + $0x58] sm:$0xff] }
 0x864   :  { %4480 = vmatpush1.bf16.msra.mxu1 %v4479_v48  ;;  %2930 = vmatprep.mubr.f32.mxu1 %v4763_v1  ;;  %v2795_v48 = vsel %vm85_vm3, %v2772_v4, %v6179_v22  ;;  %v4249_v22 = vld [vmem:[%s6784_s11 + $0x48] sm:$0xff] }
 0x865   :  { %4482 = vmatprep.subr.bf16.mxu1 %v4481_v39  ;;  %v2762_v38 = vpop.permute.xlu0 %2761  ;;  %v2776_v24 = vpop.permute.xlu1 %2775  ;;  %v2804_v26 = vmul.f32 %v4889_v19, %v2795_v48  ;;  %v2832_v39 = vld [vmem:[%s6784_s11 + $0x20] sm:$0xff]  ;;  %v4253_v48 = vld [vmem:[%s6784_s11 + $0x68] sm:$0xff] }
 0x866   :  { %v2797_v35 = vsel %vm85_vm3, %v2776_v24, %v2760_v31  ;;  %v2789_v5 = vsel %vm85_vm3, %v2760_v31, %v2776_v24  ;;  %v4255_v24 = vld [vmem:[%s6784_s11 + $0x78] sm:$0xff] }
 0x867   :  { %4257 = vmatmul.mubr.msk.f32.gmra.mrb[42].mxu1 %vm1513_vm9, %v2829_v21  ;;  %v2808_v6 = vmul.f32 %v4889_v19, %v2797_v35  ;;  %v2807_v53 = vmul.f32 %v4904_v25, %v2789_v5 }
 0x868   :  { %4484 = vmatpush1.bf16.msra.mxu1 %v4483_v27  ;;  %2936 = vmatprep.mubr.f32.mxu1 %v4763_v1  ;;  %v4493_v27 = vpack.c.bf16 %v2806_v54, %v2804_v26  ;;  %v4254_v54 = vld [vmem:[%s6784_s11 + $0x70] sm:$0xff]  ;;  %v4273_v26 = vld [vmem:[%s6784_s11 + $0x88] sm:$0xff] }
 0x869   :  { %4486 = vmatprep.subr.bf16.mxu1 %v4485_v56  ;;  %v2778_v42 = vpop.permute.xlu0 %2777  ;;  %v2764_v40 = vpop.permute.xlu1 %2763  ;;  %v2788_v56 = vsel %vm85_vm3, %v2758_v10, %v2774_v20 }
 0x86a   :  { %v2798_v11 = vsel %vm85_vm3, %v2778_v42, %v2762_v38  ;;  %v2790_v43 = vsel %vm85_vm3, %v2762_v38, %v2778_v42  ;;  %v4252_v42 = vld [vmem:[%s6784_s11 + $0x60] sm:$0xff] }
 0x86b   :  { %4258 = vmatmul.mubr.msk.f32.gmra.mrb[44].mxu1 %vm1513_vm9, %v2830_v63  ;;  %v2810_v47 = vmul.f32 %v4889_v19, %v2798_v11  ;;  %v2809_v17 = vmul.f32 %v4904_v25, %v2790_v43 }
 0x86c   :  { %4488 = vmatpush1.bf16.msra.mxu1 %v4487_v44  ;;  %2942 = vmatprep.mubr.f32.mxu1 %v4763_v1  ;;  %v2834_v44 = vld [vmem:[%s6784_s11 + $0x30] sm:$0xff] }
 0x86d   :  { %4490 = vmatprep.subr.bf16.mxu1 %v4489_v3  ;;  %v2766_v50 = vpop.permute.xlu0 %2765  ;;  %v2780_v34 = vpop.permute.xlu1 %2779  ;;  %v2805_v3 = vmul.f32 %v4904_v25, %v2788_v56  ;;  %v4497_v52 = vpack.c.bf16 %v2810_v47, %v2808_v6  ;;  %v4499_v18 = vpack.c.bf16 %v2809_v17, %v2807_v53 }
 0x86e   :  { %v2799_v29 = vsel %vm85_vm3, %v2780_v34, %v2764_v40  ;;  %v2791_v23 = vsel %vm85_vm3, %v2764_v40, %v2780_v34  ;;  %v4277_v40 = vld [vmem:[%s6784_s11 + $0xa8] sm:$0xff] }
 0x86f   :  { %4259 = vmatmul.mubr.msk.f32.gmra.mrb[46].mxu1 %vm1513_vm9, %v2831_v57  ;;  %v4495_v16 = vpack.c.bf16 %v2805_v3, %v2803_v49  ;;  %v2812_v30 = vmul.f32 %v4889_v19, %v2799_v29  ;;  %v2811_v10 = vmul.f32 %v4904_v25, %v2791_v23  ;;  %v4272_v57 = vld [vmem:[%s6784_s11 + $0x80] sm:$0xff] }
 0x870   :  { %4492 = vmatpush1.bf16.msra.mxu1 %v4491_v2  ;;  %2948 = vmatprep.mubr.f32.mxu1 %v4763_v1 }
 0x871   :  { %4494 = vmatprep.subr.bf16.mxu1 %v4493_v27  ;;  %v2782_v37 = vpop.permute.xlu0 %2781  ;;  %v2768_v2 = vpop.permute.xlu1 %2767  ;;  %v4275_v27 = vld [vmem:[%s6784_s11 + $0x98] sm:$0xff] }
 0x872   :  { %v2800_v51 = vsel %vm85_vm3, %v2782_v37, %v2766_v50  ;;  %v2792_v8 = vsel %vm85_vm3, %v2766_v50, %v2782_v37  ;;  %v4274_v50 = vld [vmem:[%s6784_s11 + $0x90] sm:$0xff]  ;;  %v4279_v37 = vld [vmem:[%s6784_s11 + $0xb8] sm:$0xff] }
 0x873   :  { %4260 = vmatmul.mubr.msk.f32.gmra.mrb[48].mxu1 %vm1513_vm9, %v2832_v39  ;;  %v2814_v14 = vmul.f32 %v4889_v19, %v2800_v51  ;;  %v2813_v41 = vmul.f32 %v4904_v25, %v2792_v8  ;;  %v4276_v39 = vld [vmem:[%s6784_s11 + $0xa0] sm:$0xff] }
 0x874   :  { %2954 = vmatprep.mubr.f32.mxu1 %v4763_v1 }
 0x875   :  { %v2770_v59 = vpop.permute.xlu0 %2769  ;;  %v2784_v36 = vpop.permute.xlu1 %2783  ;;  %v4501_v9 = vpack.c.bf16 %v2814_v14, %v2812_v30  ;;  %v4503_v20 = vpack.c.bf16 %v2813_v41, %v2811_v10 }
 0x876   :  { %v2801_v55 = vsel %vm85_vm3, %v2784_v36, %v2768_v2  ;;  %v2793_v4 = vsel %vm85_vm3, %v2768_v2, %v2784_v36 }
 0x877   :  { %4261 = vmatmul.mubr.msk.f32.gmra.mrb[50].mxu1 %vm1513_vm9, %v2833_v32  ;;  %v2816_v62 = vmul.f32 %v4889_v19, %v2801_v55  ;;  %v2815_v38 = vmul.f32 %v4904_v25, %v2793_v4  ;;  %v4278_v32 = vld [vmem:[%s6784_s11 + $0xb0] sm:$0xff] }
 0x878   :  { %2960 = vmatprep.mubr.f32.mxu1 %v4763_v1 }
 0x879   :  { %v2786_v15 = vpop.permute.xlu0 %2785 }
 0x87a   :  { %v2802_v58 = vsel %vm85_vm3, %v2786_v15, %v2770_v59  ;;  %v2794_v45 = vsel %vm85_vm3, %v2770_v59, %v2786_v15 }
 0x87b   :  { %4262 = vmatmul.mubr.msk.f32.gmra.mrb[52].mxu1 %vm1513_vm9, %v2834_v44  ;;  %v2818_v0 = vmul.f32 %v4889_v19, %v2802_v58  ;;  %v2817_v21 = vmul.f32 %v4904_v25, %v2794_v45 }
 0x87c   :  { %2966 = vmatprep.mubr.f32.mxu1 %v4763_v1 }
 0x87d   :  { %v4505_v31 = vpack.c.bf16 %v2818_v0, %v2816_v62  ;;  %v4507_v63 = vpack.c.bf16 %v2817_v21, %v2815_v38 }
 0x87f   :  { %4263 = vmatmul.mubr.msk.f32.gmra.mrb[54].mxu1 %vm1513_vm9, %v2835_v28 }
 0x880   :  { %3061 = vmatprep.mubr.f32.mxu1 %v4763_v1 }
 0x883   :  { %4264 = vmatmul.mubr.msk.f32.vlgmr.msra.gmra.mrb[40].mxu1 %vm1513_vm9, %v4248_v60 }
 0x884   :  { %4496 = vmatpush1.bf16.msra.mxu1 %v4495_v16  ;;  %3067 = vmatprep.mubr.f32.mxu1 %v4763_v1 }
 0x885   :  { %4498 = vmatprep.subr.bf16.mxu1 %v4497_v52 }
 0x886   :  { %v3283_v34 = vpop.permute.xlu1 %3282 }
 0x887   :  { %4265 = vmatmul.mubr.msk.f32.gmra.mrb[42].mxu1 %vm1513_vm9, %v4249_v22 }
 0x888   :  { %4500 = vmatpush1.bf16.msra.mxu1 %v4499_v18  ;;  %3073 = vmatprep.mubr.f32.mxu1 %v4763_v1 }
 0x889   :  { %4502 = vmatprep.subr.bf16.mxu1 %v4501_v9 }
 0x88a   :  { %v3288_v33 = vpop.permute.xlu0 %3287  ;;  %v3293_v51 = vpop.permute.xlu1 %3292 }
 0x88b   :  { %4266 = vmatmul.mubr.msk.f32.gmra.mrb[44].mxu1 %vm1513_vm9, %v4250_v61 }
 0x88c   :  { %4504 = vmatpush1.bf16.msra.mxu1 %v4503_v20  ;;  %3079 = vmatprep.mubr.f32.mxu1 %v4763_v1 }
 0x88d   :  { %4506 = vmatprep.subr.bf16.mxu1 %v4505_v31 }
 0x88e   :  { %v3298_v14 = vpop.permute.xlu0 %3297  ;;  %v3303_v30 = vpop.permute.xlu1 %3302 }
 0x88f   :  { %4267 = vmatmul.mubr.msk.f32.gmra.mrb[46].mxu1 %vm1513_vm9, %v4251_v46 }
 0x890   :  { %4508 = vmatpush1.bf16.msra.mxu1 %v4507_v63  ;;  %3085 = vmatprep.mubr.f32.mxu1 %v4763_v1 }
 0x892   :  { %v3308_v4 = vpop.permute.xlu0 %3307  ;;  %v3313_v63 = vpop.permute.xlu1 %3312 }
 0x893   :  { %4268 = vmatmul.mubr.msk.f32.gmra.mrb[48].mxu1 %vm1513_vm9, %v4252_v42 }
 0x894   :  { %3091 = vmatprep.mubr.f32.mxu1 %v4763_v1 }
 0x897   :  { %4269 = vmatmul.mubr.msk.f32.gmra.mrb[50].mxu1 %vm1513_vm9, %v4253_v48 }
 0x898   :  { %3097 = vmatprep.mubr.f32.mxu1 %v4763_v1 }
 0x89b   :  { %4270 = vmatmul.mubr.msk.f32.gmra.mrb[52].mxu1 %vm1513_vm9, %v4254_v54 }
 0x89c   :  { %3103 = vmatprep.mubr.f32.mxu1 %v4763_v1 }
 0x89f   :  { %4271 = vmatmul.mubr.msk.f32.gmra.mrb[54].mxu1 %vm1513_vm9, %v4255_v24 }
 0x8a0   :  { %3207 = vmatprep.mubr.f32.mxu1 %v4763_v1 }
 0x8a3   :  { %4280 = vmatmul.mubr.msk.f32.vlgmr.msra.gmra.mrb[40].mxu1 %vm1513_vm9, %v4272_v57 }
 0x8a4   :  { %3213 = vmatprep.mubr.f32.mxu1 %v4763_v1 }
 0x8a7   :  { %4281 = vmatmul.mubr.msk.f32.gmra.mrb[42].mxu1 %vm1513_vm9, %v4273_v26 }
 0x8a8   :  { %3219 = vmatprep.mubr.f32.mxu1 %v4763_v1 }
 0x8ab   :  { %4282 = vmatmul.mubr.msk.f32.gmra.mrb[44].mxu1 %vm1513_vm9, %v4274_v50 }
 0x8ac   :  { %3225 = vmatprep.mubr.f32.mxu1 %v4763_v1 }
 0x8af   :  { %4283 = vmatmul.mubr.msk.f32.gmra.mrb[46].mxu1 %vm1513_vm9, %v4275_v27 }
 0x8b0   :  { %3231 = vmatprep.mubr.f32.mxu1 %v4763_v1 }
 0x8b3   :  { %4284 = vmatmul.mubr.msk.f32.gmra.mrb[48].mxu1 %vm1513_vm9, %v4276_v39  ;;  %v3318_v39 = vpop.permute.xlu0 %3317 }
 0x8b4   :  { %3237 = vmatprep.mubr.f32.mxu1 %v4763_v1 }
 0x8b7   :  { %4285 = vmatmul.mubr.msk.f32.gmra.mrb[50].mxu1 %vm1513_vm9, %v4277_v40 }
 0x8b8   :  { %3243 = vmatprep.mubr.f32.mxu1 %v4763_v1 }
 0x8bb   :  { %4286 = vmatmul.mubr.msk.f32.gmra.mrb[52].mxu1 %vm1513_vm9, %v4278_v32 }
 0x8bc   :  { %3249 = vmatprep.mubr.f32.mxu1 %v4763_v1 }
 0x8bf   :  { %4287 = vmatmul.mubr.msk.f32.gmra.mrb[54].mxu1 %vm1513_vm9, %v4279_v37 }
 0x8c0   :  { %4081 = vmatprep.mubr.f32.mxu1 %v4763_v1 }
 0x976   :  { %v3209_v44 = vpop.f32.mrb[40].mxu1 }
 0x977   :  { %v3320_v56 = vadd.f32 %v3283_v34, %v3209_v44  ;;  %v3211_v59 = vpop.f32.mrb[41].mxu1 }
 0x978   :  { %v3321_v28 = vadd.f32 %v3283_v34, %v3211_v59 }
 0x979   :  { %v6383_v11 = vmax.f32 %v3320_v56, 0.0 }
 0x97a   :  { %v3215_v2 = vpop.f32.mrb[42].mxu1  ;;  %v6387_v47 = vmax.f32 %v3321_v28, 0.0 }
 0x97b   :  { %v3322_v3 = vadd.f32 %v3288_v33, %v3215_v2  ;;  %3352 = vrot.lane.b32.xlu1 %v6383_v11, %s4764_s24  ;;  %v3217_v35 = vpop.f32.mrb[43].mxu1  ;;  %v3933_v2 = vld [vmem:[%s6785_s14] sm:$0xff] }
 0x97c   :  { %v3323_v43 = vadd.f32 %v3288_v33, %v3217_v35  ;;  %v3934_v35 = vld [vmem:[%s6785_s14 + $0x8] sm:$0xff] }
 0x97d   :  { %v6389_v49 = vmax.f32 %v3322_v3, 0.0  ;;  %v3935_v3 = vld [vmem:[%s6785_s14 + $0x10] sm:$0xff] }
 0x97e   :  { %v6391_v60 = vmax.f32 %v3323_v43, 0.0  ;;  %v3221_v5 = vpop.f32.mrb[44].mxu1  ;;  %v3937_v43 = vld [vmem:[%s6785_s14 + $0x20] sm:$0xff] }
 0x97f   :  { %v4527_v6 = vpack.c.bf16 %v6389_v49, %v6383_v11  ;;  %v3324_v15 = vadd.f32 %v3293_v51, %v3221_v5  ;;  %3368 = vrot.lane.b32.xlu1 %v6387_v47, %s4764_s24  ;;  %v3223_v16 = vpop.f32.mrb[45].mxu1  ;;  %3354 = vrot.lane.b32.xlu0 %v6389_v49, %s4764_s24  ;;  %v3939_v5 = vld [vmem:[%s6785_s14 + $0x30] sm:$0xff] }
 0x980   :  { %v4525_v17 = vpack.c.bf16 %v6391_v60, %v6387_v47  ;;  %v3325_v8 = vadd.f32 %v3293_v51, %v3223_v16  ;;  %v3936_v51 = vld [vmem:[%s6785_s14 + $0x18] sm:$0xff] }
 0x981   :  { %v6401_v29 = vmax.f32 %v3324_v15, 0.0  ;;  %v3938_v15 = vld [vmem:[%s6785_s14 + $0x28] sm:$0xff]  ;;  %v3940_v16 = vld [vmem:[%s6785_s14 + $0x38] sm:$0xff] }
 0x982   :  { %v3227_v36 = vpop.f32.mrb[46].mxu1  ;;  %v6407_v22 = vmax.f32 %v3325_v8, 0.0 }
 0x983   :  { %v3326_v52 = vadd.f32 %v3298_v14, %v3227_v36  ;;  %3356 = vrot.lane.b32.xlu1 %v6401_v29, %s4764_s24  ;;  %v3229_v53 = vpop.f32.mrb[47].mxu1  ;;  %3370 = vrot.lane.b32.xlu0 %v6391_v60, %s4764_s24 }
 0x984   :  { %v3327_v58 = vadd.f32 %v3298_v14, %v3229_v53 }
 0x985   :  { %v6409_v23 = vmax.f32 %v3326_v52, 0.0 }
 0x986   :  { %v6411_v18 = vmax.f32 %v3327_v58, 0.0  ;;  %v3233_v41 = vpop.f32.mrb[48].mxu1 }
 0x987   :  { %v4531_v55 = vpack.c.bf16 %v6409_v23, %v6401_v29  ;;  %v3328_v45 = vadd.f32 %v3303_v30, %v3233_v41  ;;  %3372 = vrot.lane.b32.xlu1 %v6407_v22, %s4764_s24  ;;  %v3235_v0 = vpop.f32.mrb[49].mxu1  ;;  %3358 = vrot.lane.b32.xlu0 %v6409_v23, %s4764_s24 }
 0x988   :  { %v4529_v9 = vpack.c.bf16 %v6411_v18, %v6407_v22  ;;  %v3329_v61 = vadd.f32 %v3303_v30, %v3235_v0 }
 0x989   :  { %v6421_v10 = vmax.f32 %v3328_v45, 0.0 }
 0x98a   :  { %v3239_v62 = vpop.f32.mrb[50].mxu1  ;;  %v6427_v38 = vmax.f32 %v3329_v61, 0.0 }
 0x98b   :  { %v3330_v20 = vadd.f32 %v3308_v4, %v3239_v62  ;;  %3360 = vrot.lane.b32.xlu1 %v6421_v10, %s4764_s24  ;;  %v3241_v21 = vpop.f32.mrb[51].mxu1  ;;  %3374 = vrot.lane.b32.xlu0 %v6411_v18, %s4764_s24 }
 0x98c   :  { %v3331_v31 = vadd.f32 %v3308_v4, %v3241_v21 }
 0x98d   :  { %v6429_v46 = vmax.f32 %v3330_v20, 0.0 }
 0x98e   :  { %v6431_v42 = vmax.f32 %v3331_v31, 0.0  ;;  %v3245_v48 = vpop.f32.mrb[52].mxu1 }
 0x98f   :  { %v4535_v54 = vpack.c.bf16 %v6429_v46, %v6421_v10  ;;  %v3332_v24 = vadd.f32 %v3313_v63, %v3245_v48  ;;  %3376 = vrot.lane.b32.xlu1 %v6427_v38, %s4764_s24  ;;  %v3247_v57 = vpop.f32.mrb[53].mxu1  ;;  %3362 = vrot.lane.b32.xlu0 %v6429_v46, %s4764_s24 }
 0x990   :  { %v4533_v26 = vpack.c.bf16 %v6431_v42, %v6427_v38  ;;  %v3333_v27 = vadd.f32 %v3313_v63, %v3247_v57 }
 0x991   :  { %v6441_v50 = vmax.f32 %v3332_v24, 0.0 }
 0x992   :  { %v3251_v40 = vpop.f32.mrb[54].mxu1  ;;  %v6447_v44 = vmax.f32 %v3333_v27, 0.0 }
 0x993   :  { %v3334_v32 = vadd.f32 %v3318_v39, %v3251_v40  ;;  %3364 = vrot.lane.b32.xlu1 %v6441_v50, %s4764_s24  ;;  %v3253_v37 = vpop.f32.mrb[55].mxu1  ;;  %3378 = vrot.lane.b32.xlu0 %v6431_v42, %s4764_s24 }
 0x994   :  { %v3335_v34 = vadd.f32 %v3318_v39, %v3253_v37 }
 0x995   :  { %v6449_v56 = vmax.f32 %v3334_v32, 0.0 }
 0x996   :  { %v6451_v59 = vmax.f32 %v3335_v34, 0.0 }
 0x997   :  { %v4539_v28 = vpack.c.bf16 %v6449_v56, %v6441_v50  ;;  %3380 = vrot.lane.b32.xlu1 %v6447_v44, %s4764_s24  ;;  %3366 = vrot.lane.b32.xlu0 %v6449_v56, %s4764_s24 }
 0x998   :  { %v4537_v33 = vpack.c.bf16 %v6451_v59, %v6447_v44 }
 0x99b   :  { %3416 = vrot.lane.b32.xlu1 %v6383_v11, %s4765_s25  ;;  %3382 = vrot.lane.b32.xlu0 %v6451_v59, %s4764_s24  ;;  %v3491_v11 = vld [vmem:[%s6786_s13 + $0x10] sm:$0xff] }
 0x99f   :  { %3432 = vrot.lane.b32.xlu1 %v6387_v47, %s4765_s25  ;;  %3418 = vrot.lane.b32.xlu0 %v6389_v49, %s4765_s25 }
 0x9a3   :  { %3420 = vrot.lane.b32.xlu1 %v6401_v29, %s4765_s25  ;;  %3434 = vrot.lane.b32.xlu0 %v6391_v60, %s4765_s25  ;;  %v3492_v29 = vld [vmem:[%s6786_s13 + $0x18] sm:$0xff] }
 0x9a7   :  { %3436 = vrot.lane.b32.xlu1 %v6407_v22, %s4765_s25  ;;  %3422 = vrot.lane.b32.xlu0 %v6409_v23, %s4765_s25 }
 0x9ab   :  { %3424 = vrot.lane.b32.xlu1 %v6421_v10, %s4765_s25  ;;  %3438 = vrot.lane.b32.xlu0 %v6411_v18, %s4765_s25 }
 0x9af   :  { %3440 = vrot.lane.b32.xlu1 %v6427_v38, %s4765_s25  ;;  %3426 = vrot.lane.b32.xlu0 %v6429_v46, %s4765_s25  ;;  %v3494_v38 = vld [vmem:[%s6786_s13 + $0x28] sm:$0xff] }
 0x9b3   :  { %3428 = vrot.lane.b32.xlu1 %v6441_v50, %s4765_s25  ;;  %3442 = vrot.lane.b32.xlu0 %v6431_v42, %s4765_s25 }
 0x9b7   :  { %3444 = vrot.lane.b32.xlu1 %v6447_v44, %s4765_s25  ;;  %3430 = vrot.lane.b32.xlu0 %v6449_v56, %s4765_s25  ;;  %v3496_v56 = vld [vmem:[%s6786_s13 + $0x38] sm:$0xff] }
 0x9bb   :  { %3943 = vperm.xlu1 %4762, %v3933_v2   ;;  %3446 = vrot.lane.b32.xlu0 %v6451_v59, %s4765_s25 }
 0x9bf   :  { %3953 = vperm.xlu1 %4762, %v3935_v3   ;;  %3948 = vperm.xlu0 %4761, %v3934_v35  }
 0x9c3   :  { %3963 = vperm.xlu1 %4762, %v3937_v43   ;;  %3958 = vperm.xlu0 %4761, %v3936_v51  }
 0x9c7   :  { %3973 = vperm.xlu1 %4762, %v3939_v5   ;;  %3968 = vperm.xlu0 %4761, %v3938_v15  }
 0x9cb   :  { %3978 = vperm.xlu0 %4761, %v3940_v16  }
 0x9ed   :  { %v3353_v8 = vpop.permute.xlu1 %3352 }
 0x9f1   :  { %v3369_v14 = vpop.permute.xlu1 %3368  ;;  %v3355_v36 = vpop.permute.xlu0 %3354 }
 0x9f2   :  { %v3384_v52 = vsel %vm76_vm2, %v3353_v8, %v3369_v14  ;;  %v3392_v53 = vsel %vm76_vm2, %v3369_v14, %v3353_v8 }
 0x9f3   :  { %v3400_v0 = vmul.f32 %v4880_v13, %v3392_v53  ;;  %v3401_v61 = vmul.f32 %v4877_v12, %v3384_v52 }
 0x9f5   :  { %v3357_v58 = vpop.permute.xlu1 %3356  ;;  %v3371_v30 = vpop.permute.xlu0 %3370 }
 0x9f6   :  { %v3385_v41 = vsel %vm76_vm2, %v3355_v36, %v3371_v30  ;;  %v3393_v45 = vsel %vm76_vm2, %v3371_v30, %v3355_v36 }
 0x9f7   :  { %v3402_v4 = vmul.f32 %v4880_v13, %v3393_v45  ;;  %v3403_v62 = vmul.f32 %v4877_v12, %v3385_v41 }
 0x9f9   :  { %v4511_v20 = vpack.c.bf16 %v3402_v4, %v3400_v0  ;;  %v3373_v21 = vpop.permute.xlu1 %3372  ;;  %v3359_v31 = vpop.permute.xlu0 %3358  ;;  %v4509_v63 = vpack.c.bf16 %v3403_v62, %v3401_v61 }
 0x9fa   :  { %v3386_v48 = vsel %vm76_vm2, %v3357_v58, %v3373_v21  ;;  %v3394_v24 = vsel %vm76_vm2, %v3373_v21, %v3357_v58 }
 0x9fb   :  { %4510 = vmatprep.subr.bf16.mxu0 %v4509_v63  ;;  %v3404_v32 = vmul.f32 %v4880_v13, %v3394_v24  ;;  %v3405_v37 = vmul.f32 %v4877_v12, %v3386_v48 }
 0x9fc   :  { %4512 = vmatpush1.bf16.msra.mxu0 %v4511_v20 }
 0x9fd   :  { %v3361_v57 = vpop.permute.xlu1 %3360  ;;  %v3375_v27 = vpop.permute.xlu0 %3374 }
 0x9fe   :  { %v3387_v39 = vsel %vm76_vm2, %v3359_v31, %v3375_v27  ;;  %v3395_v40 = vsel %vm76_vm2, %v3375_v27, %v3359_v31 }
 0x9ff   :  { %v3406_v34 = vmul.f32 %v4880_v13, %v3395_v40  ;;  %v3407_v2 = vmul.f32 %v4877_v12, %v3387_v39 }
 0xa01   :  { %v4515_v3 = vpack.c.bf16 %v3406_v34, %v3404_v32  ;;  %v3377_v35 = vpop.permute.xlu1 %3376  ;;  %v3363_v43 = vpop.permute.xlu0 %3362  ;;  %v4513_v51 = vpack.c.bf16 %v3407_v2, %v3405_v37  ;;  %v3489_v34 = vld [vmem:[%s6786_s13] sm:$0xff] }
 0xa02   :  { %v3388_v5 = vsel %vm76_vm2, %v3361_v57, %v3377_v35  ;;  %v3396_v15 = vsel %vm76_vm2, %v3377_v35, %v3361_v57 }
 0xa03   :  { %4514 = vmatprep.subr.bf16.mxu0 %v4513_v51  ;;  %v3408_v52 = vmul.f32 %v4880_v13, %v3396_v15  ;;  %v3409_v53 = vmul.f32 %v4877_v12, %v3388_v5  ;;  %v4288_v15 = vld [vmem:[%s6786_s13 + $0x40] sm:$0xff] }
 0xa04   :  { %4516 = vmatpush1.bf16.msra.mxu0 %v4515_v3 }
 0xa05   :  { %v3365_v16 = vpop.permute.xlu1 %3364  ;;  %v3379_v8 = vpop.permute.xlu0 %3378 }
 0xa06   :  { %v3389_v14 = vsel %vm76_vm2, %v3363_v43, %v3379_v8  ;;  %v3397_v36 = vsel %vm76_vm2, %v3379_v8, %v3363_v43 }
 0xa07   :  { %v3410_v58 = vmul.f32 %v4880_v13, %v3397_v36  ;;  %v3411_v30 = vmul.f32 %v4877_v12, %v3389_v14 }
 0xa09   :  { %v4519_v41 = vpack.c.bf16 %v3410_v58, %v3408_v52  ;;  %v3381_v45 = vpop.permute.xlu1 %3380  ;;  %v3367_v0 = vpop.permute.xlu0 %3366  ;;  %v4517_v61 = vpack.c.bf16 %v3411_v30, %v3409_v53 }
 0xa0a   :  { %v3390_v4 = vsel %vm76_vm2, %v3365_v16, %v3381_v45  ;;  %v3398_v62 = vsel %vm76_vm2, %v3381_v45, %v3365_v16 }
 0xa0b   :  { %4518 = vmatprep.subr.bf16.mxu0 %v4517_v61  ;;  %v3412_v48 = vmul.f32 %v4880_v13, %v3398_v62  ;;  %v3413_v24 = vmul.f32 %v4877_v12, %v3390_v4  ;;  %v4289_v4 = vld [vmem:[%s6786_s13 + $0x48] sm:$0xff] }
 0xa0c   :  { %4520 = vmatpush1.bf16.msra.mxu0 %v4519_v41 }
 0xa0d   :  { %v6559_v20 = vpop.permute.xlu1 %3416  ;;  %v3383_v21 = vpop.permute.xlu0 %3382 }
 0xa0e   :  { %v3391_v31 = vsel %vm76_vm2, %v3367_v0, %v3383_v21  ;;  %v3399_v63 = vsel %vm76_vm2, %v3383_v21, %v3367_v0 }
 0xa0f   :  { %v3414_v57 = vmul.f32 %v4880_v13, %v3399_v63  ;;  %v3415_v27 = vmul.f32 %v4877_v12, %v3391_v31  ;;  %v3490_v12 = vld [vmem:[%s6786_s13 + $0x8] sm:$0xff] }
 0xa11   :  { %v4523_v39 = vpack.c.bf16 %v3414_v57, %v3412_v48  ;;  %v3419_v40 = vpop.permute.xlu0 %3418  ;;  %v4521_v32 = vpack.c.bf16 %v3415_v27, %v3413_v24  ;;  %v3433_v37 = vpop.permute.xlu1 %3432 }
 0xa12   :  { %v3448_v59 = vsel %vm85_vm3, %v6559_v20, %v3433_v37 }
 0xa13   :  { %4522 = vmatprep.subr.bf16.mxu0 %v4521_v32  ;;  %v3464_v51 = vmul.f32 %v4904_v25, %v3448_v59 }
 0xa14   :  { %4524 = vmatpush1.bf16.msra.mxu0 %v4523_v39  ;;  %v4290_v39 = vld [vmem:[%s6786_s13 + $0x50] sm:$0xff] }
 0xa15   :  { %4526 = vmatprep.subr.bf16.mxu0 %v4525_v17  ;;  %v3435_v2 = vpop.permute.xlu0 %3434  ;;  %v3421_v13 = vpop.permute.xlu1 %3420 }
 0xa16   :  { %v3457_v60 = vsel %vm85_vm3, %v3435_v2, %v3419_v40 }
 0xa17   :  { %4296 = vmatmul.mubr.msk.f32.vlgmr.msra.gmra.mrb[36].mxu0 %vm1513_vm9, %v3489_v34  ;;  %v3467_v17 = vmul.f32 %v4889_v19, %v3457_v60  ;;  %v4295_v60 = vld [vmem:[%s6786_s13 + $0x78] sm:$0xff] }
 0xa18   :  { %4528 = vmatpush1.bf16.msra.mxu0 %v4527_v6  ;;  %3591 = vmatprep.mubr.f32.mxu0 %v4763_v1  ;;  %v3456_v6 = vsel %vm85_vm3, %v3433_v37, %v6559_v20 }
 0xa19   :  { %4530 = vmatprep.subr.bf16.mxu0 %v4529_v9  ;;  %v3423_v47 = vpop.permute.xlu0 %3422  ;;  %v3437_v22 = vpop.permute.xlu1 %3436  ;;  %v3465_v23 = vmul.f32 %v4889_v19, %v3456_v6  ;;  %v3493_v9 = vld [vmem:[%s6786_s13 + $0x20] sm:$0xff]  ;;  %v4314_v6 = vld [vmem:[%s6786_s13 + $0x90] sm:$0xff] }
 0xa1a   :  { %v3458_v3 = vsel %vm85_vm3, %v3437_v22, %v3421_v13  ;;  %v3450_v16 = vsel %vm85_vm3, %v3421_v13, %v3437_v22  ;;  %v4291_v13 = vld [vmem:[%s6786_s13 + $0x58] sm:$0xff]  ;;  %v4316_v22 = vld [vmem:[%s6786_s13 + $0xa0] sm:$0xff] }
 0xa1b   :  { %4297 = vmatmul.mubr.msk.f32.gmra.mrb[38].mxu0 %vm1513_vm9, %v3490_v12  ;;  %v3469_v8 = vmul.f32 %v4889_v19, %v3458_v3  ;;  %v3468_v0 = vmul.f32 %v4904_v25, %v3450_v16 }
 0xa1c   :  { %4532 = vmatpush1.bf16.msra.mxu0 %v4531_v55  ;;  %3597 = vmatprep.mubr.f32.mxu0 %v4763_v1  ;;  %v4541_v55 = vpack.c.bf16 %v3467_v17, %v3465_v23  ;;  %v4315_v17 = vld [vmem:[%s6786_s13 + $0x98] sm:$0xff]  ;;  %v4318_v23 = vld [vmem:[%s6786_s13 + $0xb0] sm:$0xff] }
 0xa1d   :  { %4534 = vmatprep.subr.bf16.mxu0 %v4533_v26  ;;  %v3439_v49 = vpop.permute.xlu0 %3438  ;;  %v3425_v10 = vpop.permute.xlu1 %3424  ;;  %v3449_v26 = vsel %vm85_vm3, %v3419_v40, %v3435_v2 }
 0xa1e   :  { %v3459_v44 = vsel %vm85_vm3, %v3439_v49, %v3423_v47  ;;  %v3451_v35 = vsel %vm85_vm3, %v3423_v47, %v3439_v49  ;;  %v4294_v47 = vld [vmem:[%s6786_s13 + $0x70] sm:$0xff]  ;;  %v4313_v49 = vld [vmem:[%s6786_s13 + $0x88] sm:$0xff] }
 0xa1f   :  { %4298 = vmatmul.mubr.msk.f32.gmra.mrb[40].mxu0 %vm1513_vm9, %v3491_v11  ;;  %v3471_v43 = vmul.f32 %v4889_v19, %v3459_v44  ;;  %v3470_v52 = vmul.f32 %v4904_v25, %v3451_v35  ;;  %v4312_v11 = vld [vmem:[%s6786_s13 + $0x80] sm:$0xff] }
 0xa20   :  { %4536 = vmatpush1.bf16.msra.mxu0 %v4535_v54  ;;  %3603 = vmatprep.mubr.f32.mxu0 %v4763_v1  ;;  %v3495_v54 = vld [vmem:[%s6786_s13 + $0x30] sm:$0xff] }
 0xa21   :  { %4538 = vmatprep.subr.bf16.mxu0 %v4537_v33  ;;  %v3427_v18 = vpop.permute.xlu0 %3426  ;;  %v3441_v42 = vpop.permute.xlu1 %3440  ;;  %v3466_v33 = vmul.f32 %v4904_v25, %v3449_v26  ;;  %v4545_v45 = vpack.c.bf16 %v3471_v43, %v3469_v8  ;;  %v4547_v21 = vpack.c.bf16 %v3470_v52, %v3468_v0 }
 0xa22   :  { %v3460_v53 = vsel %vm85_vm3, %v3441_v42, %v3425_v10  ;;  %v3452_v62 = vsel %vm85_vm3, %v3425_v10, %v3441_v42 }
 0xa23   :  { %4299 = vmatmul.mubr.msk.f32.gmra.mrb[42].mxu0 %vm1513_vm9, %v3492_v29  ;;  %v4543_v36 = vpack.c.bf16 %v3466_v33, %v3464_v51  ;;  %v3473_v20 = vmul.f32 %v4889_v19, %v3460_v53  ;;  %v3472_v27 = vmul.f32 %v4904_v25, %v3452_v62  ;;  %v4317_v29 = vld [vmem:[%s6786_s13 + $0xa8] sm:$0xff] }
 0xa24   :  { %4540 = vmatpush1.bf16.msra.mxu0 %v4539_v28  ;;  %3609 = vmatprep.mubr.f32.mxu0 %v4763_v1 }
 0xa25   :  { %4542 = vmatprep.subr.bf16.mxu0 %v4541_v55  ;;  %v3443_v46 = vpop.permute.xlu0 %3442  ;;  %v3429_v28 = vpop.permute.xlu1 %3428 }
 0xa26   :  { %v3461_v5 = vsel %vm85_vm3, %v3443_v46, %v3427_v18  ;;  %v3453_v58 = vsel %vm85_vm3, %v3427_v18, %v3443_v46  ;;  %v4319_v18 = vld [vmem:[%s6786_s13 + $0xb8] sm:$0xff] }
 0xa27   :  { %4300 = vmatmul.mubr.msk.f32.gmra.mrb[44].mxu0 %vm1513_vm9, %v3493_v9  ;;  %v3475_v30 = vmul.f32 %v4889_v19, %v3461_v5  ;;  %v3474_v31 = vmul.f32 %v4904_v25, %v3453_v58 }
 0xa28   :  { %3615 = vmatprep.mubr.f32.mxu0 %v4763_v1 }
 0xa29   :  { %v3431_v50 = vpop.permute.xlu0 %3430  ;;  %v3445_v41 = vpop.permute.xlu1 %3444  ;;  %v4549_v57 = vpack.c.bf16 %v3475_v30, %v3473_v20  ;;  %v4551_v37 = vpack.c.bf16 %v3474_v31, %v3472_v27 }
 0xa2a   :  { %v3462_v63 = vsel %vm85_vm3, %v3445_v41, %v3429_v28  ;;  %v3454_v40 = vsel %vm85_vm3, %v3429_v28, %v3445_v41 }
 0xa2b   :  { %4301 = vmatmul.mubr.msk.f32.gmra.mrb[46].mxu0 %vm1513_vm9, %v3494_v38  ;;  %v3477_v32 = vmul.f32 %v4889_v19, %v3462_v63  ;;  %v3476_v12 = vmul.f32 %v4904_v25, %v3454_v40 }
 0xa2c   :  { %3621 = vmatprep.mubr.f32.mxu0 %v4763_v1 }
 0xa2d   :  { %v3447_v14 = vpop.permute.xlu0 %3446 }
 0xa2e   :  { %v3463_v61 = vsel %vm85_vm3, %v3447_v14, %v3431_v50  ;;  %v3455_v48 = vsel %vm85_vm3, %v3431_v50, %v3447_v14 }
 0xa2f   :  { %4302 = vmatmul.mubr.msk.f32.gmra.mrb[48].mxu0 %vm1513_vm9, %v3495_v54  ;;  %v3479_v24 = vmul.f32 %v4889_v19, %v3463_v61  ;;  %v3478_v34 = vmul.f32 %v4904_v25, %v3455_v48  ;;  %v4292_v19 = vld [vmem:[%s6786_s13 + $0x60] sm:$0xff]  ;;  %v4293_v25 = vld [vmem:[%s6786_s13 + $0x68] sm:$0xff] }
 0xa30   :  { %3627 = vmatprep.mubr.f32.mxu0 %v4763_v1 }
 0xa31   :  { %v4553_v2 = vpack.c.bf16 %v3479_v24, %v3477_v32  ;;  %v4555_v7 = vpack.c.bf16 %v3478_v34, %v3476_v12 }
 0xa33   :  { %4303 = vmatmul.mubr.msk.f32.gmra.mrb[50].mxu0 %vm1513_vm9, %v3496_v56 }
 0xa34   :  { %3722 = vmatprep.mubr.f32.mxu0 %v4763_v1 }
 0xa37   :  { %4304 = vmatmul.mubr.msk.f32.vlgmr.msra.gmra.mrb[36].mxu0 %vm1513_vm9, %v4288_v15 }
 0xa38   :  { %4544 = vmatpush1.bf16.msra.mxu0 %v4543_v36  ;;  %3728 = vmatprep.mubr.f32.mxu0 %v4763_v1 }
 0xa39   :  { %4546 = vmatprep.subr.bf16.mxu0 %v4545_v45 }
 0xa3a   :  { %v3944_v10 = vpop.permute.xlu1 %3943 }
 0xa3b   :  { %4305 = vmatmul.mubr.msk.f32.gmra.mrb[38].mxu0 %vm1513_vm9, %v4289_v4 }
 0xa3c   :  { %4548 = vmatpush1.bf16.msra.mxu0 %v4547_v21  ;;  %3734 = vmatprep.mubr.f32.mxu0 %v4763_v1 }
 0xa3d   :  { %4550 = vmatprep.subr.bf16.mxu0 %v4549_v57 }
 0xa3e   :  { %v3949_v46 = vpop.permute.xlu0 %3948  ;;  %v3954_v43 = vpop.permute.xlu1 %3953 }
 0xa3f   :  { %4306 = vmatmul.mubr.msk.f32.gmra.mrb[40].mxu0 %vm1513_vm9, %v4290_v39 }
 0xa40   :  { %4552 = vmatpush1.bf16.msra.mxu0 %v4551_v37  ;;  %3740 = vmatprep.mubr.f32.mxu0 %v4763_v1 }
 0xa41   :  { %4554 = vmatprep.subr.bf16.mxu0 %v4553_v2 }
 0xa42   :  { %v3959_v15 = vpop.permute.xlu0 %3958  ;;  %v3964_v4 = vpop.permute.xlu1 %3963 }
 0xa43   :  { %4307 = vmatmul.mubr.msk.f32.gmra.mrb[42].mxu0 %vm1513_vm9, %v4291_v13 }
 0xa44   :  { %4556 = vmatpush1.bf16.msra.mxu0 %v4555_v7  ;;  %3746 = vmatprep.mubr.f32.mxu0 %v4763_v1 }
 0xa46   :  { %v3969_v21 = vpop.permute.xlu0 %3968  ;;  %v3974_v12 = vpop.permute.xlu1 %3973 }
 0xa47   :  { %4308 = vmatmul.mubr.msk.f32.gmra.mrb[44].mxu0 %vm1513_vm9, %v4292_v19 }
 0xa48   :  { %3752 = vmatprep.mubr.f32.mxu0 %v4763_v1 }
 0xa4a   :  { %v3979_v19 = vpop.permute.xlu0 %3978 }
 0xa4b   :  { %4309 = vmatmul.mubr.msk.f32.gmra.mrb[46].mxu0 %vm1513_vm9, %v4293_v25 }
 0xa4c   :  { %3758 = vmatprep.mubr.f32.mxu0 %v4763_v1 }
 0xa4f   :  { %4310 = vmatmul.mubr.msk.f32.gmra.mrb[48].mxu0 %vm1513_vm9, %v4294_v47 }
 0xa50   :  { %3764 = vmatprep.mubr.f32.mxu0 %v4763_v1 }
 0xa53   :  { %4311 = vmatmul.mubr.msk.f32.gmra.mrb[50].mxu0 %vm1513_vm9, %v4295_v60 }
 0xa54   :  { %3868 = vmatprep.mubr.f32.mxu0 %v4763_v1 }
 0xa57   :  { %4320 = vmatmul.mubr.msk.f32.vlgmr.msra.gmra.mrb[36].mxu0 %vm1513_vm9, %v4312_v11 }
 0xa58   :  { %3874 = vmatprep.mubr.f32.mxu0 %v4763_v1 }
 0xa5b   :  { %4321 = vmatmul.mubr.msk.f32.gmra.mrb[38].mxu0 %vm1513_vm9, %v4313_v49 }
 0xa5c   :  { %3880 = vmatprep.mubr.f32.mxu0 %v4763_v1 }
 0xa5f   :  { %4322 = vmatmul.mubr.msk.f32.gmra.mrb[40].mxu0 %vm1513_vm9, %v4314_v6 }
 0xa60   :  { %3886 = vmatprep.mubr.f32.mxu0 %v4763_v1 }
 0xa63   :  { %4323 = vmatmul.mubr.msk.f32.gmra.mrb[42].mxu0 %vm1513_vm9, %v4315_v17 }
 0xa64   :  { %3892 = vmatprep.mubr.f32.mxu0 %v4763_v1 }
 0xa67   :  { %4324 = vmatmul.mubr.msk.f32.gmra.mrb[44].mxu0 %vm1513_vm9, %v4316_v22 }
 0xa68   :  { %3898 = vmatprep.mubr.f32.mxu0 %v4763_v1 }
 0xa6b   :  { %4325 = vmatmul.mubr.msk.f32.gmra.mrb[46].mxu0 %vm1513_vm9, %v4317_v29 }
 0xa6c   :  { %3904 = vmatprep.mubr.f32.mxu0 %v4763_v1 }
 0xa6f   :  { %4326 = vmatmul.mubr.msk.f32.gmra.mrb[48].mxu0 %vm1513_vm9, %v4318_v23 }
 0xa70   :  { %3910 = vmatprep.mubr.f32.mxu0 %v4763_v1 }
 0xa73   :  { %4327 = vmatmul.mubr.msk.f32.gmra.mrb[50].mxu0 %vm1513_vm9, %v4319_v18 }
 0xb2a   :  { %v3870_v55 = vpop.f32.mrb[36].mxu0 }
 0xb2b   :  { %v3872_v9 = vpop.f32.mrb[37].mxu0  ;;  %v3981_v38 = vadd.f32 %v3944_v10, %v3870_v55  ;;  %v4013_v55 = vld [vmem:[%s6787_s15] sm:$0xff] }
 0xb2c   :  { %v3982_v42 = vadd.f32 %v3944_v10, %v3872_v9 }
 0xb2d   :  { %v3997_v56 = vmax.f32 %v3981_v38, 0.0 }
 0xb2e   :  { %v3876_v54 = vpop.f32.mrb[38].mxu0  ;;  %v3998_v28 = vmax.f32 %v3982_v42, 0.0 }
 0xb2f   :  { %v3983_v26 = vadd.f32 %v3949_v46, %v3876_v54  ;;  %v3878_v50 = vpop.f32.mrb[39].mxu0 }
 0xb30   :  { %v3984_v44 = vadd.f32 %v3949_v46, %v3878_v50 }
 0xb31   :  { %v3999_v59 = vmax.f32 %v3983_v26, 0.0 }
 0xb32   :  { %v4000_v1 = vmax.f32 %v3984_v44, 0.0  ;;  %v3882_v33 = vpop.f32.mrb[40].mxu0 }
 0xb33   :  { %v4559_v3 = vpack.c.bf16 %v3999_v59, %v3997_v56  ;;  %v3884_v35 = vpop.f32.mrb[41].mxu0  ;;  %v3985_v5 = vadd.f32 %v3954_v43, %v3882_v33 }
 0xb34   :  { %v4557_v51 = vpack.c.bf16 %v4000_v1, %v3998_v28  ;;  %v3986_v16 = vadd.f32 %v3954_v43, %v3884_v35 }
 0xb35   :  { %v4001_v53 = vmax.f32 %v3985_v5, 0.0 }
 0xb36   :  { %v3888_v8 = vpop.f32.mrb[42].mxu0  ;;  %4558 = vmatprep.subr.bf16.mxu1 %v4557_v51  ;;  %v4002_v30 = vmax.f32 %v3986_v16, 0.0 }
 0xb37   :  { %v3987_v14 = vadd.f32 %v3959_v15, %v3888_v8  ;;  %v3890_v36 = vpop.f32.mrb[43].mxu0  ;;  %4560 = vmatpush1.bf16.msra.mxu1 %v4559_v3 }
 0xb38   :  { %v3988_v52 = vadd.f32 %v3959_v15, %v3890_v36 }
 0xb39   :  { %v4003_v58 = vmax.f32 %v3987_v14, 0.0 }
 0xb3a   :  { %v4004_v41 = vmax.f32 %v3988_v52, 0.0  ;;  %v3894_v45 = vpop.f32.mrb[44].mxu0 }
 0xb3b   :  { %v4563_v0 = vpack.c.bf16 %v4003_v58, %v4001_v53  ;;  %v3896_v61 = vpop.f32.mrb[45].mxu0  ;;  %v3989_v20 = vadd.f32 %v3964_v4, %v3894_v45 }
 0xb3c   :  { %v4561_v62 = vpack.c.bf16 %v4004_v41, %v4002_v30  ;;  %v3990_v31 = vadd.f32 %v3964_v4, %v3896_v61 }
 0xb3d   :  { %v4005_v27 = vmax.f32 %v3989_v20, 0.0 }
 0xb3e   :  { %v3900_v63 = vpop.f32.mrb[46].mxu0  ;;  %4562 = vmatprep.subr.bf16.mxu1 %v4561_v62  ;;  %v4006_v40 = vmax.f32 %v3990_v31, 0.0 }
 0xb3f   :  { %v3991_v48 = vadd.f32 %v3969_v21, %v3900_v63  ;;  %v3902_v24 = vpop.f32.mrb[47].mxu0  ;;  %4564 = vmatpush1.bf16.msra.mxu1 %v4563_v0 }
 0xb40   :  { %v3992_v57 = vadd.f32 %v3969_v21, %v3902_v24 }
 0xb41   :  { %v4007_v39 = vmax.f32 %v3991_v48, 0.0 }
 0xb42   :  { %v4008_v32 = vmax.f32 %v3992_v57, 0.0  ;;  %v3906_v37 = vpop.f32.mrb[48].mxu0 }
 0xb43   :  { %v4567_v34 = vpack.c.bf16 %v4007_v39, %v4005_v27  ;;  %v3908_v2 = vpop.f32.mrb[49].mxu0  ;;  %v3993_v7 = vadd.f32 %v3974_v12, %v3906_v37 }
 0xb44   :  { %v4565_v13 = vpack.c.bf16 %v4008_v32, %v4006_v40  ;;  %v3994_v25 = vadd.f32 %v3974_v12, %v3908_v2 }
 0xb45   :  { %v4009_v6 = vmax.f32 %v3993_v7, 0.0 }
 0xb46   :  { %v3912_v47 = vpop.f32.mrb[50].mxu0  ;;  %4566 = vmatprep.subr.bf16.mxu1 %v4565_v13  ;;  %v4010_v22 = vmax.f32 %v3994_v25, 0.0 }
 0xb47   :  { %v3995_v60 = vadd.f32 %v3979_v19, %v3912_v47  ;;  %v3914_v11 = vpop.f32.mrb[51].mxu0  ;;  %4568 = vmatpush1.bf16.msra.mxu1 %v4567_v34 }
 0xb48   :  { %v3996_v49 = vadd.f32 %v3979_v19, %v3914_v11 }
 0xb49   :  { %v4011_v17 = vmax.f32 %v3995_v60, 0.0 }
 0xb4a   :  { %v4012_v29 = vmax.f32 %v3996_v49, 0.0 }
 0xb4b   :  { %v4571_v23 = vpack.c.bf16 %v4011_v17, %v4009_v6 }
 0xb4c   :  { %v4569_v18 = vpack.c.bf16 %v4012_v29, %v4010_v22 }
 0xb4e   :  { %4570 = vmatprep.subr.bf16.mxu1 %v4569_v18 }
 0xb4f   :  { %4572 = vmatpush1.bf16.msra.mxu1 %v4571_v23 }
 0xb52   :  { %4328 = vmatmul.mubr.msk.f32.vlgmr.msra.gmra.mrb[56].mxu1 %vm1513_vm9, %v4013_v55 }
 0xc25   :  { %v4083_v9 = vpop.f32.mrb[56].mxu1 }
 0xc26   :  { %4088 = vst [vmem:[%s6788_s16] sm:$0xff] %v4083_v9  ;;  %v4085_v10 = vpop.f32.mrb[57].mxu1 }
 0xc27   :  { %4089 = vst [vmem:[%s6788_s16 + $0x8] sm:$0xff] %v4085_v10 }

</bundles_post_ra>
